<compile_context>
chip_gen: v6e
topology: v6e:2x2x1
jax: 0.10.0
libtpu: 0.0.40
codegen_flags: <defaults>
</compile_context>

<pallas_src>
import functools

import numpy as np
import jax
import jax.numpy as jnp
from jax import lax
from jax.experimental import pallas as pl
from jax.experimental.pallas import tpu as pltpu


def _leaky(x, neg_slope):
    return jnp.where(x >= 0, x, neg_slope * x)


def _conv_same(src_ref, w_ref, *, Rimg, G, Wpa, K):
    """'same' KxK conv over a guarded (rows, cin) layout as ONE deep matmul.

    src_ref : (Rg, cin) guarded, zero-padded rows (row = hp*Wpa + wp, offset G).
    w_ref   : (K*K*cin, OC) weights, rows ordered (kw, kh, cin), WScale gain
              already folded in.
    Returns (Rimg, OC) float32.
    """
    c = K // 2
    # K sublane-aligned row slices (offsets G + (kh-c)*Wpa are multiples of 8).
    xs = [src_ref[pl.ds(G + (kh - c) * Wpa, Rimg), :] for kh in range(K)]
    xc = jnp.concatenate(xs, axis=1)                     # (Rimg, K*cin) (kh,c)
    cols = []
    for kw in range(K):
        d = kw - c                                       # want blk[r] = xc[r+d]
        blk = xc if d == 0 else pltpu.roll(xc, shift=(-d) % Rimg, axis=0)
        cols.append(blk)                                 # XLU sublane rotate
    x_im2col = jnp.concatenate(cols, axis=1)             # (Rimg, K*K*cin)
    # Single deep MXU matmul (contraction depth K*K*cin), f32 accumulation.
    return jnp.dot(x_im2col, w_ref[...], preferred_element_type=jnp.float32)


def _fused_block_kernel(p0g_ref, w0_ref, b0_ref, w1_ref, b1_ref, mask_ref,
                        out_ref, p1g_ref, h1_ref,
                        *, Rimg, G, Wpa, OC0, K, pad, H, W, neg_slope):
    Ho, Wo = H // 2, W // 2

    # ---- conv0 (gain folded) + bias + LeakyReLU; border rows zeroed so they
    # ---- act as conv1's zero padding. -------------------------------------
    h0 = _conv_same(p0g_ref, w0_ref, Rimg=Rimg, G=G, Wpa=Wpa, K=K)
    h0 = _leaky(h0 + b0_ref[...], neg_slope) * mask_ref[...]

    # ---- stage conv1 input: zero ONLY the guard rows, interior <- masked h0
    p1g_ref[pl.ds(0, G), :] = jnp.zeros((G, OC0), jnp.float32)
    p1g_ref[pl.ds(G + Rimg, G), :] = jnp.zeros((G, OC0), jnp.float32)
    p1g_ref[pl.ds(G, Rimg), :] = h0

    # ---- conv1 (gain folded) + bias (activation only after the pool) ------
    h1_ref[...] = (_conv_same(p1g_ref, w1_ref, Rimg=Rimg, G=G, Wpa=Wpa, K=K)
                   + b1_ref[...])

    # ---- AvgPool2d(2,2): sum the four stride-2 interior row sets ----------
    rows = []
    for i in range(Ho):
        r0 = (2 * i + pad) * Wpa + pad            # padded row (2i+pad, pad)
        r1 = r0 + Wpa
        s = (h1_ref[pl.ds(r0, Wo, stride=2), :]
             + h1_ref[pl.ds(r0 + 1, Wo, stride=2), :]
             + h1_ref[pl.ds(r1, Wo, stride=2), :]
             + h1_ref[pl.ds(r1 + 1, Wo, stride=2), :])
        rows.append(s)
    pooled = 0.25 * jnp.concatenate(rows, axis=0)        # (Ho*Wo, OC1)
    out_ref[...] = _leaky(pooled, neg_slope)


def make_downscale_conv_block(params, *, padding=1, neg_slope=0.2):
    """Fold the WScale gains once and return a jitted forward(x) closure."""
    w0c = np.asarray(params["w_conv0"], np.float32)       # (OC0, C,   K, K)
    w1c = np.asarray(params["w_conv1"], np.float32)       # (OC1, OC0, K, K)
    OC0, C, K, _ = w0c.shape
    OC1 = w1c.shape[0]
    assert padding == (K - 1) // 2, "fused kernel implements 'same' convs only"

    # Fold sqrt(2)/sqrt(fan_in) into the weights; rows ordered (kw, kh, cin)
    # to match the in-kernel im2col column order.
    s0 = float(np.sqrt(2.0) / np.sqrt(C * K * K))
    s1 = float(np.sqrt(2.0) / np.sqrt(OC0 * K * K))
    w0_mat = jnp.asarray(w0c.transpose(3, 2, 1, 0).reshape(K * K * C, OC0) * s0)
    w1_mat = jnp.asarray(w1c.transpose(3, 2, 1, 0).reshape(K * K * OC0, OC1) * s1)
    b0 = jnp.asarray(params["b_conv0"], jnp.float32).reshape(1, OC0)
    b1 = jnp.asarray(params["b_conv1"], jnp.float32).reshape(1, OC1)

    @jax.jit
    def forward(x):
        N, Cx, H, W = x.shape
        assert Cx == C and H % 2 == 0 and W % 2 == 0
        Hp = H + 2 * padding
        Wpa = ((W + 2 * padding + 7) // 8) * 8   # padded width, multiple of 8
        Rimg = Hp * Wpa                           # rows of one padded image
        G = Wpa                                   # guard rows (>= Wpa, 8-aligned)
        Rg = Rimg + 2 * G
        Ho, Wo = H // 2, W // 2

        # Interior-row mask over the (Hp, Wpa) padded grid (trace-time const).
        hp = np.arange(Hp)
        wp = np.arange(Wpa)
        interior = (((hp >= padding) & (hp < padding + H))[:, None]
                    & ((wp >= padding) & (wp < padding + W))[None, :])
        mask = jnp.asarray(interior.reshape(Rimg, 1).astype(np.float32))

        # NCHW -> guarded, zero-padded (N, rows, C) layout.
        xr = jnp.transpose(x, (0, 2, 3, 1)).astype(jnp.float32)
        xr = jnp.pad(xr, ((0, 0), (padding, padding),
                          (padding, Wpa - W - padding), (0, 0)))
        p0g = jnp.pad(xr.reshape(N, Rimg, C), ((0, 0), (G, G), (0, 0)))

        kernel = functools.partial(
            _fused_block_kernel, Rimg=Rimg, G=G, Wpa=Wpa, OC0=OC0, K=K,
            pad=padding, H=H, W=W, neg_slope=neg_slope)

        flops = 2 * N * Rimg * (K * K * C * OC0 + K * K * OC0 * OC1)
        bytes_accessed = 4 * (p0g.size + w0_mat.size + w1_mat.size + b0.size
                              + b1.size + mask.size + N * Ho * Wo * OC1)

        out = pl.pallas_call(
            kernel,
            grid=(N,),
            in_specs=[
                pl.BlockSpec((None, Rg, C), lambda n: (n, 0, 0)),
                pl.BlockSpec((K * K * C, OC0), lambda n: (0, 0)),
                pl.BlockSpec((1, OC0), lambda n: (0, 0)),
                pl.BlockSpec((K * K * OC0, OC1), lambda n: (0, 0)),
                pl.BlockSpec((1, OC1), lambda n: (0, 0)),
                pl.BlockSpec((Rimg, 1), lambda n: (0, 0)),
            ],
            out_specs=pl.BlockSpec((None, Ho * Wo, OC1), lambda n: (n, 0, 0)),
            out_shape=jax.ShapeDtypeStruct((N, Ho * Wo, OC1), jnp.float32),
            scratch_shapes=[pltpu.VMEM((Rg, OC0), jnp.float32),
                            pltpu.VMEM((Rimg, OC1), jnp.float32)],
            compiler_params=pltpu.CompilerParams(
                dimension_semantics=("parallel",),
                vmem_limit_bytes=16 * 1024 * 1024),
            cost_estimate=pl.CostEstimate(flops=flops, transcendentals=0,
                                          bytes_accessed=bytes_accessed),
        )(p0g, w0_mat, b0, w1_mat, b1, mask)

        # (N, Ho*Wo, OC1) -> NCHW (tiny layout plumbing on the pooled output).
        out = out.reshape(N, Ho, Wo, OC1).transpose(0, 3, 1, 2)
        return out.astype(x.dtype)

    return forward


# ------------------------- pure-JAX reference path ------------------------- #

def _reference_forward(x, params, *, padding=1, neg_slope=0.2):
    xf = x.astype(jnp.float32)
    w0 = jnp.asarray(params["w_conv0"], jnp.float32)
    w1 = jnp.asarray(params["w_conv1"], jnp.float32)
    b0 = jnp.asarray(params["b_conv0"], jnp.float32)
    b1 = jnp.asarray(params["b_conv1"], jnp.float32)
    K = w0.shape[-1]
    C = x.shape[1]
    OC0 = w0.shape[0]
    s0 = np.sqrt(2.0) / np.sqrt(C * K * K)
    s1 = np.sqrt(2.0) / np.sqrt(OC0 * K * K)
    dn = ("NCHW", "OIHW", "NCHW")
    pp = ((padding, padding), (padding, padding))
    y = lax.conv_general_dilated(xf, w0, (1, 1), pp, dimension_numbers=dn,
                                 precision=lax.Precision.HIGHEST)
    y = y * s0 + b0[None, :, None, None]
    y = jnp.where(y >= 0, y, neg_slope * y)
    y = lax.conv_general_dilated(y, w1, (1, 1), pp, dimension_numbers=dn,
                                 precision=lax.Precision.HIGHEST)
    y = y * s1 + b1[None, :, None, None]
    Nn, Cc, Hh, Ww = y.shape
    y = y.reshape(Nn, Cc, Hh // 2, 2, Ww // 2, 2).mean(axis=(3, 5))
    return jnp.where(y >= 0, y, neg_slope * y)


# ---------------------------------- main ----------------------------------- #

if __name__ == "__main__":
    N, C_in, H, W = 2, 4, 16, 16
    conv0_ch, conv1_ch, ksize, padding = 8, 8, 3, 1

    key = jax.random.PRNGKey(0)
    kx, k0, kb0, k1, kb1 = jax.random.split(key, 5)
    x = jax.random.normal(kx, (N, C_in, H, W), jnp.float32)
    params = {
        "w_conv0": jax.random.normal(k0, (conv0_ch, C_in, ksize, ksize), jnp.float32),
        "b_conv0": jax.random.normal(kb0, (conv0_ch,), jnp.float32),
        "w_conv1": jax.random.normal(k1, (conv1_ch, conv0_ch, ksize, ksize), jnp.float32),
        "b_conv1": jax.random.normal(kb1, (conv1_ch,), jnp.float32),
    }

    forward = make_downscale_conv_block(params, padding=padding, neg_slope=0.2)
    out = jax.block_until_ready(forward(x))

    ref = _reference_forward(x, params, padding=padding, neg_slope=0.2)
    np.testing.assert_allclose(np.asarray(out), np.asarray(ref),
                               rtol=1e-3, atol=1e-3)
    assert out.shape == (N, conv1_ch, H // 2, W // 2)
    print("KERNEL_OK")
</pallas_src>

<mosaic_0001>
module attributes {stable_mosaic.version = 11 : i64} {
  func.func @_fused_block_kernel(%arg0: i32, %arg1: memref<1x480x4xf32, #tpu.memory_space<vmem>>, %arg2: memref<36x8xf32, #tpu.memory_space<vmem>>, %arg3: memref<1x8xf32, #tpu.memory_space<vmem>>, %arg4: memref<72x8xf32, #tpu.memory_space<vmem>>, %arg5: memref<1x8xf32, #tpu.memory_space<vmem>>, %arg6: memref<432x1xf32, #tpu.memory_space<vmem>>, %arg7: memref<1x64x8xf32, #tpu.memory_space<vmem>>, %arg8: memref<480x8xf32, #tpu.memory_space<vmem>>, %arg9: memref<432x8xf32, #tpu.memory_space<vmem>>) attributes {dimension_semantics = [#tpu.dimension_semantics<parallel>], iteration_bounds = array<i64: 2>, scalar_prefetch = 0 : i64, scratch_operands = 2 : i64, tpu.core_type = #tpu.core_type<tc>, window_params = [{transform_indices = @transform_0, window_bounds = array<i64: 1, 480, 4>}, {pipeline_mode = #tpu.pipeline_mode<synchronous>, transform_indices = @transform_1, window_bounds = array<i64: 36, 8>}, {pipeline_mode = #tpu.pipeline_mode<synchronous>, transform_indices = @transform_2, window_bounds = array<i64: 1, 8>}, {pipeline_mode = #tpu.pipeline_mode<synchronous>, transform_indices = @transform_3, window_bounds = array<i64: 72, 8>}, {pipeline_mode = #tpu.pipeline_mode<synchronous>, transform_indices = @transform_4, window_bounds = array<i64: 1, 8>}, {pipeline_mode = #tpu.pipeline_mode<synchronous>, transform_indices = @transform_5, window_bounds = array<i64: 432, 1>}, {transform_indices = @transform_6, window_bounds = array<i64: 1, 64, 8>}]} {
    %c0 = arith.constant 0 : index
    %c0_0 = arith.constant 0 : index
    %c0_1 = arith.constant 0 : index
    %0 = vector.load %arg1[%c0, %c0_0, %c0_1] : memref<1x480x4xf32, #tpu.memory_space<vmem>>, vector<1x432x4xf32>
    %1 = vector.shape_cast %0 : vector<1x432x4xf32> to vector<432x4xf32>
    %c0_2 = arith.constant 0 : index
    %c24 = arith.constant 24 : index
    %c0_3 = arith.constant 0 : index
    %2 = vector.load %arg1[%c0_2, %c24, %c0_3] : memref<1x480x4xf32, #tpu.memory_space<vmem>>, vector<1x432x4xf32>
    %3 = vector.shape_cast %2 : vector<1x432x4xf32> to vector<432x4xf32>
    %c0_4 = arith.constant 0 : index
    %c48 = arith.constant 48 : index
    %c0_5 = arith.constant 0 : index
    %4 = vector.load %arg1[%c0_4, %c48, %c0_5] : memref<1x480x4xf32, #tpu.memory_space<vmem>>, vector<1x432x4xf32>
    %5 = vector.shape_cast %4 : vector<1x432x4xf32> to vector<432x4xf32>
    %6 = tpu.concatenate %1, %3, %5 in 1 : vector<432x4xf32>, vector<432x4xf32>, vector<432x4xf32> -> vector<432x12xf32>
    %c1_i32 = arith.constant 1 : i32
    %7 = tpu.dynamic_rotate %6 by %c1_i32 dim 0 : vector<432x12xf32>, i32 -> vector<432x12xf32>
    %c431_i32 = arith.constant 431 : i32
    %8 = tpu.dynamic_rotate %6 by %c431_i32 dim 0 : vector<432x12xf32>, i32 -> vector<432x12xf32>
    %9 = tpu.concatenate %7, %6, %8 in 1 : vector<432x12xf32>, vector<432x12xf32>, vector<432x12xf32> -> vector<432x36xf32>
    %c0_6 = arith.constant 0 : index
    %c0_7 = arith.constant 0 : index
    %10 = vector.load %arg2[%c0_6, %c0_7] : memref<36x8xf32, #tpu.memory_space<vmem>>, vector<36x8xf32>
    %cst = arith.constant dense<0.000000e+00> : vector<432x8xf32>
    %11 = tpu.matmul %9, %10, %cst {dimension_numbers = #tpu.dot_dimension_numbers<[1], [0], [0], [1], [0, 0, 1, 1], [], []>} : vector<432x36xf32>, vector<36x8xf32>, vector<432x8xf32> -> vector<432x8xf32>
    %c0_8 = arith.constant 0 : index
    %c0_9 = arith.constant 0 : index
    %12 = vector.load %arg3[%c0_8, %c0_9] : memref<1x8xf32, #tpu.memory_space<vmem>>, vector<1x8xf32>
    %13 = vector.broadcast %12 : vector<1x8xf32> to vector<432x8xf32>
    %14 = arith.addf %11, %13 : vector<432x8xf32>
    %cst_10 = arith.constant 0.000000e+00 : f32
    %15 = vector.broadcast %cst_10 : f32 to vector<432x8xf32>
    %16 = arith.cmpf oge, %14, %15 : vector<432x8xf32>
    %cst_11 = arith.constant 2.000000e-01 : f32
    %17 = vector.broadcast %cst_11 : f32 to vector<432x8xf32>
    %18 = arith.mulf %17, %14 : vector<432x8xf32>
    %19 = arith.select %16, %14, %18 : vector<432x8xi1>, vector<432x8xf32>
    %c0_12 = arith.constant 0 : index
    %c0_13 = arith.constant 0 : index
    %20 = vector.load %arg6[%c0_12, %c0_13] : memref<432x1xf32, #tpu.memory_space<vmem>>, vector<432x1xf32>
    %21 = vector.broadcast %20 : vector<432x1xf32> to vector<432x8xf32>
    %22 = arith.mulf %19, %21 : vector<432x8xf32>
    %cst_14 = arith.constant 0.000000e+00 : f32
    %23 = vector.broadcast %cst_14 : f32 to vector<24x8xf32>
    %c0_15 = arith.constant 0 : index
    %c0_16 = arith.constant 0 : index
    %24 = vector.load %arg8[%c0_15, %c0_16] : memref<480x8xf32, #tpu.memory_space<vmem>>, vector<24x8xf32>
    tpu.vector_store %arg8[%c0_15, %c0_16], %23 {strides = array<i32>} : memref<480x8xf32, #tpu.memory_space<vmem>>, vector<24x8xf32>,
    %cst_17 = arith.constant 0.000000e+00 : f32
    %25 = vector.broadcast %cst_17 : f32 to vector<24x8xf32>
    %c456 = arith.constant 456 : index
    %c0_18 = arith.constant 0 : index
    %26 = vector.load %arg8[%c456, %c0_18] : memref<480x8xf32, #tpu.memory_space<vmem>>, vector<24x8xf32>
    tpu.vector_store %arg8[%c456, %c0_18], %25 {strides = array<i32>} : memref<480x8xf32, #tpu.memory_space<vmem>>, vector<24x8xf32>,
    %c24_19 = arith.constant 24 : index
    %c0_20 = arith.constant 0 : index
    %27 = vector.load %arg8[%c24_19, %c0_20] : memref<480x8xf32, #tpu.memory_space<vmem>>, vector<432x8xf32>
    tpu.vector_store %arg8[%c24_19, %c0_20], %22 {strides = array<i32>} : memref<480x8xf32, #tpu.memory_space<vmem>>, vector<432x8xf32>,
    %c0_21 = arith.constant 0 : index
    %c0_22 = arith.constant 0 : index
    %28 = vector.load %arg8[%c0_21, %c0_22] : memref<480x8xf32, #tpu.memory_space<vmem>>, vector<432x8xf32>
    %c24_23 = arith.constant 24 : index
    %c0_24 = arith.constant 0 : index
    %29 = vector.load %arg8[%c24_23, %c0_24] : memref<480x8xf32, #tpu.memory_space<vmem>>, vector<432x8xf32>
    %c48_25 = arith.constant 48 : index
    %c0_26 = arith.constant 0 : index
    %30 = vector.load %arg8[%c48_25, %c0_26] : memref<480x8xf32, #tpu.memory_space<vmem>>, vector<432x8xf32>
    %31 = tpu.concatenate %28, %29, %30 in 1 : vector<432x8xf32>, vector<432x8xf32>, vector<432x8xf32> -> vector<432x24xf32>
    %c1_i32_27 = arith.constant 1 : i32
    %32 = tpu.dynamic_rotate %31 by %c1_i32_27 dim 0 : vector<432x24xf32>, i32 -> vector<432x24xf32>
    %c431_i32_28 = arith.constant 431 : i32
    %33 = tpu.dynamic_rotate %31 by %c431_i32_28 dim 0 : vector<432x24xf32>, i32 -> vector<432x24xf32>
    %34 = tpu.concatenate %32, %31, %33 in 1 : vector<432x24xf32>, vector<432x24xf32>, vector<432x24xf32> -> vector<432x72xf32>
    %c0_29 = arith.constant 0 : index
    %c0_30 = arith.constant 0 : index
    %35 = vector.load %arg4[%c0_29, %c0_30] : memref<72x8xf32, #tpu.memory_space<vmem>>, vector<72x8xf32>
    %cst_31 = arith.constant dense<0.000000e+00> : vector<432x8xf32>
    %36 = tpu.matmul %34, %35, %cst_31 {dimension_numbers = #tpu.dot_dimension_numbers<[1], [0], [0], [1], [0, 0, 1, 1], [], []>} : vector<432x72xf32>, vector<72x8xf32>, vector<432x8xf32> -> vector<432x8xf32>
    %c0_32 = arith.constant 0 : index
    %c0_33 = arith.constant 0 : index
    %37 = vector.load %arg5[%c0_32, %c0_33] : memref<1x8xf32, #tpu.memory_space<vmem>>, vector<1x8xf32>
    %38 = vector.broadcast %37 : vector<1x8xf32> to vector<432x8xf32>
    %39 = arith.addf %36, %38 : vector<432x8xf32>
    %c0_34 = arith.constant 0 : index
    %c0_35 = arith.constant 0 : index
    %40 = vector.load %arg9[%c0_34, %c0_35] : memref<432x8xf32, #tpu.memory_space<vmem>>, vector<432x8xf32>
    tpu.vector_store %arg9[%c0_34, %c0_35], %39 {strides = array<i32>} : memref<432x8xf32, #tpu.memory_space<vmem>>, vector<432x8xf32>,
    %c25 = arith.constant 25 : index
    %c0_36 = arith.constant 0 : index
    %41 = tpu.strided_load %arg9[%c25, %c0_36] {strides = array<i32: 2, 1>} : memref<432x8xf32, #tpu.memory_space<vmem>>, vector<8x8xf32>
    %c26 = arith.constant 26 : index
    %c0_37 = arith.constant 0 : index
    %42 = tpu.strided_load %arg9[%c26, %c0_37] {strides = array<i32: 2, 1>} : memref<432x8xf32, #tpu.memory_space<vmem>>, vector<8x8xf32>
    %43 = arith.addf %41, %42 : vector<8x8xf32>
    %c49 = arith.constant 49 : index
    %c0_38 = arith.constant 0 : index
    %44 = tpu.strided_load %arg9[%c49, %c0_38] {strides = array<i32: 2, 1>} : memref<432x8xf32, #tpu.memory_space<vmem>>, vector<8x8xf32>
    %45 = arith.addf %43, %44 : vector<8x8xf32>
    %c50 = arith.constant 50 : index
    %c0_39 = arith.constant 0 : index
    %46 = tpu.strided_load %arg9[%c50, %c0_39] {strides = array<i32: 2, 1>} : memref<432x8xf32, #tpu.memory_space<vmem>>, vector<8x8xf32>
    %47 = arith.addf %45, %46 : vector<8x8xf32>
    %c73 = arith.constant 73 : index
    %c0_40 = arith.constant 0 : index
    %48 = tpu.strided_load %arg9[%c73, %c0_40] {strides = array<i32: 2, 1>} : memref<432x8xf32, #tpu.memory_space<vmem>>, vector<8x8xf32>
    %c74 = arith.constant 74 : index
    %c0_41 = arith.constant 0 : index
    %49 = tpu.strided_load %arg9[%c74, %c0_41] {strides = array<i32: 2, 1>} : memref<432x8xf32, #tpu.memory_space<vmem>>, vector<8x8xf32>
    %50 = arith.addf %48, %49 : vector<8x8xf32>
    %c97 = arith.constant 97 : index
    %c0_42 = arith.constant 0 : index
    %51 = tpu.strided_load %arg9[%c97, %c0_42] {strides = array<i32: 2, 1>} : memref<432x8xf32, #tpu.memory_space<vmem>>, vector<8x8xf32>
    %52 = arith.addf %50, %51 : vector<8x8xf32>
    %c98 = arith.constant 98 : index
    %c0_43 = arith.constant 0 : index
    %53 = tpu.strided_load %arg9[%c98, %c0_43] {strides = array<i32: 2, 1>} : memref<432x8xf32, #tpu.memory_space<vmem>>, vector<8x8xf32>
    %54 = arith.addf %52, %53 : vector<8x8xf32>
    %c121 = arith.constant 121 : index
    %c0_44 = arith.constant 0 : index
    %55 = tpu.strided_load %arg9[%c121, %c0_44] {strides = array<i32: 2, 1>} : memref<432x8xf32, #tpu.memory_space<vmem>>, vector<8x8xf32>
    %c122 = arith.constant 122 : index
    %c0_45 = arith.constant 0 : index
    %56 = tpu.strided_load %arg9[%c122, %c0_45] {strides = array<i32: 2, 1>} : memref<432x8xf32, #tpu.memory_space<vmem>>, vector<8x8xf32>
    %57 = arith.addf %55, %56 : vector<8x8xf32>
    %c145 = arith.constant 145 : index
    %c0_46 = arith.constant 0 : index
    %58 = tpu.strided_load %arg9[%c145, %c0_46] {strides = array<i32: 2, 1>} : memref<432x8xf32, #tpu.memory_space<vmem>>, vector<8x8xf32>
    %59 = arith.addf %57, %58 : vector<8x8xf32>
    %c146 = arith.constant 146 : index
    %c0_47 = arith.constant 0 : index
    %60 = tpu.strided_load %arg9[%c146, %c0_47] {strides = array<i32: 2, 1>} : memref<432x8xf32, #tpu.memory_space<vmem>>, vector<8x8xf32>
    %61 = arith.addf %59, %60 : vector<8x8xf32>
    %c169 = arith.constant 169 : index
    %c0_48 = arith.constant 0 : index
    %62 = tpu.strided_load %arg9[%c169, %c0_48] {strides = array<i32: 2, 1>} : memref<432x8xf32, #tpu.memory_space<vmem>>, vector<8x8xf32>
    %c170 = arith.constant 170 : index
    %c0_49 = arith.constant 0 : index
    %63 = tpu.strided_load %arg9[%c170, %c0_49] {strides = array<i32: 2, 1>} : memref<432x8xf32, #tpu.memory_space<vmem>>, vector<8x8xf32>
    %64 = arith.addf %62, %63 : vector<8x8xf32>
    %c193 = arith.constant 193 : index
    %c0_50 = arith.constant 0 : index
    %65 = tpu.strided_load %arg9[%c193, %c0_50] {strides = array<i32: 2, 1>} : memref<432x8xf32, #tpu.memory_space<vmem>>, vector<8x8xf32>
    %66 = arith.addf %64, %65 : vector<8x8xf32>
    %c194 = arith.constant 194 : index
    %c0_51 = arith.constant 0 : index
    %67 = tpu.strided_load %arg9[%c194, %c0_51] {strides = array<i32: 2, 1>} : memref<432x8xf32, #tpu.memory_space<vmem>>, vector<8x8xf32>
    %68 = arith.addf %66, %67 : vector<8x8xf32>
    %c217 = arith.constant 217 : index
    %c0_52 = arith.constant 0 : index
    %69 = tpu.strided_load %arg9[%c217, %c0_52] {strides = array<i32: 2, 1>} : memref<432x8xf32, #tpu.memory_space<vmem>>, vector<8x8xf32>
    %c218 = arith.constant 218 : index
    %c0_53 = arith.constant 0 : index
    %70 = tpu.strided_load %arg9[%c218, %c0_53] {strides = array<i32: 2, 1>} : memref<432x8xf32, #tpu.memory_space<vmem>>, vector<8x8xf32>
    %71 = arith.addf %69, %70 : vector<8x8xf32>
    %c241 = arith.constant 241 : index
    %c0_54 = arith.constant 0 : index
    %72 = tpu.strided_load %arg9[%c241, %c0_54] {strides = array<i32: 2, 1>} : memref<432x8xf32, #tpu.memory_space<vmem>>, vector<8x8xf32>
    %73 = arith.addf %71, %72 : vector<8x8xf32>
    %c242 = arith.constant 242 : index
    %c0_55 = arith.constant 0 : index
    %74 = tpu.strided_load %arg9[%c242, %c0_55] {strides = array<i32: 2, 1>} : memref<432x8xf32, #tpu.memory_space<vmem>>, vector<8x8xf32>
    %75 = arith.addf %73, %74 : vector<8x8xf32>
    %c265 = arith.constant 265 : index
    %c0_56 = arith.constant 0 : index
    %76 = tpu.strided_load %arg9[%c265, %c0_56] {strides = array<i32: 2, 1>} : memref<432x8xf32, #tpu.memory_space<vmem>>, vector<8x8xf32>
    %c266 = arith.constant 266 : index
    %c0_57 = arith.constant 0 : index
    %77 = tpu.strided_load %arg9[%c266, %c0_57] {strides = array<i32: 2, 1>} : memref<432x8xf32, #tpu.memory_space<vmem>>, vector<8x8xf32>
    %78 = arith.addf %76, %77 : vector<8x8xf32>
    %c289 = arith.constant 289 : index
    %c0_58 = arith.constant 0 : index
    %79 = tpu.strided_load %arg9[%c289, %c0_58] {strides = array<i32: 2, 1>} : memref<432x8xf32, #tpu.memory_space<vmem>>, vector<8x8xf32>
    %80 = arith.addf %78, %79 : vector<8x8xf32>
    %c290 = arith.constant 290 : index
    %c0_59 = arith.constant 0 : index
    %81 = tpu.strided_load %arg9[%c290, %c0_59] {strides = array<i32: 2, 1>} : memref<432x8xf32, #tpu.memory_space<vmem>>, vector<8x8xf32>
    %82 = arith.addf %80, %81 : vector<8x8xf32>
    %c313 = arith.constant 313 : index
    %c0_60 = arith.constant 0 : index
    %83 = tpu.strided_load %arg9[%c313, %c0_60] {strides = array<i32: 2, 1>} : memref<432x8xf32, #tpu.memory_space<vmem>>, vector<8x8xf32>
    %c314 = arith.constant 314 : index
    %c0_61 = arith.constant 0 : index
    %84 = tpu.strided_load %arg9[%c314, %c0_61] {strides = array<i32: 2, 1>} : memref<432x8xf32, #tpu.memory_space<vmem>>, vector<8x8xf32>
    %85 = arith.addf %83, %84 : vector<8x8xf32>
    %c337 = arith.constant 337 : index
    %c0_62 = arith.constant 0 : index
    %86 = tpu.strided_load %arg9[%c337, %c0_62] {strides = array<i32: 2, 1>} : memref<432x8xf32, #tpu.memory_space<vmem>>, vector<8x8xf32>
    %87 = arith.addf %85, %86 : vector<8x8xf32>
    %c338 = arith.constant 338 : index
    %c0_63 = arith.constant 0 : index
    %88 = tpu.strided_load %arg9[%c338, %c0_63] {strides = array<i32: 2, 1>} : memref<432x8xf32, #tpu.memory_space<vmem>>, vector<8x8xf32>
    %89 = arith.addf %87, %88 : vector<8x8xf32>
    %c361 = arith.constant 361 : index
    %c0_64 = arith.constant 0 : index
    %90 = tpu.strided_load %arg9[%c361, %c0_64] {strides = array<i32: 2, 1>} : memref<432x8xf32, #tpu.memory_space<vmem>>, vector<8x8xf32>
    %c362 = arith.constant 362 : index
    %c0_65 = arith.constant 0 : index
    %91 = tpu.strided_load %arg9[%c362, %c0_65] {strides = array<i32: 2, 1>} : memref<432x8xf32, #tpu.memory_space<vmem>>, vector<8x8xf32>
    %92 = arith.addf %90, %91 : vector<8x8xf32>
    %c385 = arith.constant 385 : index
    %c0_66 = arith.constant 0 : index
    %93 = tpu.strided_load %arg9[%c385, %c0_66] {strides = array<i32: 2, 1>} : memref<432x8xf32, #tpu.memory_space<vmem>>, vector<8x8xf32>
    %94 = arith.addf %92, %93 : vector<8x8xf32>
    %c386 = arith.constant 386 : index
    %c0_67 = arith.constant 0 : index
    %95 = tpu.strided_load %arg9[%c386, %c0_67] {strides = array<i32: 2, 1>} : memref<432x8xf32, #tpu.memory_space<vmem>>, vector<8x8xf32>
    %96 = arith.addf %94, %95 : vector<8x8xf32>
    %97 = tpu.concatenate %47, %54, %61, %68, %75, %82, %89, %96 in 0 : vector<8x8xf32>, vector<8x8xf32>, vector<8x8xf32>, vector<8x8xf32>, vector<8x8xf32>, vector<8x8xf32>, vector<8x8xf32>, vector<8x8xf32> -> vector<64x8xf32>
    %cst_68 = arith.constant 2.500000e-01 : f32
    %98 = vector.broadcast %cst_68 : f32 to vector<64x8xf32>
    %99 = arith.mulf %98, %97 : vector<64x8xf32>
    %cst_69 = arith.constant 0.000000e+00 : f32
    %100 = vector.broadcast %cst_69 : f32 to vector<64x8xf32>
    %101 = arith.cmpf oge, %99, %100 : vector<64x8xf32>
    %cst_70 = arith.constant 2.000000e-01 : f32
    %102 = vector.broadcast %cst_70 : f32 to vector<64x8xf32>
    %103 = arith.mulf %102, %99 : vector<64x8xf32>
    %104 = arith.select %101, %99, %103 : vector<64x8xi1>, vector<64x8xf32>
    %c0_71 = arith.constant 0 : index
    %c0_72 = arith.constant 0 : index
    %c0_73 = arith.constant 0 : index
    %105 = vector.load %arg7[%c0_71, %c0_72, %c0_73] : memref<1x64x8xf32, #tpu.memory_space<vmem>>, vector<1x64x8xf32>
    %106 = vector.shape_cast %105 : vector<1x64x8xf32> to vector<64x8xf32>
    %107 = vector.shape_cast %104 : vector<64x8xf32> to vector<1x64x8xf32>
    tpu.vector_store %arg7[%c0_71, %c0_72, %c0_73], %107 {strides = array<i32>} : memref<1x64x8xf32, #tpu.memory_space<vmem>>, vector<1x64x8xf32>,
    return
  }
  func.func @transform_0(%arg0: i32) -> (i32, i32, i32) {
    %c0_i32 = arith.constant 0 : i32
    %c0_i32_0 = arith.constant 0 : i32
    %c0_i32_1 = arith.constant 0 : i32
    return %arg0, %c0_i32, %c0_i32_0 : i32, i32, i32
  }
  func.func @transform_1(%arg0: i32) -> (i32, i32) {
    %c0_i32 = arith.constant 0 : i32
    %c0_i32_0 = arith.constant 0 : i32
    %c0_i32_1 = arith.constant 0 : i32
    return %c0_i32, %c0_i32_0 : i32, i32
  }
  func.func @transform_2(%arg0: i32) -> (i32, i32) {
    %c0_i32 = arith.constant 0 : i32
    %c0_i32_0 = arith.constant 0 : i32
    %c0_i32_1 = arith.constant 0 : i32
    return %c0_i32, %c0_i32_0 : i32, i32
  }
  func.func @transform_3(%arg0: i32) -> (i32, i32) {
    %c0_i32 = arith.constant 0 : i32
    %c0_i32_0 = arith.constant 0 : i32
    %c0_i32_1 = arith.constant 0 : i32
    return %c0_i32, %c0_i32_0 : i32, i32
  }
  func.func @transform_4(%arg0: i32) -> (i32, i32) {
    %c0_i32 = arith.constant 0 : i32
    %c0_i32_0 = arith.constant 0 : i32
    %c0_i32_1 = arith.constant 0 : i32
    return %c0_i32, %c0_i32_0 : i32, i32
  }
  func.func @transform_5(%arg0: i32) -> (i32, i32) {
    %c0_i32 = arith.constant 0 : i32
    %c0_i32_0 = arith.constant 0 : i32
    %c0_i32_1 = arith.constant 0 : i32
    return %c0_i32, %c0_i32_0 : i32, i32
  }
  func.func @transform_6(%arg0: i32) -> (i32, i32, i32) {
    %c0_i32 = arith.constant 0 : i32
    %c0_i32_0 = arith.constant 0 : i32
    %c0_i32_1 = arith.constant 0 : i32
    return %arg0, %c0_i32, %c0_i32_0 : i32, i32, i32
  }
}

</mosaic_0001>

<bundles_post_ra>
// kernel: forward.1
= control target key start
LH: loop header
LB: loop body
LE: loop exit
PB: predicated region body
PF: predicated region fallthrough
CT: control target
= control target key end

     0   :  { %s5277_s21 = smov 0   ;;  %s8978_s0 = inlined_call_operand.vmem [shape: f32[2,480,4], index: 0, kind: input, shape index: {}]   ;;  %s8979_s1 = inlined_call_operand.vmem [shape: f32[36,8], index: 1, kind: input, shape index: {}]   ;;  %s8980_s2 = inlined_call_operand.vmem [shape: f32[1,8], index: 2, kind: input, shape index: {}]   ;;  %s8981_s3 = inlined_call_operand.vmem [shape: f32[72,8], index: 3, kind: input, shape index: {}]   ;;  %s8982_s4 = inlined_call_operand.vmem [shape: f32[1,8], index: 4, kind: input, shape index: {}]   ;;  %s8983_s5 = inlined_call_operand.vmem [shape: f32[432,1], index: 5, kind: input, shape index: {}]   ;;  %s8984_s6 = inlined_call_operand.vmem [shape: f32[2,64,8], index: 6, kind: output, shape index: {}]  }
   0x1 LB: > { %s4737_s22 = sadd.s32 4294967295, %s5232_s21   ;;  %p4741_p0 = scmp.ge.s32.totalorder %s5232_s21, 1  ;;  %s5232_s21 = sphi %s5277_s21, %s16_s21  }
   0x2   : > { %p212_p1 = scmp.lt.s32.totalorder %s5232_s21, 3 }
   0x4   : > { %p213_p2 = pnand %p4741_p0, %p212_p1 }
   0x6   : > { %216 = sbr.rel (%p213_p2) target bundleno = 1434 (0x59a), region = 44 }
   0xb   : > { %p242_p3 = scmp.lt.s32.totalorder %s4737_s22, 1  ;;  %s5234_s27 = smov 4   ;;  %vm693_vm0 = vcmask 31744   ;;  %vm748_vm1 = vcmask 64512   ;;  %vm1740_vm4 = vcmask 1043456   ;;  %vm1455_vm5 = vcmask 97280  }
   0xc   : > { %s5235_s28 = smov 8   ;;  %s5236_s29 = smov 12   ;;  %vm1510_vm6 = vcmask 195584   ;;  %vm1577_vm7 = vcmask 293888  }
   0xd   : > { %s9358_s22 = smov (!%p242_p3, %s4737_s22), 1  ;;  %s5238_s16 = smov 24  }
   0xe   : > { %s5189_s23 = smul.u32 480, %s9358_s22  ;;  %s5240_s30 = smov 16  }
  0x10   : > { %s5291_s26 = scalar_lea.vmem %s8978_s0, %s5189_s23 }
  0x11   : > { %v5294_v0 = vld [vmem:[%s5291_s26 + $0x28] sm:$0xff]  ;;  %v5297_v1 = vld [vmem:[%s5291_s26 + $0x18] sm:$0xff]  ;;  %v5304_v2 = vld [vmem:[%s5291_s26 + $0x30] sm:$0xff] }
  0x12   : > { %370 = vrot.lane.b32.xlu1 %v5294_v0, %s5234_s27  ;;  %366 = vrot.lane.b32.xlu0 %v5297_v1, %s5234_s27  ;;  %v5307_v3 = vld [vmem:[%s5291_s26 + $0x20] sm:$0xff]  ;;  %v5317_v5 = vld [vmem:[%s5291_s26 + $0x38] sm:$0xff] }
  0x13   : > { %v5314_v4 = vld [vmem:[%s5291_s26 + $0x40] sm:$0xff]  ;;  %v5324_v6 = vld [vmem:[%s5291_s26 + $0x50] sm:$0xff]  ;;  %v5327_v7 = vld [vmem:[%s5291_s26 + $0x48] sm:$0xff] }
  0x14   : > { %v5334_v8 = vld [vmem:[%s5291_s26 + $0x60] sm:$0xff]  ;;  %v5337_v9 = vld [vmem:[%s5291_s26 + $0x58] sm:$0xff]  ;;  %v5344_v10 = vld [vmem:[%s5291_s26 + $0x70] sm:$0xff] }
  0x15   : > { %9056 = vst [vmem:[#allocation4_spill] sm:$0xff] %v5344_v10  ;;  %v5347_v11 = vld [vmem:[%s5291_s26 + $0x68] sm:$0xff]  ;;  %v5354_v12 = vld [vmem:[%s5291_s26 + $0x80] sm:$0xff]  ;;  %v5357_v13 = vld [vmem:[%s5291_s26 + $0x78] sm:$0xff] }
  0x16   : > { %372 = vrot.lane.b32.xlu1 %v5304_v2, %s5234_s27  ;;  %368 = vrot.lane.b32.xlu0 %v5307_v3, %s5234_s27  ;;  %9057 = vst [vmem:[#allocation5_spill] sm:$0xff] %v5354_v12  ;;  %9058 = vst [vmem:[#allocation6_spill] sm:$0xff] %v5357_v13  ;;  %v5364_v14 = vld [vmem:[%s5291_s26 + $0x90] sm:$0xff]  ;;  %v5367_v15 = vld [vmem:[%s5291_s26 + $0x88] sm:$0xff] }
  0x17   : > { %9059 = vst [vmem:[#allocation7_spill] sm:$0xff] %v5364_v14  ;;  %9060 = vst [vmem:[#allocation8_spill] sm:$0xff] %v5367_v15  ;;  %v5374_v16 = vld [vmem:[%s5291_s26 + $0xa0] sm:$0xff]  ;;  %v5377_v17 = vld [vmem:[%s5291_s26 + $0x98] sm:$0xff] }
  0x18   : > { %9061 = vst [vmem:[#allocation9_spill] sm:$0xff] %v5374_v16  ;;  %9062 = vst [vmem:[#allocation10_spill] sm:$0xff] %v5377_v17  ;;  %v5384_v18 = vld [vmem:[%s5291_s26 + $0xb0] sm:$0xff]  ;;  %v5387_v19 = vld [vmem:[%s5291_s26 + $0xa8] sm:$0xff] }
  0x19   : > { %9063 = vst [vmem:[#allocation11_spill] sm:$0xff] %v5384_v18  ;;  %9064 = vst [vmem:[#allocation12_spill] sm:$0xff] %v5387_v19  ;;  %v5394_v20 = vld [vmem:[%s5291_s26 + $0xc0] sm:$0xff]  ;;  %v5397_v21 = vld [vmem:[%s5291_s26 + $0xb8] sm:$0xff] }
  0x1a   : > { %376 = vrot.lane.b32.xlu1 %v5314_v4, %s5234_s27  ;;  %374 = vrot.lane.b32.xlu0 %v5317_v5, %s5234_s27  ;;  %9065 = vst [vmem:[#allocation13_spill] sm:$0xff] %v5394_v20  ;;  %9066 = vst [vmem:[#allocation14_spill] sm:$0xff] %v5397_v21  ;;  %v5404_v22 = vld [vmem:[%s5291_s26 + $0xd0] sm:$0xff]  ;;  %v5407_v23 = vld [vmem:[%s5291_s26 + $0xc8] sm:$0xff] }
  0x1b   : > { %9067 = vst [vmem:[#allocation15_spill] sm:$0xff] %v5404_v22  ;;  %9068 = vst [vmem:[#allocation16_spill] sm:$0xff] %v5407_v23  ;;  %v5414_v24 = vld [vmem:[%s5291_s26 + $0xe0] sm:$0xff]  ;;  %v5417_v25 = vld [vmem:[%s5291_s26 + $0xd8] sm:$0xff] }
  0x1c   : > { %9069 = vst [vmem:[#allocation17_spill] sm:$0xff] %v5414_v24  ;;  %9070 = vst [vmem:[#allocation18_spill] sm:$0xff] %v5417_v25  ;;  %v5424_v26 = vld [vmem:[%s5291_s26 + $0xf0] sm:$0xff]  ;;  %v5427_v27 = vld [vmem:[%s5291_s26 + $0xe8] sm:$0xff] }
  0x1d   : > { %9071 = vst [vmem:[#allocation19_spill] sm:$0xff] %v5424_v26  ;;  %9072 = vst [vmem:[#allocation20_spill] sm:$0xff] %v5427_v27  ;;  %v5434_v28 = vld [vmem:[%s5291_s26 + $0x100] sm:$0xff]  ;;  %v5437_v29 = vld [vmem:[%s5291_s26 + $0xf8] sm:$0xff] }
  0x1e   : > { %380 = vrot.lane.b32.xlu1 %v5324_v6, %s5234_s27  ;;  %378 = vrot.lane.b32.xlu0 %v5327_v7, %s5234_s27  ;;  %9073 = vst [vmem:[#allocation21_spill] sm:$0xff] %v5434_v28  ;;  %9074 = vst [vmem:[#allocation22_spill] sm:$0xff] %v5437_v29  ;;  %v5444_v30 = vld [vmem:[%s5291_s26 + $0x110] sm:$0xff]  ;;  %v5447_v31 = vld [vmem:[%s5291_s26 + $0x108] sm:$0xff] }
  0x1f   : > { %9075 = vst [vmem:[#allocation23_spill] sm:$0xff] %v5444_v30  ;;  %9076 = vst [vmem:[#allocation24_spill] sm:$0xff] %v5447_v31  ;;  %v5454_v32 = vld [vmem:[%s5291_s26 + $0x120] sm:$0xff]  ;;  %v5457_v33 = vld [vmem:[%s5291_s26 + $0x118] sm:$0xff] }
  0x20   : > { %9077 = vst [vmem:[#allocation25_spill] sm:$0xff] %v5454_v32  ;;  %9078 = vst [vmem:[#allocation26_spill] sm:$0xff] %v5457_v33  ;;  %v5464_v34 = vld [vmem:[%s5291_s26 + $0x130] sm:$0xff]  ;;  %v5467_v35 = vld [vmem:[%s5291_s26 + $0x128] sm:$0xff] }
  0x21   : > { %9079 = vst [vmem:[#allocation27_spill] sm:$0xff] %v5464_v34  ;;  %9080 = vst [vmem:[#allocation28_spill] sm:$0xff] %v5467_v35  ;;  %v5474_v36 = vld [vmem:[%s5291_s26 + $0x140] sm:$0xff]  ;;  %v5477_v37 = vld [vmem:[%s5291_s26 + $0x138] sm:$0xff] }
  0x22   : > { %384 = vrot.lane.b32.xlu1 %v5334_v8, %s5234_s27  ;;  %382 = vrot.lane.b32.xlu0 %v5337_v9, %s5234_s27  ;;  %9081 = vst [vmem:[#allocation29_spill] sm:$0xff] %v5474_v36  ;;  %9082 = vst [vmem:[#allocation30_spill] sm:$0xff] %v5477_v37  ;;  %v5484_v38 = vld [vmem:[%s5291_s26 + $0x150] sm:$0xff]  ;;  %v5487_v39 = vld [vmem:[%s5291_s26 + $0x148] sm:$0xff] }
  0x23   : > { %9083 = vst [vmem:[#allocation31_spill] sm:$0xff] %v5484_v38  ;;  %9084 = vst [vmem:[#allocation32_spill] sm:$0xff] %v5487_v39  ;;  %v5494_v40 = vld [vmem:[%s5291_s26 + $0x160] sm:$0xff]  ;;  %v5497_v41 = vld [vmem:[%s5291_s26 + $0x158] sm:$0xff] }
  0x24   : > { %9085 = vst [vmem:[#allocation33_spill] sm:$0xff] %v5494_v40  ;;  %9086 = vst [vmem:[#allocation34_spill] sm:$0xff] %v5497_v41  ;;  %v5504_v42 = vld [vmem:[%s5291_s26 + $0x170] sm:$0xff]  ;;  %v5507_v43 = vld [vmem:[%s5291_s26 + $0x168] sm:$0xff] }
  0x25   : > { %9087 = vst [vmem:[#allocation35_spill] sm:$0xff] %v5504_v42  ;;  %9088 = vst [vmem:[#allocation36_spill] sm:$0xff] %v5507_v43  ;;  %v5514_v44 = vld [vmem:[%s5291_s26 + $0x180] sm:$0xff]  ;;  %v5517_v45 = vld [vmem:[%s5291_s26 + $0x178] sm:$0xff] }
  0x26   : > { %388 = vrot.lane.b32.xlu1 %v5344_v10, %s5234_s27  ;;  %386 = vrot.lane.b32.xlu0 %v5347_v11, %s5234_s27  ;;  %9089 = vst [vmem:[#allocation37_spill] sm:$0xff] %v5517_v45  ;;  %v5524_v46 = vld [vmem:[%s5291_s26 + $0x190] sm:$0xff]  ;;  %v5527_v47 = vld [vmem:[%s5291_s26 + $0x188] sm:$0xff] }
  0x27   : > { %v5534_v48 = vld [vmem:[%s5291_s26 + $0x1a0] sm:$0xff]  ;;  %v5537_v49 = vld [vmem:[%s5291_s26 + $0x198] sm:$0xff]  ;;  %v5544_v50 = vld [vmem:[%s5291_s26 + $0x1b0] sm:$0xff] }
  0x28   : > { %v5547_v51 = vld [vmem:[%s5291_s26 + $0x1a8] sm:$0xff]  ;;  %v5554_v52 = vld [vmem:[%s5291_s26 + $0x1c0] sm:$0xff]  ;;  %v5557_v53 = vld [vmem:[%s5291_s26 + $0x1b8] sm:$0xff] }
  0x2a   : > { %392 = vrot.lane.b32.xlu1 %v5354_v12, %s5234_s27  ;;  %390 = vrot.lane.b32.xlu0 %v5357_v13, %s5234_s27 }
  0x2e   : > { %396 = vrot.lane.b32.xlu1 %v5364_v14, %s5234_s27  ;;  %394 = vrot.lane.b32.xlu0 %v5367_v15, %s5234_s27 }
  0x32   : > { %400 = vrot.lane.b32.xlu1 %v5374_v16, %s5234_s27  ;;  %398 = vrot.lane.b32.xlu0 %v5377_v17, %s5234_s27 }
  0x36   : > { %404 = vrot.lane.b32.xlu1 %v5384_v18, %s5234_s27  ;;  %402 = vrot.lane.b32.xlu0 %v5387_v19, %s5234_s27 }
  0x3a   : > { %408 = vrot.lane.b32.xlu1 %v5394_v20, %s5234_s27  ;;  %406 = vrot.lane.b32.xlu0 %v5397_v21, %s5234_s27 }
  0x3e   : > { %412 = vrot.lane.b32.xlu1 %v5404_v22, %s5234_s27  ;;  %410 = vrot.lane.b32.xlu0 %v5407_v23, %s5234_s27 }
  0x42   : > { %416 = vrot.lane.b32.xlu1 %v5414_v24, %s5234_s27  ;;  %414 = vrot.lane.b32.xlu0 %v5417_v25, %s5234_s27 }
  0x46   : > { %420 = vrot.lane.b32.xlu1 %v5424_v26, %s5234_s27  ;;  %418 = vrot.lane.b32.xlu0 %v5427_v27, %s5234_s27 }
  0x4a   : > { %424 = vrot.lane.b32.xlu1 %v5434_v28, %s5234_s27  ;;  %422 = vrot.lane.b32.xlu0 %v5437_v29, %s5234_s27 }
  0x4e   : > { %428 = vrot.lane.b32.xlu1 %v5444_v30, %s5234_s27  ;;  %426 = vrot.lane.b32.xlu0 %v5447_v31, %s5234_s27 }
  0x52   : > { %432 = vrot.lane.b32.xlu1 %v5454_v32, %s5234_s27  ;;  %430 = vrot.lane.b32.xlu0 %v5457_v33, %s5234_s27 }
  0x56   : > { %436 = vrot.lane.b32.xlu1 %v5464_v34, %s5234_s27  ;;  %434 = vrot.lane.b32.xlu0 %v5467_v35, %s5234_s27 }
  0x5a   : > { %440 = vrot.lane.b32.xlu1 %v5474_v36, %s5234_s27  ;;  %438 = vrot.lane.b32.xlu0 %v5477_v37, %s5234_s27 }
  0x5e   : > { %444 = vrot.lane.b32.xlu1 %v5484_v38, %s5234_s27  ;;  %442 = vrot.lane.b32.xlu0 %v5487_v39, %s5234_s27 }
  0x62   : > { %448 = vrot.lane.b32.xlu1 %v5494_v40, %s5234_s27  ;;  %446 = vrot.lane.b32.xlu0 %v5497_v41, %s5234_s27 }
  0x66   : > { %452 = vrot.lane.b32.xlu1 %v5504_v42, %s5234_s27  ;;  %450 = vrot.lane.b32.xlu0 %v5507_v43, %s5234_s27 }
  0x6a   : > { %456 = vrot.lane.b32.xlu1 %v5514_v44, %s5234_s27  ;;  %454 = vrot.lane.b32.xlu0 %v5517_v45, %s5234_s27 }
  0x6e   : > { %460 = vrot.lane.b32.xlu1 %v5524_v46, %s5234_s27  ;;  %458 = vrot.lane.b32.xlu0 %v5527_v47, %s5234_s27 }
  0x72   : > { %464 = vrot.lane.b32.xlu1 %v5534_v48, %s5234_s27  ;;  %462 = vrot.lane.b32.xlu0 %v5537_v49, %s5234_s27 }
  0x76   : > { %468 = vrot.lane.b32.xlu1 %v5544_v50, %s5234_s27  ;;  %466 = vrot.lane.b32.xlu0 %v5547_v51, %s5234_s27 }
  0x7a   : > { %472 = vrot.lane.b32.xlu1 %v5554_v52, %s5234_s27  ;;  %470 = vrot.lane.b32.xlu0 %v5557_v53, %s5234_s27 }
  0x7e   : > { %533 = vrot.lane.b32.xlu1 %v5317_v5, %s5235_s28  ;;  %531 = vrot.lane.b32.xlu0 %v5304_v2, %s5235_s28 }
  0x82   : > { %537 = vrot.lane.b32.xlu1 %v5327_v7, %s5235_s28  ;;  %535 = vrot.lane.b32.xlu0 %v5314_v4, %s5235_s28 }
  0x84   : > { %v5571_v54 = vpop.permute.xlu1 %370  ;;  %v5573_v55 = vpop.permute.xlu0 %366 }
  0x86   : > { %541 = vrot.lane.b32.xlu1 %v5337_v9, %s5235_s28  ;;  %539 = vrot.lane.b32.xlu0 %v5324_v6, %s5235_s28 }
  0x88   : > { %v5579_v56 = vpop.permute.xlu1 %372  ;;  %v5581_v57 = vpop.permute.xlu0 %368 }
  0x8a   : > { %545 = vrot.lane.b32.xlu1 %v5347_v11, %s5235_s28  ;;  %543 = vrot.lane.b32.xlu0 %v5334_v8, %s5235_s28 }
  0x8c   : > { %v5587_v58 = vpop.permute.xlu1 %376  ;;  %v5589_v59 = vpop.permute.xlu0 %374 }
  0x8e   : > { %549 = vrot.lane.b32.xlu1 %v5357_v13, %s5235_s28  ;;  %547 = vrot.lane.b32.xlu0 %v5344_v10, %s5235_s28 }
  0x90   : > { %v5595_v60 = vpop.permute.xlu1 %380  ;;  %v5597_v61 = vpop.permute.xlu0 %378 }
  0x92   : > { %553 = vrot.lane.b32.xlu1 %v5367_v15, %s5235_s28  ;;  %551 = vrot.lane.b32.xlu0 %v5354_v12, %s5235_s28 }
  0x94   : > { %v5603_v62 = vpop.permute.xlu1 %384  ;;  %v5605_v63 = vpop.permute.xlu0 %382 }
  0x96   : > { %557 = vrot.lane.b32.xlu1 %v5377_v17, %s5235_s28  ;;  %555 = vrot.lane.b32.xlu0 %v5364_v14, %s5235_s28 }
  0x98   : > { %v5611_v10 = vpop.permute.xlu1 %388  ;;  %v5613_v13 = vpop.permute.xlu0 %386 }
  0x9a   : > { %561 = vrot.lane.b32.xlu1 %v5387_v19, %s5235_s28  ;;  %559 = vrot.lane.b32.xlu0 %v5374_v16, %s5235_s28 }
  0x9c   : > { %v5619_v12 = vpop.permute.xlu1 %392  ;;  %v5621_v15 = vpop.permute.xlu0 %390 }
  0x9e   : > { %565 = vrot.lane.b32.xlu1 %v5397_v21, %s5235_s28  ;;  %563 = vrot.lane.b32.xlu0 %v5384_v18, %s5235_s28 }
  0xa0   : > { %v5627_v14 = vpop.permute.xlu1 %396  ;;  %v5629_v17 = vpop.permute.xlu0 %394 }
  0xa2   : > { %569 = vrot.lane.b32.xlu1 %v5407_v23, %s5235_s28  ;;  %567 = vrot.lane.b32.xlu0 %v5394_v20, %s5235_s28 }
  0xa4   : > { %v5635_v16 = vpop.permute.xlu1 %400  ;;  %v5637_v19 = vpop.permute.xlu0 %398 }
  0xa6   : > { %573 = vrot.lane.b32.xlu1 %v5417_v25, %s5235_s28  ;;  %571 = vrot.lane.b32.xlu0 %v5404_v22, %s5235_s28 }
  0xa8   : > { %v5643_v18 = vpop.permute.xlu1 %404  ;;  %v5645_v21 = vpop.permute.xlu0 %402 }
  0xaa   : > { %577 = vrot.lane.b32.xlu1 %v5427_v27, %s5235_s28  ;;  %575 = vrot.lane.b32.xlu0 %v5414_v24, %s5235_s28 }
  0xac   : > { %v5651_v20 = vpop.permute.xlu1 %408  ;;  %v5653_v23 = vpop.permute.xlu0 %406 }
  0xae   : > { %581 = vrot.lane.b32.xlu1 %v5437_v29, %s5235_s28  ;;  %579 = vrot.lane.b32.xlu0 %v5424_v26, %s5235_s28 }
  0xb0   : > { %v5659_v22 = vpop.permute.xlu1 %412  ;;  %v5661_v25 = vpop.permute.xlu0 %410 }
  0xb2   : > { %585 = vrot.lane.b32.xlu1 %v5447_v31, %s5235_s28  ;;  %583 = vrot.lane.b32.xlu0 %v5434_v28, %s5235_s28 }
  0xb4   : > { %v5667_v24 = vpop.permute.xlu1 %416  ;;  %v5669_v27 = vpop.permute.xlu0 %414 }
  0xb6   : > { %589 = vrot.lane.b32.xlu1 %v5457_v33, %s5235_s28  ;;  %587 = vrot.lane.b32.xlu0 %v5444_v30, %s5235_s28 }
  0xb8   : > { %v5675_v26 = vpop.permute.xlu1 %420  ;;  %v5677_v29 = vpop.permute.xlu0 %418 }
  0xba   : > { %593 = vrot.lane.b32.xlu1 %v5467_v35, %s5235_s28  ;;  %591 = vrot.lane.b32.xlu0 %v5454_v32, %s5235_s28 }
  0xbc   : > { %v5683_v28 = vpop.permute.xlu1 %424  ;;  %v5685_v31 = vpop.permute.xlu0 %422 }
  0xbe   : > { %597 = vrot.lane.b32.xlu1 %v5477_v37, %s5235_s28  ;;  %595 = vrot.lane.b32.xlu0 %v5464_v34, %s5235_s28 }
  0xc0   : > { %v5691_v30 = vpop.permute.xlu1 %428  ;;  %v5693_v33 = vpop.permute.xlu0 %426 }
  0xc2   : > { %601 = vrot.lane.b32.xlu1 %v5487_v39, %s5235_s28  ;;  %599 = vrot.lane.b32.xlu0 %v5474_v36, %s5235_s28 }
  0xc4   : > { %v5699_v32 = vpop.permute.xlu1 %432  ;;  %v5701_v35 = vpop.permute.xlu0 %430 }
  0xc6   : > { %605 = vrot.lane.b32.xlu1 %v5497_v41, %s5235_s28  ;;  %603 = vrot.lane.b32.xlu0 %v5484_v38, %s5235_s28 }
  0xc8   : > { %v5707_v34 = vpop.permute.xlu1 %436  ;;  %v5709_v37 = vpop.permute.xlu0 %434 }
  0xca   : > { %609 = vrot.lane.b32.xlu1 %v5507_v43, %s5235_s28  ;;  %607 = vrot.lane.b32.xlu0 %v5494_v40, %s5235_s28 }
  0xcc   : > { %v5715_v36 = vpop.permute.xlu1 %440  ;;  %v5717_v39 = vpop.permute.xlu0 %438 }
  0xce   : > { %613 = vrot.lane.b32.xlu1 %v5517_v45, %s5235_s28  ;;  %611 = vrot.lane.b32.xlu0 %v5504_v42, %s5235_s28 }
  0xd0   : > { %v5723_v38 = vpop.permute.xlu1 %444  ;;  %v5725_v41 = vpop.permute.xlu0 %442 }
  0xd1   : > { %9090 = vst [vmem:[#allocation38_spill] sm:$0xff] %v5725_v41 }
  0xd2   : > { %617 = vrot.lane.b32.xlu1 %v5527_v47, %s5235_s28  ;;  %615 = vrot.lane.b32.xlu0 %v5514_v44, %s5235_s28 }
  0xd4   : > { %v5731_v40 = vpop.permute.xlu1 %448  ;;  %v5733_v43 = vpop.permute.xlu0 %446 }
  0xd5   : > { %9091 = vst [vmem:[#allocation39_spill] sm:$0xff] %v5731_v40  ;;  %9092 = vst [vmem:[#allocation40_spill] sm:$0xff] %v5733_v43 }
  0xd6   : > { %621 = vrot.lane.b32.xlu1 %v5537_v49, %s5235_s28  ;;  %619 = vrot.lane.b32.xlu0 %v5524_v46, %s5235_s28  ;;  %v309_v46 = vld [vmem:[%s5291_s26 + $0x1c8] sm:$0xff] }
  0xd8   : > { %v5739_v42 = vpop.permute.xlu1 %452  ;;  %v5741_v45 = vpop.permute.xlu0 %450 }
  0xd9   : > { %9093 = vst [vmem:[#allocation41_spill] sm:$0xff] %v5739_v42  ;;  %9094 = vst [vmem:[#allocation42_spill] sm:$0xff] %v5741_v45  ;;  %v253_v42 = vld [vmem:[%s5291_s26 + $0x8] sm:$0xff] }
  0xda   : > { %625 = vrot.lane.b32.xlu1 %v5547_v51, %s5235_s28  ;;  %623 = vrot.lane.b32.xlu0 %v5534_v48, %s5235_s28  ;;  %v311_v48 = vld [vmem:[%s5291_s26 + $0x1d8] sm:$0xff]  ;;  %v310_v51 = vld [vmem:[%s5291_s26 + $0x1d0] sm:$0xff] }
  0xdc   : > { %v5747_v44 = vpop.permute.xlu1 %456  ;;  %v5749_v47 = vpop.permute.xlu0 %454 }
  0xdd   : > { %9095 = vst [vmem:[#allocation43_spill] sm:$0xff] %v5747_v44  ;;  %9096 = vst [vmem:[#allocation44_spill] sm:$0xff] %v5749_v47 }
  0xde   : > { %629 = vrot.lane.b32.xlu1 %v5557_v53, %s5235_s28  ;;  %627 = vrot.lane.b32.xlu0 %v5544_v50, %s5235_s28 }
  0xe0   : > { %v5756_v49 = vpop.permute.xlu1 %460  ;;  %v5758_v45 = vpop.permute.xlu0 %458 }
  0xe1   : > { %9097 = vst [vmem:[#allocation45_spill] sm:$0xff] %v5756_v49  ;;  %9098 = vst [vmem:[#allocation46_spill] sm:$0xff] %v5758_v45  ;;  %v857_v49 = vlaneseq }
  0xe2   : > { %633 = vrot.lane.b32.xlu1 %v309_v46, %s5235_s28  ;;  %631 = vrot.lane.b32.xlu0 %v5554_v52, %s5235_s28  ;;  %v252_v52 = vld [vmem:[%s5291_s26] sm:$0xff] }
  0xe4   : > { %v5765_v47 = vpop.permute.xlu1 %464  ;;  %v5767_v53 = vpop.permute.xlu0 %462 }
  0xe5   : > { %9099 = vst [vmem:[#allocation47_spill] sm:$0xff] %v5765_v47  ;;  %9100 = vst [vmem:[#allocation48_spill] sm:$0xff] %v5767_v53  ;;  %v5781_v47 = vshrl.u32 %v857_v49, 7 }
  0xe6   : > { %637 = vrot.lane.b32.xlu1 %v311_v48, %s5235_s28  ;;  %635 = vrot.lane.b32.xlu0 %v310_v51, %s5235_s28  ;;  %v694_v48 = vsel %vm693_vm0, %v252_v52, %v5573_v55  ;;  %v695_v51 = vsel %vm693_vm0, %v253_v42, %v5581_v57  ;;  %v697_v55 = vsel %vm693_vm0, %v5297_v1, %v5579_v56 }
  0xe7   : > { %9105 = vst [vmem:[#allocation53_spill] sm:$0xff] %v5781_v47  ;;  %vm859_vm2 = vcmp.lt.s32.totalorder %v5781_v47, 1  ;;  %v699_v1 = vsel %vm693_vm0, %v5294_v0, %v5587_v58  ;;  %v698_v56 = vsel %vm693_vm0, %v5307_v3, %v5589_v59  ;;  %vm968_vm3 = vcmp.lt.s32.totalorder %v5781_v47, 7 }
  0xe8   : > { %v5771_v50 = vpop.permute.xlu1 %468  ;;  %v5773_v45 = vpop.permute.xlu0 %466 }
  0xe9   : > { %9101 = vst [vmem:[#allocation49_spill] sm:$0xff] %v5771_v50  ;;  %9102 = vst [vmem:[#allocation50_spill] sm:$0xff] %v5773_v45  ;;  %v254_v45 = vld [vmem:[%s5291_s26 + $0x10] sm:$0xff] }
  0xea   : > { %v696_v42 = vsel %vm693_vm0, %v254_v45, %v5571_v54 }
  0xec   : > { %v5775_v46 = vpop.permute.xlu1 %472  ;;  %v5777_v44 = vpop.permute.xlu0 %470 }
  0xed   : > { %9103 = vst [vmem:[#allocation51_spill] sm:$0xff] %v5775_v46  ;;  %9104 = vst [vmem:[#allocation52_spill] sm:$0xff] %v5777_v44 }
  0xf0   : > { %v534_v50 = vpop.permute.xlu1 %533  ;;  %v532_v53 = vpop.permute.xlu0 %531 }
  0xf1   : > { %v5789_v43 = vsel %vm748_vm1, %v695_v51, %v534_v50  ;;  %v5792_v44 = vsel %vm748_vm1, %v694_v48, %v532_v53 }
  0xf2   : > { %v804_v49 = vrot.slane %v5789_v43, 7  ;;  %v9020_v46 = vrot.slane %v5792_v44, 7  ;;  %1079 = vrot.lane.b32.xlu1 %v5789_v43, %s5236_s29  ;;  %1077 = vrot.lane.b32.xlu0 %v5792_v44, %s5236_s29  ;;  %v9019_v52 = vrot.slane %v5789_v43, 1 }
  0xf4   : > { %v538_v57 = vpop.permute.xlu1 %537  ;;  %v536_v53 = vpop.permute.xlu0 %535  ;;  %v5810_v50 = vsel %vm859_vm2, %v9020_v46, %v804_v49 }
  0xf5   : > { %9106 = vst [vmem:[#allocation54_spill] sm:$0xff] %v5810_v50  ;;  %v752_v48 = vsel %vm748_vm1, %v697_v55, %v538_v57  ;;  %v751_v51 = vsel %vm748_vm1, %v696_v42, %v536_v53 }
  0xf6   : > { %v806_v40 = vrot.slane %v752_v48, 7  ;;  %v917_v45 = vrot.slane %v752_v48, 1  ;;  %v805_v54 = vrot.slane %v751_v51, 7  ;;  %v916_v41 = vrot.slane %v751_v51, 1  ;;  %1083 = vrot.lane.b32.xlu1 %v752_v48, %s5236_s29  ;;  %1081 = vrot.lane.b32.xlu0 %v751_v51, %s5236_s29 }
  0xf8   : > { %v542_v55 = vpop.permute.xlu1 %541  ;;  %v540_v42 = vpop.permute.xlu0 %539  ;;  %v5828_v57 = vsel %vm968_vm3, %v9019_v52, %v916_v41  ;;  %v5832_v53 = vsel %vm968_vm3, %v916_v41, %v917_v45  ;;  %v5836_v0 = vsel %vm859_vm2, %v805_v54, %v806_v40  ;;  %v5840_v3 = vsel %vm859_vm2, %v804_v49, %v805_v54 }
  0xf9   : > { %9107 = vst [vmem:[#allocation55_spill] sm:$0xff] %v5836_v0  ;;  %9108 = vst [vmem:[#allocation56_spill] sm:$0xff] %v5840_v3  ;;  %v754_v58 = vsel %vm748_vm1, %v699_v1, %v542_v55  ;;  %v753_v59 = vsel %vm748_vm1, %v698_v56, %v540_v42  ;;  %v701_v41 = vsel %vm693_vm0, %v5317_v5, %v5595_v60  ;;  %v9184_v3 = vld [vmem:[#allocation44_spill] sm:$0xff]  ;;  %v9185_v0 = vld [vmem:[#allocation33_spill] sm:$0xff] }
  0xfa   : > { %v808_v48 = vrot.slane %v754_v58, 7  ;;  %v919_v51 = vrot.slane %v754_v58, 1  ;;  %v807_v52 = vrot.slane %v753_v59, 7  ;;  %v918_v46 = vrot.slane %v753_v59, 1  ;;  %1087 = vrot.lane.b32.xlu1 %v754_v58, %s5236_s29  ;;  %1085 = vrot.lane.b32.xlu0 %v753_v59, %s5236_s29 }
  0xfb   : > { %v700_v49 = vsel %vm693_vm0, %v5304_v2, %v5597_v61 }
  0xfc   : > { %v546_v54 = vpop.permute.xlu1 %545  ;;  %v544_v1 = vpop.permute.xlu0 %543  ;;  %v5854_v56 = vsel %vm968_vm3, %v917_v45, %v918_v46  ;;  %v5858_v55 = vsel %vm968_vm3, %v918_v46, %v919_v51  ;;  %v5862_v42 = vsel %vm859_vm2, %v807_v52, %v808_v48  ;;  %v5866_v5 = vsel %vm859_vm2, %v806_v40, %v807_v52 }
  0xfd   : > { %9109 = vst [vmem:[#allocation57_spill] sm:$0xff] %v5862_v42  ;;  %9110 = vst [vmem:[#allocation58_spill] sm:$0xff] %v5866_v5  ;;  %v756_v2 = vsel %vm748_vm1, %v701_v41, %v546_v54  ;;  %v755_v60 = vsel %vm748_vm1, %v700_v49, %v544_v1  ;;  %v703_v46 = vsel %vm693_vm0, %v5327_v7, %v5603_v62  ;;  %v9178_v5 = vld [vmem:[#allocation42_spill] sm:$0xff]  ;;  %v9179_v42 = vld [vmem:[#allocation31_spill] sm:$0xff] }
  0xfe   : > { %v810_v61 = vrot.slane %v756_v2, 7  ;;  %v921_v58 = vrot.slane %v756_v2, 1  ;;  %v809_v45 = vrot.slane %v755_v60, 7  ;;  %v920_v59 = vrot.slane %v755_v60, 1  ;;  %1091 = vrot.lane.b32.xlu1 %v756_v2, %s5236_s29  ;;  %1089 = vrot.lane.b32.xlu0 %v755_v60, %s5236_s29 }
  0xff   : > { %v702_v40 = vsel %vm693_vm0, %v5314_v4, %v5605_v63 }
 0x100   : > { %v550_v52 = vpop.permute.xlu1 %549  ;;  %v548_v41 = vpop.permute.xlu0 %547  ;;  %v5880_v49 = vsel %vm968_vm3, %v919_v51, %v920_v59  ;;  %v5884_v54 = vsel %vm968_vm3, %v920_v59, %v921_v58  ;;  %v5888_v1 = vsel %vm859_vm2, %v809_v45, %v810_v61  ;;  %v5892_v7 = vsel %vm859_vm2, %v808_v48, %v809_v45 }
 0x101   : > { %9111 = vst [vmem:[#allocation59_spill] sm:$0xff] %v5888_v1  ;;  %9112 = vst [vmem:[#allocation60_spill] sm:$0xff] %v5892_v7  ;;  %v758_v4 = vsel %vm748_vm1, %v703_v46, %v550_v52  ;;  %v757_v62 = vsel %vm748_vm1, %v702_v40, %v548_v41  ;;  %v705_v59 = vsel %vm693_vm0, %v5337_v9, %v5611_v10  ;;  %v9172_v7 = vld [vmem:[#allocation40_spill] sm:$0xff]  ;;  %v9173_v1 = vld [vmem:[#allocation29_spill] sm:$0xff] }
 0x102   : > { %v812_v63 = vrot.slane %v758_v4, 7  ;;  %v923_v2 = vrot.slane %v758_v4, 1  ;;  %v811_v51 = vrot.slane %v757_v62, 7  ;;  %v922_v60 = vrot.slane %v757_v62, 1  ;;  %1095 = vrot.lane.b32.xlu1 %v758_v4, %s5236_s29  ;;  %1093 = vrot.lane.b32.xlu0 %v757_v62, %s5236_s29 }
 0x103   : > { %v704_v48 = vsel %vm693_vm0, %v5324_v6, %v5613_v13 }
 0x104   : > { %v554_v45 = vpop.permute.xlu1 %553  ;;  %v552_v46 = vpop.permute.xlu0 %551  ;;  %v5906_v40 = vsel %vm968_vm3, %v921_v58, %v922_v60  ;;  %v5910_v52 = vsel %vm968_vm3, %v922_v60, %v923_v2  ;;  %v5914_v41 = vsel %vm859_vm2, %v811_v51, %v812_v63  ;;  %v5918_v9 = vsel %vm859_vm2, %v810_v61, %v811_v51 }
 0x105   : > { %9113 = vst [vmem:[#allocation61_spill] sm:$0xff] %v5914_v41  ;;  %9114 = vst [vmem:[#allocation62_spill] sm:$0xff] %v5918_v9  ;;  %v760_v6 = vsel %vm748_vm1, %v705_v59, %v554_v45  ;;  %v759_v10 = vsel %vm748_vm1, %v704_v48, %v552_v46  ;;  %v707_v60 = vsel %vm693_vm0, %v5347_v11, %v5619_v12  ;;  %v9118_v9 = vld [vmem:[#allocation4_spill] sm:$0xff]  ;;  %v9167_v41 = vld [vmem:[#allocation27_spill] sm:$0xff] }
 0x106   : > { %v814_v13 = vrot.slane %v760_v6, 7  ;;  %v925_v4 = vrot.slane %v760_v6, 1  ;;  %v813_v58 = vrot.slane %v759_v10, 7  ;;  %v924_v62 = vrot.slane %v759_v10, 1  ;;  %1099 = vrot.lane.b32.xlu1 %v760_v6, %s5236_s29  ;;  %1097 = vrot.lane.b32.xlu0 %v759_v10, %s5236_s29 }
 0x107   : > { %v706_v61 = vsel %vm693_vm0, %v5334_v8, %v5621_v15 }
 0x108   : > { %v558_v51 = vpop.permute.xlu1 %557  ;;  %v556_v59 = vpop.permute.xlu0 %555  ;;  %v5932_v48 = vsel %vm968_vm3, %v923_v2, %v924_v62  ;;  %v5936_v45 = vsel %vm968_vm3, %v924_v62, %v925_v4  ;;  %v5940_v46 = vsel %vm859_vm2, %v813_v58, %v814_v13  ;;  %v5944_v11 = vsel %vm859_vm2, %v812_v63, %v813_v58  ;;  %v9117_v62 = vld [vmem:[#allocation6_spill] sm:$0xff] }
 0x109   : > { %9115 = vst [vmem:[#allocation63_spill] sm:$0xff] %v5940_v46  ;;  %9116 = vst [vmem:[#allocation64_spill] sm:$0xff] %v5944_v11  ;;  %v762_v8 = vsel %vm748_vm1, %v707_v60, %v558_v51  ;;  %v761_v12 = vsel %vm748_vm1, %v706_v61, %v556_v59  ;;  %v709_v46 = vsel %vm693_vm0, %v9117_v62, %v5627_v14  ;;  %v9122_v11 = vld [vmem:[#allocation5_spill] sm:$0xff] }
 0x10a   : > { %v816_v15 = vrot.slane %v762_v8, 7  ;;  %v927_v6 = vrot.slane %v762_v8, 1  ;;  %v815_v2 = vrot.slane %v761_v12, 7  ;;  %v926_v10 = vrot.slane %v761_v12, 1  ;;  %1103 = vrot.lane.b32.xlu1 %v762_v8, %s5236_s29  ;;  %1101 = vrot.lane.b32.xlu0 %v761_v12, %s5236_s29 }
 0x10b   : > { %v708_v63 = vsel %vm693_vm0, %v9118_v9, %v5629_v17 }
 0x10c   : > { %v562_v58 = vpop.permute.xlu1 %561  ;;  %v560_v60 = vpop.permute.xlu0 %559  ;;  %v5958_v61 = vsel %vm968_vm3, %v925_v4, %v926_v10  ;;  %v5962_v51 = vsel %vm968_vm3, %v926_v10, %v927_v6  ;;  %v5966_v59 = vsel %vm859_vm2, %v815_v2, %v816_v15  ;;  %v5970_v14 = vsel %vm859_vm2, %v814_v13, %v815_v2  ;;  %v9121_v10 = vld [vmem:[#allocation8_spill] sm:$0xff] }
 0x10d   : > { %9119 = vst [vmem:[#allocation6_spill] sm:$0xff] %v5966_v59  ;;  %9120 = vst [vmem:[#allocation4_spill] sm:$0xff] %v5970_v14  ;;  %v764_v17 = vsel %vm748_vm1, %v709_v46, %v562_v58  ;;  %v763_v9 = vsel %vm748_vm1, %v708_v63, %v560_v60  ;;  %v711_v59 = vsel %vm693_vm0, %v9121_v10, %v5635_v16  ;;  %v9126_v14 = vld [vmem:[#allocation7_spill] sm:$0xff] }
 0x10e   : > { %v818_v8 = vrot.slane %v764_v17, 7  ;;  %v929_v12 = vrot.slane %v764_v17, 1  ;;  %v817_v4 = vrot.slane %v763_v9, 7  ;;  %v928_v62 = vrot.slane %v763_v9, 1  ;;  %1107 = vrot.lane.b32.xlu1 %v764_v17, %s5236_s29  ;;  %1105 = vrot.lane.b32.xlu0 %v763_v9, %s5236_s29 }
 0x10f   : > { %v710_v13 = vsel %vm693_vm0, %v9122_v11, %v5637_v19 }
 0x110   : > { %v566_v2 = vpop.permute.xlu1 %565  ;;  %v564_v46 = vpop.permute.xlu0 %563  ;;  %v5984_v63 = vsel %vm968_vm3, %v927_v6, %v928_v62  ;;  %v5988_v58 = vsel %vm968_vm3, %v928_v62, %v929_v12  ;;  %v5992_v60 = vsel %vm859_vm2, %v817_v4, %v818_v8  ;;  %v5996_v16 = vsel %vm859_vm2, %v816_v15, %v817_v4  ;;  %v9125_v62 = vld [vmem:[#allocation10_spill] sm:$0xff] }
 0x111   : > { %9123 = vst [vmem:[#allocation8_spill] sm:$0xff] %v5992_v60  ;;  %9124 = vst [vmem:[#allocation5_spill] sm:$0xff] %v5996_v16  ;;  %v766_v19 = vsel %vm748_vm1, %v711_v59, %v566_v2  ;;  %v765_v11 = vsel %vm748_vm1, %v710_v13, %v564_v46  ;;  %v713_v60 = vsel %vm693_vm0, %v9125_v62, %v5643_v18  ;;  %v9130_v16 = vld [vmem:[#allocation9_spill] sm:$0xff] }
 0x112   : > { %v820_v17 = vrot.slane %v766_v19, 7  ;;  %v931_v9 = vrot.slane %v766_v19, 1  ;;  %v819_v6 = vrot.slane %v765_v11, 7  ;;  %v930_v10 = vrot.slane %v765_v11, 1  ;;  %1111 = vrot.lane.b32.xlu1 %v766_v19, %s5236_s29  ;;  %1109 = vrot.lane.b32.xlu0 %v765_v11, %s5236_s29 }
 0x113   : > { %v712_v15 = vsel %vm693_vm0, %v9126_v14, %v5645_v21 }
 0x114   : > { %v570_v4 = vpop.permute.xlu1 %569  ;;  %v568_v59 = vpop.permute.xlu0 %567  ;;  %v6010_v13 = vsel %vm968_vm3, %v929_v12, %v930_v10  ;;  %v6014_v2 = vsel %vm968_vm3, %v930_v10, %v931_v9  ;;  %v6018_v46 = vsel %vm859_vm2, %v819_v6, %v820_v17  ;;  %v6022_v18 = vsel %vm859_vm2, %v818_v8, %v819_v6  ;;  %v9129_v10 = vld [vmem:[#allocation12_spill] sm:$0xff] }
 0x115   : > { %9127 = vst [vmem:[#allocation10_spill] sm:$0xff] %v6018_v46  ;;  %9128 = vst [vmem:[#allocation7_spill] sm:$0xff] %v6022_v18  ;;  %v768_v21 = vsel %vm748_vm1, %v713_v60, %v570_v4  ;;  %v767_v14 = vsel %vm748_vm1, %v712_v15, %v568_v59  ;;  %v715_v46 = vsel %vm693_vm0, %v9129_v10, %v5651_v20  ;;  %v9134_v18 = vld [vmem:[#allocation11_spill] sm:$0xff] }
 0x116   : > { %v822_v19 = vrot.slane %v768_v21, 7  ;;  %v933_v11 = vrot.slane %v768_v21, 1  ;;  %v821_v12 = vrot.slane %v767_v14, 7  ;;  %v932_v62 = vrot.slane %v767_v14, 1  ;;  %1115 = vrot.lane.b32.xlu1 %v768_v21, %s5236_s29  ;;  %1113 = vrot.lane.b32.xlu0 %v767_v14, %s5236_s29 }
 0x117   : > { %v714_v8 = vsel %vm693_vm0, %v9130_v16, %v5653_v23 }
 0x118   : > { %v574_v6 = vpop.permute.xlu1 %573  ;;  %v572_v60 = vpop.permute.xlu0 %571  ;;  %v6036_v15 = vsel %vm968_vm3, %v931_v9, %v932_v62  ;;  %v6040_v4 = vsel %vm968_vm3, %v932_v62, %v933_v11  ;;  %v6044_v59 = vsel %vm859_vm2, %v821_v12, %v822_v19  ;;  %v6048_v20 = vsel %vm859_vm2, %v820_v17, %v821_v12  ;;  %v9133_v62 = vld [vmem:[#allocation14_spill] sm:$0xff] }
 0x119   : > { %9131 = vst [vmem:[#allocation12_spill] sm:$0xff] %v6044_v59  ;;  %9132 = vst [vmem:[#allocation9_spill] sm:$0xff] %v6048_v20  ;;  %v770_v23 = vsel %vm748_vm1, %v715_v46, %v574_v6  ;;  %v769_v16 = vsel %vm748_vm1, %v714_v8, %v572_v60  ;;  %v717_v59 = vsel %vm693_vm0, %v9133_v62, %v5659_v22  ;;  %v9138_v20 = vld [vmem:[#allocation13_spill] sm:$0xff] }
 0x11a   : > { %v824_v21 = vrot.slane %v770_v23, 7  ;;  %v935_v14 = vrot.slane %v770_v23, 1  ;;  %v823_v9 = vrot.slane %v769_v16, 7  ;;  %v934_v10 = vrot.slane %v769_v16, 1  ;;  %1119 = vrot.lane.b32.xlu1 %v770_v23, %s5236_s29  ;;  %1117 = vrot.lane.b32.xlu0 %v769_v16, %s5236_s29 }
 0x11b   : > { %v716_v17 = vsel %vm693_vm0, %v9134_v18, %v5661_v25 }
 0x11c   : > { %v578_v12 = vpop.permute.xlu1 %577  ;;  %v576_v46 = vpop.permute.xlu0 %575  ;;  %v6062_v8 = vsel %vm968_vm3, %v933_v11, %v934_v10  ;;  %v6066_v6 = vsel %vm968_vm3, %v934_v10, %v935_v14  ;;  %v6070_v60 = vsel %vm859_vm2, %v823_v9, %v824_v21  ;;  %v6074_v22 = vsel %vm859_vm2, %v822_v19, %v823_v9  ;;  %v9137_v10 = vld [vmem:[#allocation16_spill] sm:$0xff] }
 0x11d   : > { %9135 = vst [vmem:[#allocation14_spill] sm:$0xff] %v6070_v60  ;;  %9136 = vst [vmem:[#allocation11_spill] sm:$0xff] %v6074_v22  ;;  %v772_v25 = vsel %vm748_vm1, %v717_v59, %v578_v12  ;;  %v771_v18 = vsel %vm748_vm1, %v716_v17, %v576_v46  ;;  %v719_v60 = vsel %vm693_vm0, %v9137_v10, %v5667_v24  ;;  %v9142_v22 = vld [vmem:[#allocation15_spill] sm:$0xff] }
 0x11e   : > { %v826_v23 = vrot.slane %v772_v25, 7  ;;  %v937_v16 = vrot.slane %v772_v25, 1  ;;  %v825_v11 = vrot.slane %v771_v18, 7  ;;  %v936_v62 = vrot.slane %v771_v18, 1  ;;  %1123 = vrot.lane.b32.xlu1 %v772_v25, %s5236_s29  ;;  %1121 = vrot.lane.b32.xlu0 %v771_v18, %s5236_s29 }
 0x11f   : > { %v718_v19 = vsel %vm693_vm0, %v9138_v20, %v5669_v27 }
 0x120   : > { %v582_v9 = vpop.permute.xlu1 %581  ;;  %v580_v59 = vpop.permute.xlu0 %579  ;;  %v6088_v17 = vsel %vm968_vm3, %v935_v14, %v936_v62  ;;  %v6092_v12 = vsel %vm968_vm3, %v936_v62, %v937_v16  ;;  %v6096_v46 = vsel %vm859_vm2, %v825_v11, %v826_v23  ;;  %v6100_v24 = vsel %vm859_vm2, %v824_v21, %v825_v11  ;;  %v9141_v62 = vld [vmem:[#allocation18_spill] sm:$0xff] }
 0x121   : > { %9139 = vst [vmem:[#allocation16_spill] sm:$0xff] %v6096_v46  ;;  %9140 = vst [vmem:[#allocation13_spill] sm:$0xff] %v6100_v24  ;;  %v774_v27 = vsel %vm748_vm1, %v719_v60, %v582_v9  ;;  %v773_v20 = vsel %vm748_vm1, %v718_v19, %v580_v59  ;;  %v721_v46 = vsel %vm693_vm0, %v9141_v62, %v5675_v26  ;;  %v9146_v24 = vld [vmem:[#allocation17_spill] sm:$0xff] }
 0x122   : > { %v828_v25 = vrot.slane %v774_v27, 7  ;;  %v939_v18 = vrot.slane %v774_v27, 1  ;;  %v827_v14 = vrot.slane %v773_v20, 7  ;;  %v938_v10 = vrot.slane %v773_v20, 1  ;;  %1127 = vrot.lane.b32.xlu1 %v774_v27, %s5236_s29  ;;  %1125 = vrot.lane.b32.xlu0 %v773_v20, %s5236_s29 }
 0x123   : > { %v720_v21 = vsel %vm693_vm0, %v9142_v22, %v5677_v29 }
 0x124   : > { %v586_v11 = vpop.permute.xlu1 %585  ;;  %v584_v60 = vpop.permute.xlu0 %583  ;;  %v6114_v19 = vsel %vm968_vm3, %v937_v16, %v938_v10  ;;  %v6118_v9 = vsel %vm968_vm3, %v938_v10, %v939_v18  ;;  %v6122_v59 = vsel %vm859_vm2, %v827_v14, %v828_v25  ;;  %v6126_v26 = vsel %vm859_vm2, %v826_v23, %v827_v14  ;;  %v9145_v10 = vld [vmem:[#allocation20_spill] sm:$0xff] }
 0x125   : > { %9143 = vst [vmem:[#allocation18_spill] sm:$0xff] %v6122_v59  ;;  %9144 = vst [vmem:[#allocation15_spill] sm:$0xff] %v6126_v26  ;;  %v776_v29 = vsel %vm748_vm1, %v721_v46, %v586_v11  ;;  %v775_v22 = vsel %vm748_vm1, %v720_v21, %v584_v60  ;;  %v723_v59 = vsel %vm693_vm0, %v9145_v10, %v5683_v28  ;;  %v9150_v26 = vld [vmem:[#allocation19_spill] sm:$0xff] }
 0x126   : > { %v830_v27 = vrot.slane %v776_v29, 7  ;;  %v941_v20 = vrot.slane %v776_v29, 1  ;;  %v829_v16 = vrot.slane %v775_v22, 7  ;;  %v940_v62 = vrot.slane %v775_v22, 1  ;;  %1131 = vrot.lane.b32.xlu1 %v776_v29, %s5236_s29  ;;  %1129 = vrot.lane.b32.xlu0 %v775_v22, %s5236_s29 }
 0x127   : > { %v722_v23 = vsel %vm693_vm0, %v9146_v24, %v5685_v31 }
 0x128   : > { %v590_v14 = vpop.permute.xlu1 %589  ;;  %v588_v46 = vpop.permute.xlu0 %587  ;;  %v6140_v21 = vsel %vm968_vm3, %v939_v18, %v940_v62  ;;  %v6144_v11 = vsel %vm968_vm3, %v940_v62, %v941_v20  ;;  %v6148_v60 = vsel %vm859_vm2, %v829_v16, %v830_v27  ;;  %v6152_v28 = vsel %vm859_vm2, %v828_v25, %v829_v16  ;;  %v9149_v62 = vld [vmem:[#allocation22_spill] sm:$0xff] }
 0x129   : > { %9147 = vst [vmem:[#allocation20_spill] sm:$0xff] %v6148_v60  ;;  %9148 = vst [vmem:[#allocation17_spill] sm:$0xff] %v6152_v28  ;;  %v778_v31 = vsel %vm748_vm1, %v723_v59, %v590_v14  ;;  %v777_v24 = vsel %vm748_vm1, %v722_v23, %v588_v46  ;;  %v725_v60 = vsel %vm693_vm0, %v9149_v62, %v5691_v30  ;;  %v9154_v28 = vld [vmem:[#allocation21_spill] sm:$0xff] }
 0x12a   : > { %v832_v29 = vrot.slane %v778_v31, 7  ;;  %v943_v22 = vrot.slane %v778_v31, 1  ;;  %v831_v18 = vrot.slane %v777_v24, 7  ;;  %v942_v10 = vrot.slane %v777_v24, 1  ;;  %1135 = vrot.lane.b32.xlu1 %v778_v31, %s5236_s29  ;;  %1133 = vrot.lane.b32.xlu0 %v777_v24, %s5236_s29 }
 0x12b   : > { %v724_v25 = vsel %vm693_vm0, %v9150_v26, %v5693_v33 }
 0x12c   : > { %v594_v16 = vpop.permute.xlu1 %593  ;;  %v592_v59 = vpop.permute.xlu0 %591  ;;  %v6166_v23 = vsel %vm968_vm3, %v941_v20, %v942_v10  ;;  %v6170_v14 = vsel %vm968_vm3, %v942_v10, %v943_v22  ;;  %v6174_v46 = vsel %vm859_vm2, %v831_v18, %v832_v29  ;;  %v6178_v30 = vsel %vm859_vm2, %v830_v27, %v831_v18  ;;  %v9153_v10 = vld [vmem:[#allocation24_spill] sm:$0xff] }
 0x12d   : > { %9151 = vst [vmem:[#allocation22_spill] sm:$0xff] %v6174_v46  ;;  %9152 = vst [vmem:[#allocation19_spill] sm:$0xff] %v6178_v30  ;;  %v780_v33 = vsel %vm748_vm1, %v725_v60, %v594_v16  ;;  %v779_v26 = vsel %vm748_vm1, %v724_v25, %v592_v59  ;;  %v727_v46 = vsel %vm693_vm0, %v9153_v10, %v5699_v32  ;;  %v9158_v30 = vld [vmem:[#allocation23_spill] sm:$0xff] }
 0x12e   : > { %v834_v31 = vrot.slane %v780_v33, 7  ;;  %v945_v24 = vrot.slane %v780_v33, 1  ;;  %v833_v20 = vrot.slane %v779_v26, 7  ;;  %v944_v62 = vrot.slane %v779_v26, 1  ;;  %1139 = vrot.lane.b32.xlu1 %v780_v33, %s5236_s29  ;;  %1137 = vrot.lane.b32.xlu0 %v779_v26, %s5236_s29 }
 0x12f   : > { %v726_v27 = vsel %vm693_vm0, %v9154_v28, %v5701_v35 }
 0x130   : > { %v598_v18 = vpop.permute.xlu1 %597  ;;  %v596_v60 = vpop.permute.xlu0 %595  ;;  %v6192_v25 = vsel %vm968_vm3, %v943_v22, %v944_v62  ;;  %v6196_v16 = vsel %vm968_vm3, %v944_v62, %v945_v24  ;;  %v6200_v59 = vsel %vm859_vm2, %v833_v20, %v834_v31  ;;  %v6204_v32 = vsel %vm859_vm2, %v832_v29, %v833_v20  ;;  %v9157_v62 = vld [vmem:[#allocation26_spill] sm:$0xff] }
 0x131   : > { %9155 = vst [vmem:[#allocation24_spill] sm:$0xff] %v6200_v59  ;;  %9156 = vst [vmem:[#allocation21_spill] sm:$0xff] %v6204_v32  ;;  %v782_v35 = vsel %vm748_vm1, %v727_v46, %v598_v18  ;;  %v781_v28 = vsel %vm748_vm1, %v726_v27, %v596_v60  ;;  %v729_v59 = vsel %vm693_vm0, %v9157_v62, %v5707_v34  ;;  %v9162_v32 = vld [vmem:[#allocation25_spill] sm:$0xff] }
 0x132   : > { %v836_v33 = vrot.slane %v782_v35, 7  ;;  %v947_v26 = vrot.slane %v782_v35, 1  ;;  %v835_v22 = vrot.slane %v781_v28, 7  ;;  %v946_v10 = vrot.slane %v781_v28, 1  ;;  %1143 = vrot.lane.b32.xlu1 %v782_v35, %s5236_s29  ;;  %1141 = vrot.lane.b32.xlu0 %v781_v28, %s5236_s29 }
 0x133   : > { %v728_v29 = vsel %vm693_vm0, %v9158_v30, %v5709_v37 }
 0x134   : > { %v602_v20 = vpop.permute.xlu1 %601  ;;  %v600_v46 = vpop.permute.xlu0 %599  ;;  %v6218_v27 = vsel %vm968_vm3, %v945_v24, %v946_v10  ;;  %v6222_v18 = vsel %vm968_vm3, %v946_v10, %v947_v26  ;;  %v6226_v60 = vsel %vm859_vm2, %v835_v22, %v836_v33  ;;  %v6230_v34 = vsel %vm859_vm2, %v834_v31, %v835_v22  ;;  %v9161_v10 = vld [vmem:[#allocation28_spill] sm:$0xff] }
 0x135   : > { %9159 = vst [vmem:[#allocation26_spill] sm:$0xff] %v6226_v60  ;;  %9160 = vst [vmem:[#allocation23_spill] sm:$0xff] %v6230_v34  ;;  %v784_v37 = vsel %vm748_vm1, %v729_v59, %v602_v20  ;;  %v783_v30 = vsel %vm748_vm1, %v728_v29, %v600_v46  ;;  %v731_v60 = vsel %vm693_vm0, %v9161_v10, %v5715_v36  ;;  %v9166_v34 = vld [vmem:[#allocation38_spill] sm:$0xff] }
 0x136   : > { %v838_v35 = vrot.slane %v784_v37, 7  ;;  %v949_v28 = vrot.slane %v784_v37, 1  ;;  %v837_v24 = vrot.slane %v783_v30, 7  ;;  %v948_v62 = vrot.slane %v783_v30, 1  ;;  %1147 = vrot.lane.b32.xlu1 %v784_v37, %s5236_s29  ;;  %1145 = vrot.lane.b32.xlu0 %v783_v30, %s5236_s29 }
 0x137   : > { %v730_v31 = vsel %vm693_vm0, %v9162_v32, %v5717_v39 }
 0x138   : > { %v606_v22 = vpop.permute.xlu1 %605  ;;  %v604_v59 = vpop.permute.xlu0 %603  ;;  %v6244_v29 = vsel %vm968_vm3, %v947_v26, %v948_v62  ;;  %v6248_v20 = vsel %vm968_vm3, %v948_v62, %v949_v28  ;;  %v6252_v46 = vsel %vm859_vm2, %v837_v24, %v838_v35  ;;  %v6256_v36 = vsel %vm859_vm2, %v836_v33, %v837_v24  ;;  %v9165_v62 = vld [vmem:[#allocation30_spill] sm:$0xff] }
 0x139   : > { %9163 = vst [vmem:[#allocation28_spill] sm:$0xff] %v6252_v46  ;;  %9164 = vst [vmem:[#allocation25_spill] sm:$0xff] %v6256_v36  ;;  %v786_v39 = vsel %vm748_vm1, %v731_v60, %v606_v22  ;;  %v785_v32 = vsel %vm748_vm1, %v730_v31, %v604_v59  ;;  %v733_v46 = vsel %vm693_vm0, %v9165_v62, %v5723_v38  ;;  %v9171_v36 = vld [vmem:[#allocation32_spill] sm:$0xff] }
 0x13a   : > { %v840_v37 = vrot.slane %v786_v39, 7  ;;  %v951_v30 = vrot.slane %v786_v39, 1  ;;  %v839_v26 = vrot.slane %v785_v32, 7  ;;  %v950_v10 = vrot.slane %v785_v32, 1  ;;  %1151 = vrot.lane.b32.xlu1 %v786_v39, %s5236_s29  ;;  %1149 = vrot.lane.b32.xlu0 %v785_v32, %s5236_s29 }
 0x13b   : > { %v732_v33 = vsel %vm693_vm0, %v9167_v41, %v9166_v34 }
 0x13c   : > { %v610_v24 = vpop.permute.xlu1 %609  ;;  %v608_v60 = vpop.permute.xlu0 %607  ;;  %v6270_v31 = vsel %vm968_vm3, %v949_v28, %v950_v10  ;;  %v6274_v22 = vsel %vm968_vm3, %v950_v10, %v951_v30  ;;  %v6278_v59 = vsel %vm859_vm2, %v839_v26, %v840_v37  ;;  %v6282_v38 = vsel %vm859_vm2, %v838_v35, %v839_v26  ;;  %v9170_v10 = vld [vmem:[#allocation39_spill] sm:$0xff] }
 0x13d   : > { %9168 = vst [vmem:[#allocation30_spill] sm:$0xff] %v6278_v59  ;;  %9169 = vst [vmem:[#allocation38_spill] sm:$0xff] %v6282_v38  ;;  %v788_v41 = vsel %vm748_vm1, %v733_v46, %v610_v24  ;;  %v787_v34 = vsel %vm748_vm1, %v732_v33, %v608_v60  ;;  %v735_v59 = vsel %vm693_vm0, %v9171_v36, %v9170_v10  ;;  %v9177_v38 = vld [vmem:[#allocation34_spill] sm:$0xff] }
 0x13e   : > { %v842_v39 = vrot.slane %v788_v41, 7  ;;  %v953_v32 = vrot.slane %v788_v41, 1  ;;  %v841_v28 = vrot.slane %v787_v34, 7  ;;  %v952_v62 = vrot.slane %v787_v34, 1  ;;  %1155 = vrot.lane.b32.xlu1 %v788_v41, %s5236_s29  ;;  %1153 = vrot.lane.b32.xlu0 %v787_v34, %s5236_s29 }
 0x13f   : > { %v734_v35 = vsel %vm693_vm0, %v9173_v1, %v9172_v7 }
 0x140   : > { %v614_v26 = vpop.permute.xlu1 %613  ;;  %v612_v46 = vpop.permute.xlu0 %611  ;;  %v6296_v33 = vsel %vm968_vm3, %v951_v30, %v952_v62  ;;  %v6300_v24 = vsel %vm968_vm3, %v952_v62, %v953_v32  ;;  %v6304_v60 = vsel %vm859_vm2, %v841_v28, %v842_v39  ;;  %v6308_v36 = vsel %vm859_vm2, %v840_v37, %v841_v28  ;;  %v9176_v62 = vld [vmem:[#allocation41_spill] sm:$0xff] }
 0x141   : > { %9174 = vst [vmem:[#allocation27_spill] sm:$0xff] %v6304_v60  ;;  %9175 = vst [vmem:[#allocation39_spill] sm:$0xff] %v6308_v36  ;;  %v790_v1 = vsel %vm748_vm1, %v735_v59, %v614_v26  ;;  %v789_v7 = vsel %vm748_vm1, %v734_v35, %v612_v46  ;;  %v737_v60 = vsel %vm693_vm0, %v9177_v38, %v9176_v62  ;;  %v9183_v36 = vld [vmem:[#allocation36_spill] sm:$0xff] }
 0x142   : > { %v844_v41 = vrot.slane %v790_v1, 7  ;;  %v955_v34 = vrot.slane %v790_v1, 1  ;;  %v843_v30 = vrot.slane %v789_v7, 7  ;;  %v954_v10 = vrot.slane %v789_v7, 1  ;;  %1159 = vrot.lane.b32.xlu1 %v790_v1, %s5236_s29  ;;  %1157 = vrot.lane.b32.xlu0 %v789_v7, %s5236_s29 }
 0x143   : > { %v736_v37 = vsel %vm693_vm0, %v9179_v42, %v9178_v5 }
 0x144   : > { %v618_v28 = vpop.permute.xlu1 %617  ;;  %v616_v59 = vpop.permute.xlu0 %615  ;;  %v6322_v35 = vsel %vm968_vm3, %v953_v32, %v954_v10  ;;  %v6326_v26 = vsel %vm968_vm3, %v954_v10, %v955_v34  ;;  %v6330_v46 = vsel %vm859_vm2, %v843_v30, %v844_v41  ;;  %v6334_v38 = vsel %vm859_vm2, %v842_v39, %v843_v30  ;;  %v9182_v10 = vld [vmem:[#allocation43_spill] sm:$0xff] }
 0x145   : > { %9180 = vst [vmem:[#allocation32_spill] sm:$0xff] %v6330_v46  ;;  %9181 = vst [vmem:[#allocation40_spill] sm:$0xff] %v6334_v38  ;;  %v792_v42 = vsel %vm748_vm1, %v737_v60, %v618_v28  ;;  %v791_v5 = vsel %vm748_vm1, %v736_v37, %v616_v59  ;;  %v739_v46 = vsel %vm693_vm0, %v9183_v36, %v9182_v10 }
 0x146   : > { %v846_v1 = vrot.slane %v792_v42, 7  ;;  %v957_v7 = vrot.slane %v792_v42, 1  ;;  %v845_v32 = vrot.slane %v791_v5, 7  ;;  %v956_v62 = vrot.slane %v791_v5, 1  ;;  %1163 = vrot.lane.b32.xlu1 %v792_v42, %s5236_s29  ;;  %1161 = vrot.lane.b32.xlu0 %v791_v5, %s5236_s29 }
 0x147   : > { %v738_v39 = vsel %vm693_vm0, %v9185_v0, %v9184_v3 }
 0x148   : > { %v622_v30 = vpop.permute.xlu1 %621  ;;  %v620_v60 = vpop.permute.xlu0 %619  ;;  %v6348_v37 = vsel %vm968_vm3, %v955_v34, %v956_v62  ;;  %v6352_v28 = vsel %vm968_vm3, %v956_v62, %v957_v7  ;;  %v6356_v59 = vsel %vm859_vm2, %v845_v32, %v846_v1  ;;  %v6360_v36 = vsel %vm859_vm2, %v844_v41, %v845_v32  ;;  %v1569_v34 = vld [vmem:[%s8979_s1 + $0x20] sm:$0xf]  ;;  %v9190_v41 = vld [vmem:[#allocation37_spill] sm:$0xff] }
 0x149   : > { %9186 = vst [vmem:[#allocation29_spill] sm:$0xff] %v6352_v28  ;;  %9187 = vst [vmem:[#allocation41_spill] sm:$0xff] %v6356_v59  ;;  %v794_v0 = vsel %vm748_vm1, %v739_v46, %v622_v30  ;;  %v793_v3 = vsel %vm748_vm1, %v738_v39, %v620_v60  ;;  %v9189_v59 = vld [vmem:[#allocation45_spill] sm:$0xff]  ;;  %v9191_v46 = vld [vmem:[#allocation46_spill] sm:$0xff]  ;;  %v5237_v60 = vmov 0   ;;  %4981 = vmatprep.subr.msk.mxu0 %vm1740_vm4, %v1569_v34 }
 0x14a   : > { %9188 = vst [vmem:[#allocation34_spill] sm:$0xff] %v6360_v36  ;;  %v848_v42 = vrot.slane %v794_v0, 7  ;;  %v959_v5 = vrot.slane %v794_v0, 1  ;;  %v847_v62 = vrot.slane %v793_v3, 7  ;;  %v958_v10 = vrot.slane %v793_v3, 1  ;;  %1167 = vrot.lane.b32.xlu1 %v794_v0, %s5236_s29  ;;  %1165 = vrot.lane.b32.xlu0 %v793_v3, %s5236_s29  ;;  %v9192_v30 = vld [vmem:[#allocation35_spill] sm:$0xff] }
 0x14b   : > { %v741_v32 = vsel %vm693_vm0, %v9190_v41, %v9189_v59  ;;  %v740_v39 = vsel %vm693_vm0, %v9192_v30, %v9191_v46  ;;  %5207 = vset.pattern.permute.xlu1 %v5237_v60  ;;  %5206 = vset.pattern.permute.xlu0 %v5237_v60 }
 0x14c   : > { %v626_v36 = vpop.permute.xlu1 %625  ;;  %v624_v38 = vpop.permute.xlu0 %623  ;;  %v6377_v50 = vsel %vm968_vm3, %v957_v7, %v958_v10  ;;  %v6381_v0 = vsel %vm968_vm3, %v958_v10, %v959_v5  ;;  %v6385_v59 = vsel %vm859_vm2, %v847_v62, %v848_v42  ;;  %v6389_v3 = vsel %vm859_vm2, %v846_v1, %v847_v62  ;;  %v1568_v7 = vld [vmem:[%s8979_s1 + $0x18] sm:$0xff]  ;;  %4982 = vmatpush3.msk.msra.mxu0 %vm1740_vm4, %v1569_v34  ;;  %v1567_v1 = vld [vmem:[%s8979_s1 + $0x10] sm:$0xff]  ;;  %v5208_v62 = vld [vmem:[%s5291_s26 + $0x188] sm:$0xff] }
 0x14d   : > { %9193 = vst [vmem:[#allocation42_spill] sm:$0xff] %v6377_v50  ;;  %9194 = vst [vmem:[#allocation31_spill] sm:$0xff] %v6381_v0  ;;  %v796_v41 = vsel %vm748_vm1, %v741_v32, %v626_v36  ;;  %v795_v10 = vsel %vm748_vm1, %v740_v39, %v624_v38  ;;  %v5209_v32 = vld [vmem:[%s5291_s26 + $0x180] sm:$0xff]  ;;  %v9198_v38 = vld [vmem:[#allocation48_spill] sm:$0xff]  ;;  %4983 = vmatprep.subr.mxu0 %v1568_v7 }
 0x14e   : > { %9195 = vst [vmem:[#allocation43_spill] sm:$0xff] %v6385_v59  ;;  %9196 = vst [vmem:[#allocation36_spill] sm:$0xff] %v6389_v3  ;;  %v850_v46 = vrot.slane %v796_v41, 7  ;;  %v961_v30 = vrot.slane %v796_v41, 1  ;;  %v849_v60 = vrot.slane %v795_v10, 7  ;;  %v960_v59 = vrot.slane %v795_v10, 1  ;;  %1171 = vrot.lane.b32.xlu1 %v796_v41, %s5236_s29  ;;  %1169 = vrot.lane.b32.xlu0 %v795_v10, %s5236_s29 }
 0x14f   : > { %v9197_v3 = vld [vmem:[#allocation47_spill] sm:$0xff]  ;;  %v742_v34 = vsel %vm693_vm0, %v5209_v32, %v9198_v38  ;;  %4984 = vmatpush3.msra.mxu0 %v1568_v7 }
 0x150   : > { %v743_v36 = vsel %vm693_vm0, %v5208_v62, %v9197_v3  ;;  %v630_v39 = vpop.permute.xlu1 %629  ;;  %v628_v0 = vpop.permute.xlu0 %627  ;;  %v6411_v41 = vsel %vm968_vm3, %v959_v5, %v960_v59  ;;  %v6415_v10 = vsel %vm968_vm3, %v960_v59, %v961_v30  ;;  %v6419_v3 = vsel %vm859_vm2, %v849_v60, %v850_v46  ;;  %4985 = vmatprep.subr.mxu0 %v1567_v1  ;;  %v1566_v5 = vld [vmem:[%s8979_s1 + $0x8] sm:$0xff] }
 0x151   : > { %9199 = vst [vmem:[#allocation44_spill] sm:$0xff] %v6411_v41  ;;  %9200 = vst [vmem:[#allocation33_spill] sm:$0xff] %v6415_v10  ;;  %v6423_v62 = vsel %vm859_vm2, %v848_v42, %v849_v60  ;;  %v798_v32 = vsel %vm748_vm1, %v743_v36, %v630_v39  ;;  %v797_v38 = vsel %vm748_vm1, %v742_v34, %v628_v0  ;;  %v5210_v42 = vld [vmem:[%s5291_s26 + $0x198] sm:$0xff]  ;;  %v5211_v36 = vld [vmem:[%s5291_s26 + $0x190] sm:$0xff]  ;;  %4986 = vmatpush3.msra.mxu0 %v1567_v1 }
 0x152   : > { %9201 = vst [vmem:[#allocation45_spill] sm:$0xff] %v6419_v3  ;;  %9202 = vst [vmem:[#allocation37_spill] sm:$0xff] %v6423_v62  ;;  %v852_v59 = vrot.slane %v798_v32, 7  ;;  %v963_v10 = vrot.slane %v798_v32, 1  ;;  %v851_v41 = vrot.slane %v797_v38, 7  ;;  %v962_v28 = vrot.slane %v797_v38, 1  ;;  %1175 = vrot.lane.b32.xlu1 %v798_v32, %s5236_s29  ;;  %1173 = vrot.lane.b32.xlu0 %v797_v38, %s5236_s29 }
 0x153   : > { %v9203_v60 = vld [vmem:[#allocation49_spill] sm:$0xff]  ;;  %v9204_v39 = vld [vmem:[#allocation50_spill] sm:$0xff]  ;;  %4987 = vmatprep.subr.mxu0 %v1566_v5 }
 0x154   : > { %v745_v7 = vsel %vm693_vm0, %v5210_v42, %v9203_v60  ;;  %v744_v0 = vsel %vm693_vm0, %v5211_v36, %v9204_v39  ;;  %v634_v34 = vpop.permute.xlu1 %633  ;;  %v632_v62 = vpop.permute.xlu0 %631  ;;  %v6440_v3 = vsel %vm968_vm3, %v961_v30, %v962_v28  ;;  %v6444_v32 = vsel %vm968_vm3, %v962_v28, %v963_v10  ;;  %v1565_v1 = vld [vmem:[%s8979_s1] sm:$0xff]  ;;  %4988 = vmatpush3.msra.mxu0 %v1566_v5 }
 0x155   : > { %9205 = vst [vmem:[#allocation46_spill] sm:$0xff] %v6440_v3  ;;  %9206 = vst [vmem:[#allocation35_spill] sm:$0xff] %v6444_v32  ;;  %v6448_v38 = vsel %vm859_vm2, %v851_v41, %v852_v59  ;;  %v6452_v42 = vsel %vm859_vm2, %v850_v46, %v851_v41  ;;  %v800_v30 = vsel %vm748_vm1, %v745_v7, %v634_v34  ;;  %v5212_v46 = vld [vmem:[%s5291_s26 + $0x1a8] sm:$0xff]  ;;  %v9210_v3 = vld [vmem:[#allocation52_spill] sm:$0xff]  ;;  %4989 = vmatprep.subr.mxu0 %v1565_v1 }
 0x156   : > { %9207 = vst [vmem:[#allocation47_spill] sm:$0xff] %v6448_v38  ;;  %9208 = vst [vmem:[#allocation48_spill] sm:$0xff] %v6452_v42  ;;  %v799_v60 = vsel %vm748_vm1, %v744_v0, %v632_v62  ;;  %v854_v28 = vrot.slane %v800_v30, 7  ;;  %v965_v36 = vrot.slane %v800_v30, 1  ;;  %1179 = vrot.lane.b32.xlu1 %v800_v30, %s5236_s29  ;;  %v9209_v41 = vld [vmem:[#allocation51_spill] sm:$0xff]  ;;  %v5213_v38 = vld [vmem:[%s5291_s26 + $0x1a0] sm:$0xff]  ;;  %4990 = vmatpush3.msra.mxu0 %v1565_v1 }
 0x157   : > { %v853_v39 = vrot.slane %v799_v60, 7  ;;  %v964_v32 = vrot.slane %v799_v60, 1  ;;  %1177 = vrot.lane.b32.xlu0 %v799_v60, %s5236_s29  ;;  %v747_v42 = vsel %vm693_vm0, %v5212_v46, %v9209_v41  ;;  %v746_v50 = vsel %vm693_vm0, %v5213_v38, %v9210_v3 }
 0x158   : > { %v638_v7 = vpop.permute.xlu1 %637  ;;  %v636_v62 = vpop.permute.xlu0 %635  ;;  %v914_v3 = vrot.slane %v5792_v44, 1 }
 0x159   : > { %v6469_v5 = vsel %vm968_vm3, %v963_v10, %v964_v32  ;;  %v6473_v0 = vsel %vm968_vm3, %v964_v32, %v965_v36  ;;  %v6477_v34 = vsel %vm859_vm2, %v853_v39, %v854_v28  ;;  %v6481_v30 = vsel %vm859_vm2, %v852_v59, %v853_v39 }
 0x15a   : > { %9211 = vst [vmem:[#allocation49_spill] sm:$0xff] %v6481_v30  ;;  %v6485_v38 = vsel %vm748_vm1, %v747_v42, %v638_v7  ;;  %v801_v10 = vsel %vm748_vm1, %v746_v50, %v636_v62  ;;  %v9212_v59 = vrot.slane %v5792_v44, 7  ;;  %v9213_v39 = vrot.slane %v5789_v43, 1  ;;  %v2247_v30 = vld [vmem:[%s8983_s5 + $0x30] sm:$0xff] }
 0x15b   : > { %v856_v60 = vrot.slane %v6485_v38, 7  ;;  %v9021_v32 = vrot.slane %v6485_v38, 1  ;;  %v855_v46 = vrot.slane %v801_v10, 7  ;;  %v966_v41 = vrot.slane %v801_v10, 1  ;;  %1183 = vrot.lane.b32.xlu1 %v6485_v38, %s5236_s29  ;;  %1181 = vrot.lane.b32.xlu0 %v801_v10, %s5236_s29  ;;  %s5241_s29 = smov 48  }
 0x15c   : > { %v1021_v7 = vsel %vm968_vm3, %v914_v3, %v9213_v39  ;;  %v9220_v39 = vld [vmem:[#allocation46_spill] sm:$0xff] }
 0x15d   : > { %v6497_v1 = vsel %vm859_vm2, %v856_v60, %v9212_v59  ;;  %v6501_v50 = vsel %vm968_vm3, %v965_v36, %v966_v41  ;;  %v6507_v42 = vsel %vm968_vm3, %v966_v41, %v9021_v32  ;;  %v6517_v62 = vsel %vm859_vm2, %v855_v46, %v856_v60  ;;  %v9216_v60 = vld [vmem:[#allocation42_spill] sm:$0xff]  ;;  %v9218_v41 = vld [vmem:[#allocation44_spill] sm:$0xff] }
 0x15e   : > { %9214 = vst [vmem:[#allocation50_spill] sm:$0xff] %v6517_v62  ;;  %v6521_v36 = vsel %vm859_vm2, %v854_v28, %v855_v46 }
 0x15f   : > { %9215 = vst [vmem:[#allocation51_spill] sm:$0xff] %v6521_v36  ;;  %1295 = vrot.lane.b32.xlu1 %v5828_v57, %s5238_s16  ;;  %1293 = vrot.lane.b32.xlu0 %v1021_v7, %s5238_s16  ;;  %v9221_v7 = vld [vmem:[#allocation33_spill] sm:$0xff] }
 0x163   : > { %1299 = vrot.lane.b32.xlu1 %v5854_v56, %s5238_s16  ;;  %1297 = vrot.lane.b32.xlu0 %v5832_v53, %s5238_s16 }
 0x164   : > { %v6530_v43 = vpop.permute.xlu1 %1079  ;;  %v6532_v10 = vpop.permute.xlu0 %1077 }
 0x167   : > { %1303 = vrot.lane.b32.xlu1 %v5880_v49, %s5238_s16  ;;  %1301 = vrot.lane.b32.xlu0 %v5858_v55, %s5238_s16 }
 0x168   : > { %v6538_v28 = vpop.permute.xlu1 %1083  ;;  %v6540_v57 = vpop.permute.xlu0 %1081 }
 0x16b   : > { %1307 = vrot.lane.b32.xlu1 %v5906_v40, %s5238_s16  ;;  %1305 = vrot.lane.b32.xlu0 %v5884_v54, %s5238_s16 }
 0x16c   : > { %v6546_v53 = vpop.permute.xlu1 %1087  ;;  %v6548_v56 = vpop.permute.xlu0 %1085 }
 0x16f   : > { %1311 = vrot.lane.b32.xlu1 %v5932_v48, %s5238_s16  ;;  %1309 = vrot.lane.b32.xlu0 %v5910_v52, %s5238_s16 }
 0x170   : > { %v6554_v55 = vpop.permute.xlu1 %1091  ;;  %v6556_v49 = vpop.permute.xlu0 %1089 }
 0x173   : > { %1315 = vrot.lane.b32.xlu1 %v5958_v61, %s5238_s16  ;;  %1313 = vrot.lane.b32.xlu0 %v5936_v45, %s5238_s16 }
 0x174   : > { %v6562_v54 = vpop.permute.xlu1 %1095  ;;  %v6564_v40 = vpop.permute.xlu0 %1093 }
 0x177   : > { %1319 = vrot.lane.b32.xlu1 %v5984_v63, %s5238_s16  ;;  %1317 = vrot.lane.b32.xlu0 %v5962_v51, %s5238_s16 }
 0x178   : > { %v6570_v52 = vpop.permute.xlu1 %1099  ;;  %v6572_v48 = vpop.permute.xlu0 %1097 }
 0x17b   : > { %1323 = vrot.lane.b32.xlu1 %v6010_v13, %s5238_s16  ;;  %1321 = vrot.lane.b32.xlu0 %v5988_v58, %s5238_s16 }
 0x17c   : > { %v6578_v45 = vpop.permute.xlu1 %1103  ;;  %v6580_v61 = vpop.permute.xlu0 %1101 }
 0x17f   : > { %1327 = vrot.lane.b32.xlu1 %v6036_v15, %s5238_s16  ;;  %1325 = vrot.lane.b32.xlu0 %v6014_v2, %s5238_s16 }
 0x180   : > { %v6586_v51 = vpop.permute.xlu1 %1107  ;;  %v6588_v63 = vpop.permute.xlu0 %1105 }
 0x183   : > { %1331 = vrot.lane.b32.xlu1 %v6062_v8, %s5238_s16  ;;  %1329 = vrot.lane.b32.xlu0 %v6040_v4, %s5238_s16 }
 0x184   : > { %v6594_v58 = vpop.permute.xlu1 %1111  ;;  %v6596_v13 = vpop.permute.xlu0 %1109 }
 0x187   : > { %1335 = vrot.lane.b32.xlu1 %v6088_v17, %s5238_s16  ;;  %1333 = vrot.lane.b32.xlu0 %v6066_v6, %s5238_s16 }
 0x188   : > { %v6602_v2 = vpop.permute.xlu1 %1115  ;;  %v6604_v15 = vpop.permute.xlu0 %1113 }
 0x18b   : > { %1339 = vrot.lane.b32.xlu1 %v6114_v19, %s5238_s16  ;;  %1337 = vrot.lane.b32.xlu0 %v6092_v12, %s5238_s16 }
 0x18c   : > { %v6610_v4 = vpop.permute.xlu1 %1119  ;;  %v6612_v8 = vpop.permute.xlu0 %1117 }
 0x18f   : > { %1343 = vrot.lane.b32.xlu1 %v6140_v21, %s5238_s16  ;;  %1341 = vrot.lane.b32.xlu0 %v6118_v9, %s5238_s16 }
 0x190   : > { %v6618_v6 = vpop.permute.xlu1 %1123  ;;  %v6620_v17 = vpop.permute.xlu0 %1121 }
 0x193   : > { %1347 = vrot.lane.b32.xlu1 %v6166_v23, %s5238_s16  ;;  %1345 = vrot.lane.b32.xlu0 %v6144_v11, %s5238_s16 }
 0x194   : > { %v6626_v12 = vpop.permute.xlu1 %1127  ;;  %v6628_v19 = vpop.permute.xlu0 %1125 }
 0x197   : > { %1351 = vrot.lane.b32.xlu1 %v6192_v25, %s5238_s16  ;;  %1349 = vrot.lane.b32.xlu0 %v6170_v14, %s5238_s16 }
 0x198   : > { %v6634_v9 = vpop.permute.xlu1 %1131  ;;  %v6636_v21 = vpop.permute.xlu0 %1129 }
 0x19b   : > { %1355 = vrot.lane.b32.xlu1 %v6218_v27, %s5238_s16  ;;  %1353 = vrot.lane.b32.xlu0 %v6196_v16, %s5238_s16 }
 0x19c   : > { %v6642_v11 = vpop.permute.xlu1 %1135  ;;  %v6644_v23 = vpop.permute.xlu0 %1133 }
 0x19f   : > { %1359 = vrot.lane.b32.xlu1 %v6244_v29, %s5238_s16  ;;  %1357 = vrot.lane.b32.xlu0 %v6222_v18, %s5238_s16 }
 0x1a0   : > { %v6650_v14 = vpop.permute.xlu1 %1139  ;;  %v6652_v25 = vpop.permute.xlu0 %1137 }
 0x1a3   : > { %1363 = vrot.lane.b32.xlu1 %v6270_v31, %s5238_s16  ;;  %1361 = vrot.lane.b32.xlu0 %v6248_v20, %s5238_s16 }
 0x1a4   : > { %v6658_v16 = vpop.permute.xlu1 %1143  ;;  %v6660_v27 = vpop.permute.xlu0 %1141 }
 0x1a7   : > { %1367 = vrot.lane.b32.xlu1 %v6296_v33, %s5238_s16  ;;  %1365 = vrot.lane.b32.xlu0 %v6274_v22, %s5238_s16 }
 0x1a8   : > { %v6666_v18 = vpop.permute.xlu1 %1147  ;;  %v6668_v29 = vpop.permute.xlu0 %1145 }
 0x1ab   : > { %1371 = vrot.lane.b32.xlu1 %v6322_v35, %s5238_s16  ;;  %1369 = vrot.lane.b32.xlu0 %v6300_v24, %s5238_s16  ;;  %v9217_v35 = vld [vmem:[#allocation29_spill] sm:$0xff] }
 0x1ac   : > { %v6674_v20 = vpop.permute.xlu1 %1151  ;;  %v6676_v31 = vpop.permute.xlu0 %1149 }
 0x1af   : > { %1375 = vrot.lane.b32.xlu1 %v6348_v37, %s5238_s16  ;;  %1373 = vrot.lane.b32.xlu0 %v6326_v26, %s5238_s16  ;;  %v9219_v37 = vld [vmem:[#allocation31_spill] sm:$0xff] }
 0x1b0   : > { %v6682_v22 = vpop.permute.xlu1 %1155  ;;  %v6684_v33 = vpop.permute.xlu0 %1153 }
 0x1b3   : > { %1379 = vrot.lane.b32.xlu1 %v9216_v60, %s5238_s16  ;;  %1377 = vrot.lane.b32.xlu0 %v9217_v35, %s5238_s16 }
 0x1b4   : > { %v6690_v24 = vpop.permute.xlu1 %1159  ;;  %v6692_v46 = vpop.permute.xlu0 %1157 }
 0x1b7   : > { %1383 = vrot.lane.b32.xlu1 %v9218_v41, %s5238_s16  ;;  %1381 = vrot.lane.b32.xlu0 %v9219_v37, %s5238_s16  ;;  %v9222_v41 = vld [vmem:[#allocation35_spill] sm:$0xff] }
 0x1b8   : > { %v6698_v26 = vpop.permute.xlu1 %1163  ;;  %v6700_v59 = vpop.permute.xlu0 %1161 }
 0x1bb   : > { %1387 = vrot.lane.b32.xlu1 %v9220_v39, %s5238_s16  ;;  %1385 = vrot.lane.b32.xlu0 %v9221_v7, %s5238_s16 }
 0x1bc   : > { %v6706_v60 = vpop.permute.xlu1 %1167  ;;  %v6708_v35 = vpop.permute.xlu0 %1165 }
 0x1bf   : > { %1391 = vrot.lane.b32.xlu1 %v6469_v5, %s5238_s16  ;;  %1389 = vrot.lane.b32.xlu0 %v9222_v41, %s5238_s16  ;;  %v9223_v5 = vrot.slane %v6485_v38, 1  ;;  %v2244_v38 = vld [vmem:[%s8983_s5 + $0x18] sm:$0xff] }
 0x1c0   : > { %v6714_v37 = vpop.permute.xlu1 %1171  ;;  %v6716_v32 = vpop.permute.xlu0 %1169 }
 0x1c1   : > { %v1022_v41 = vsel %vm968_vm3, %v9223_v5, %v914_v3  ;;  %v2243_v3 = vld [vmem:[%s8983_s5 + $0x10] sm:$0xff] }
 0x1c3   : > { %1395 = vrot.lane.b32.xlu1 %v6501_v50, %s5238_s16  ;;  %1393 = vrot.lane.b32.xlu0 %v6473_v0, %s5238_s16  ;;  %v2242_v0 = vld [vmem:[%s8983_s5 + $0x8] sm:$0xff]  ;;  %v2241_v50 = vld [vmem:[%s8983_s5] sm:$0xff] }
 0x1c4   : > { %v6722_v39 = vpop.permute.xlu1 %1175  ;;  %v6724_v7 = vpop.permute.xlu0 %1173 }
 0x1c7   : > { %1399 = vrot.lane.b32.xlu1 %v1022_v41, %s5238_s16  ;;  %1397 = vrot.lane.b32.xlu0 %v6507_v42, %s5238_s16  ;;  %v2245_v41 = vld [vmem:[%s8983_s5 + $0x20] sm:$0xff] }
 0x1c8   : > { %v6741_v36 = vpop.permute.xlu1 %1179 }
 0x1c9   : > { %v6743_v44 = vpop.permute.xlu0 %1177 }
 0x1cb   : > { %2302 = vperm.xlu1 %5207, %v2242_v0   ;;  %2297 = vperm.xlu0 %5206, %v2241_v50   ;;  %v2246_v0 = vld [vmem:[%s8983_s5 + $0x28] sm:$0xff]  ;;  %v9226_v50 = vld [vmem:[#allocation54_spill] sm:$0xff] }
 0x1cc   : > { %v1457_v47 = vsel %vm1455_vm5, %v9226_v50, %v6530_v43  ;;  %v2248_v43 = vld [vmem:[%s8983_s5 + $0x38] sm:$0xff] }
 0x1cd   : > { %v6751_v42 = vpop.permute.xlu1 %1183  ;;  %v6753_v5 = vpop.permute.xlu0 %1181  ;;  %v9229_v50 = vld [vmem:[#allocation57_spill] sm:$0xff] }
 0x1ce   : > { %9224 = vst [vmem:[#allocation52_spill] sm:$0xff] %v6751_v42  ;;  %9225 = vst [vmem:[#allocation42_spill] sm:$0xff] %v6753_v5  ;;  %v1456_v5 = vsel %vm1455_vm5, %v6497_v1, %v6532_v10  ;;  %v9227_v1 = vld [vmem:[#allocation55_spill] sm:$0xff] }
 0x1cf   : > { %2307 = vperm.xlu1 %5207, %v2243_v3   ;;  %2312 = vperm.xlu0 %5206, %v2244_v38   ;;  %v1459_v10 = vsel %vm1455_vm5, %v9227_v1, %v6538_v28  ;;  %v2249_v28 = vld [vmem:[%s8983_s5 + $0x40] sm:$0xff] }
 0x1d1   : > { %v1296_v62 = vpop.permute.xlu1 %1295  ;;  %v1294_v3 = vpop.permute.xlu0 %1293 }
 0x1d2   : > { %v1512_v38 = vsel %vm1510_vm6, %v1457_v47, %v1296_v62  ;;  %v1511_v42 = vsel %vm1510_vm6, %v1456_v5, %v1294_v3  ;;  %v9228_v47 = vld [vmem:[#allocation56_spill] sm:$0xff]  ;;  %v1461_v3 = vsel %vm1455_vm5, %v9229_v50, %v6546_v53 }
 0x1d3   : > { %2317 = vperm.xlu1 %5207, %v2245_v41   ;;  %2322 = vperm.xlu0 %5206, %v2246_v0   ;;  %v1458_v62 = vsel %vm1455_vm5, %v9228_v47, %v6540_v57  ;;  %v2250_v57 = vld [vmem:[%s8983_s5 + $0x48] sm:$0xff]  ;;  %v2251_v53 = vld [vmem:[%s8983_s5 + $0x50] sm:$0xff] }
 0x1d4   : > { %4991 = vmatprep.mubr.msk.f32.mxu0 %vm1577_vm7, %v1511_v42 }
 0x1d5   : > { %4992 = vmatmul.mubr.msk.f32.vlgmr.msra.gmra.mxu0 %vm1577_vm7, %v1512_v38  ;;  %v1300_v5 = vpop.permute.xlu1 %1299  ;;  %v1298_v42 = vpop.permute.xlu0 %1297  ;;  %v9230_v38 = vld [vmem:[#allocation58_spill] sm:$0xff] }
 0x1d6   : > { %v1514_v41 = vsel %vm1510_vm6, %v1459_v10, %v1300_v5  ;;  %v1513_v0 = vsel %vm1510_vm6, %v1458_v62, %v1298_v42  ;;  %v1460_v1 = vsel %vm1455_vm5, %v9230_v38, %v6548_v56  ;;  %v2252_v56 = vld [vmem:[%s8983_s5 + $0x58] sm:$0xff]  ;;  %v9231_v62 = vld [vmem:[#allocation59_spill] sm:$0xff]  ;;  %v9232_v42 = vld [vmem:[#allocation60_spill] sm:$0xff] }
 0x1d7   : > { %2327 = vperm.xlu1 %5207, %v2247_v30   ;;  %2332 = vperm.xlu0 %5206, %v2248_v43   ;;  %v1463_v5 = vsel %vm1455_vm5, %v9231_v62, %v6554_v55  ;;  %v2253_v55 = vld [vmem:[%s8983_s5 + $0x60] sm:$0xff] }
 0x1d8   : > { %4994 = vmatprep.mubr.msk.f32.mxu0 %vm1577_vm7, %v1513_v0 }
 0x1d9   : > { %4995 = vmatmul.mubr.msk.f32.gmra.mxu0 %vm1577_vm7, %v1514_v41  ;;  %v1304_v30 = vpop.permute.xlu1 %1303  ;;  %v1302_v43 = vpop.permute.xlu0 %1301  ;;  %v1462_v41 = vsel %vm1455_vm5, %v9232_v42, %v6556_v49  ;;  %v2254_v49 = vld [vmem:[%s8983_s5 + $0x68] sm:$0xff] }
 0x1da   : > { %v1516_v10 = vsel %vm1510_vm6, %v1461_v3, %v1304_v30  ;;  %v1515_v47 = vsel %vm1510_vm6, %v1460_v1, %v1302_v43  ;;  %v9233_v3 = vld [vmem:[#allocation61_spill] sm:$0xff]  ;;  %v9234_v1 = vld [vmem:[#allocation62_spill] sm:$0xff] }
 0x1db   : > { %2337 = vperm.xlu1 %5207, %v2249_v28   ;;  %2342 = vperm.xlu0 %5206, %v2250_v57   ;;  %v1465_v38 = vsel %vm1455_vm5, %v9233_v3, %v6562_v54  ;;  %v1464_v30 = vsel %vm1455_vm5, %v9234_v1, %v6564_v40  ;;  %v2255_v54 = vld [vmem:[%s8983_s5 + $0x70] sm:$0xff]  ;;  %v2256_v40 = vld [vmem:[%s8983_s5 + $0x78] sm:$0xff] }
 0x1dc   : > { %4997 = vmatprep.mubr.msk.f32.mxu0 %vm1577_vm7, %v1515_v47 }
 0x1dd   : > { %4998 = vmatmul.mubr.msk.f32.gmra.mxu0 %vm1577_vm7, %v1516_v10  ;;  %v1308_v0 = vpop.permute.xlu1 %1307  ;;  %v1306_v28 = vpop.permute.xlu0 %1305 }
 0x1de   : > { %v1518_v57 = vsel %vm1510_vm6, %v1463_v5, %v1308_v0  ;;  %v1517_v50 = vsel %vm1510_vm6, %v1462_v41, %v1306_v28  ;;  %v9236_v5 = vld [vmem:[#allocation64_spill] sm:$0xff] }
 0x1df   : > { %2347 = vperm.xlu1 %5207, %v2251_v53   ;;  %2352 = vperm.xlu0 %5206, %v2252_v56   ;;  %v9235_v56 = vld [vmem:[#allocation63_spill] sm:$0xff]  ;;  %v1466_v42 = vsel %vm1455_vm5, %v9236_v5, %v6572_v48 }
 0x1e0   : > { %5000 = vmatprep.mubr.msk.f32.mxu0 %vm1577_vm7, %v1517_v50  ;;  %v1467_v62 = vsel %vm1455_vm5, %v9235_v56, %v6570_v52  ;;  %v2257_v52 = vld [vmem:[%s8983_s5 + $0x80] sm:$0xff]  ;;  %v2258_v48 = vld [vmem:[%s8983_s5 + $0x88] sm:$0xff] }
 0x1e1   : > { %5001 = vmatmul.mubr.msk.f32.gmra.mxu0 %vm1577_vm7, %v1518_v57  ;;  %v1312_v43 = vpop.permute.xlu1 %1311  ;;  %v1310_v10 = vpop.permute.xlu0 %1309  ;;  %v9237_v50 = vld [vmem:[#allocation6_spill] sm:$0xff] }
 0x1e2   : > { %v1520_v47 = vsel %vm1510_vm6, %v1465_v38, %v1312_v43  ;;  %v1519_v53 = vsel %vm1510_vm6, %v1464_v30, %v1310_v10  ;;  %v9239_v10 = vld [vmem:[#allocation8_spill] sm:$0xff] }
 0x1e3   : > { %2357 = vperm.xlu1 %5207, %v2253_v55   ;;  %2362 = vperm.xlu0 %5206, %v2254_v49   ;;  %v1469_v55 = vsel %vm1455_vm5, %v9237_v50, %v6578_v45  ;;  %v9238_v49 = vld [vmem:[#allocation4_spill] sm:$0xff] }
 0x1e4   : > { %5003 = vmatprep.mubr.msk.f32.mxu0 %vm1577_vm7, %v1519_v53  ;;  %v1468_v3 = vsel %vm1455_vm5, %v9238_v49, %v6580_v61  ;;  %v2259_v45 = vld [vmem:[%s8983_s5 + $0x90] sm:$0xff]  ;;  %v2260_v61 = vld [vmem:[%s8983_s5 + $0x98] sm:$0xff] }
 0x1e5   : > { %5004 = vmatmul.mubr.msk.f32.gmra.mxu0 %vm1577_vm7, %v1520_v47  ;;  %v1316_v41 = vpop.permute.xlu1 %1315  ;;  %v1314_v0 = vpop.permute.xlu0 %1313  ;;  %v1471_v47 = vsel %vm1455_vm5, %v9239_v10, %v6586_v51  ;;  %v9240_v53 = vld [vmem:[#allocation5_spill] sm:$0xff]  ;;  %v2261_v51 = vld [vmem:[%s8983_s5 + $0xa0] sm:$0xff] }
 0x1e6   : > { %v1522_v28 = vsel %vm1510_vm6, %v1467_v62, %v1316_v41  ;;  %v1521_v57 = vsel %vm1510_vm6, %v1466_v42, %v1314_v0  ;;  %v9241_v42 = vld [vmem:[#allocation10_spill] sm:$0xff]  ;;  %v9242_v0 = vld [vmem:[#allocation7_spill] sm:$0xff] }
 0x1e7   : > { %2367 = vperm.xlu1 %5207, %v2255_v54   ;;  %2372 = vperm.xlu0 %5206, %v2256_v40   ;;  %v1470_v54 = vsel %vm1455_vm5, %v9240_v53, %v6588_v63  ;;  %v2262_v63 = vld [vmem:[%s8983_s5 + $0xa8] sm:$0xff]  ;;  %v1473_v41 = vsel %vm1455_vm5, %v9241_v42, %v6594_v58  ;;  %v2263_v58 = vld [vmem:[%s8983_s5 + $0xb0] sm:$0xff] }
 0x1e8   : > { %5006 = vmatprep.mubr.msk.f32.mxu0 %vm1577_vm7, %v1521_v57 }
 0x1e9   : > { %5007 = vmatmul.mubr.msk.f32.gmra.mxu0 %vm1577_vm7, %v1522_v28  ;;  %v1320_v38 = vpop.permute.xlu1 %1319  ;;  %v1318_v1 = vpop.permute.xlu0 %1317  ;;  %v1472_v28 = vsel %vm1455_vm5, %v9242_v0, %v6596_v13  ;;  %v2264_v13 = vld [vmem:[%s8983_s5 + $0xb8] sm:$0xff] }
 0x1ea   : > { %v1524_v30 = vsel %vm1510_vm6, %v1469_v55, %v1320_v38  ;;  %v1523_v43 = vsel %vm1510_vm6, %v1468_v3, %v1318_v1  ;;  %v9243_v55 = vld [vmem:[#allocation12_spill] sm:$0xff]  ;;  %v9244_v3 = vld [vmem:[#allocation9_spill] sm:$0xff] }
 0x1eb   : > { %2377 = vperm.xlu1 %5207, %v2257_v52   ;;  %2382 = vperm.xlu0 %5206, %v2258_v48   ;;  %v1475_v49 = vsel %vm1455_vm5, %v9243_v55, %v6602_v2  ;;  %v1474_v38 = vsel %vm1455_vm5, %v9244_v3, %v6604_v15  ;;  %v2265_v2 = vld [vmem:[%s8983_s5 + $0xc0] sm:$0xff]  ;;  %v2266_v15 = vld [vmem:[%s8983_s5 + $0xc8] sm:$0xff] }
 0x1ec   : > { %5009 = vmatprep.mubr.msk.f32.mxu0 %vm1577_vm7, %v1523_v43 }
 0x1ed   : > { %5010 = vmatmul.mubr.msk.f32.gmra.mxu0 %vm1577_vm7, %v1524_v30  ;;  %v1324_v40 = vpop.permute.xlu1 %1323  ;;  %v1322_v56 = vpop.permute.xlu0 %1321 }
 0x1ee   : > { %v1526_v62 = vsel %vm1510_vm6, %v1471_v47, %v1324_v40  ;;  %v1525_v5 = vsel %vm1510_vm6, %v1470_v54, %v1322_v56  ;;  %v9246_v47 = vld [vmem:[#allocation11_spill] sm:$0xff] }
 0x1ef   : > { %2387 = vperm.xlu1 %5207, %v2259_v45   ;;  %2392 = vperm.xlu0 %5206, %v2260_v61   ;;  %v9245_v61 = vld [vmem:[#allocation14_spill] sm:$0xff]  ;;  %v1476_v53 = vsel %vm1455_vm5, %v9246_v47, %v6612_v8  ;;  %v2268_v8 = vld [vmem:[%s8983_s5 + $0xd8] sm:$0xff] }
 0x1f0   : > { %5012 = vmatprep.mubr.msk.f32.mxu0 %vm1577_vm7, %v1525_v5  ;;  %v1477_v10 = vsel %vm1455_vm5, %v9245_v61, %v6610_v4  ;;  %v2267_v4 = vld [vmem:[%s8983_s5 + $0xd0] sm:$0xff] }
 0x1f1   : > { %5013 = vmatmul.mubr.msk.f32.gmra.mxu0 %vm1577_vm7, %v1526_v62  ;;  %v1328_v57 = vpop.permute.xlu1 %1327  ;;  %v1326_v52 = vpop.permute.xlu0 %1325  ;;  %v9247_v5 = vld [vmem:[#allocation16_spill] sm:$0xff] }
 0x1f2   : > { %v1528_v48 = vsel %vm1510_vm6, %v1473_v41, %v1328_v57  ;;  %v1527_v50 = vsel %vm1510_vm6, %v1472_v28, %v1326_v52  ;;  %v9249_v52 = vld [vmem:[#allocation18_spill] sm:$0xff] }
 0x1f3   : > { %2397 = vperm.xlu1 %5207, %v2261_v51   ;;  %2402 = vperm.xlu0 %5206, %v2262_v63   ;;  %v1479_v51 = vsel %vm1455_vm5, %v9247_v5, %v6618_v6  ;;  %v9248_v63 = vld [vmem:[#allocation13_spill] sm:$0xff]  ;;  %v2269_v6 = vld [vmem:[%s8983_s5 + $0xe0] sm:$0xff] }
 0x1f4   : > { %5015 = vmatprep.mubr.msk.f32.mxu0 %vm1577_vm7, %v1527_v50  ;;  %v1478_v42 = vsel %vm1455_vm5, %v9248_v63, %v6620_v17  ;;  %v2270_v17 = vld [vmem:[%s8983_s5 + $0xe8] sm:$0xff] }
 0x1f5   : > { %5016 = vmatmul.mubr.msk.f32.gmra.mxu0 %vm1577_vm7, %v1528_v48  ;;  %v1332_v1 = vpop.permute.xlu1 %1331  ;;  %v1330_v30 = vpop.permute.xlu0 %1329  ;;  %v1481_v48 = vsel %vm1455_vm5, %v9249_v52, %v6626_v12  ;;  %v9250_v50 = vld [vmem:[#allocation15_spill] sm:$0xff]  ;;  %v2271_v12 = vld [vmem:[%s8983_s5 + $0xf0] sm:$0xff] }
 0x1f6   : > { %v1530_v43 = vsel %vm1510_vm6, %v1475_v49, %v1332_v1  ;;  %v1529_v45 = vsel %vm1510_vm6, %v1474_v38, %v1330_v30  ;;  %v9251_v38 = vld [vmem:[#allocation20_spill] sm:$0xff]  ;;  %v9252_v30 = vld [vmem:[#allocation17_spill] sm:$0xff] }
 0x1f7   : > { %2407 = vperm.xlu1 %5207, %v2263_v58   ;;  %2412 = vperm.xlu0 %5206, %v2264_v13   ;;  %v1480_v58 = vsel %vm1455_vm5, %v9250_v50, %v6628_v19  ;;  %v2272_v19 = vld [vmem:[%s8983_s5 + $0xf8] sm:$0xff]  ;;  %v1483_v1 = vsel %vm1455_vm5, %v9251_v38, %v6634_v9  ;;  %v2273_v9 = vld [vmem:[%s8983_s5 + $0x100] sm:$0xff] }
 0x1f8   : > { %5018 = vmatprep.mubr.msk.f32.mxu0 %vm1577_vm7, %v1529_v45 }
 0x1f9   : > { %5019 = vmatmul.mubr.msk.f32.gmra.mxu0 %vm1577_vm7, %v1530_v43  ;;  %v1336_v54 = vpop.permute.xlu1 %1335  ;;  %v1334_v40 = vpop.permute.xlu0 %1333  ;;  %v1482_v43 = vsel %vm1455_vm5, %v9252_v30, %v6636_v21  ;;  %v2274_v21 = vld [vmem:[%s8983_s5 + $0x108] sm:$0xff] }
 0x1fa   : > { %v1532_v56 = vsel %vm1510_vm6, %v1477_v10, %v1336_v54  ;;  %v1531_v62 = vsel %vm1510_vm6, %v1476_v53, %v1334_v40  ;;  %v9253_v10 = vld [vmem:[#allocation22_spill] sm:$0xff]  ;;  %v9254_v53 = vld [vmem:[#allocation19_spill] sm:$0xff] }
 0x1fb   : > { %2417 = vperm.xlu1 %5207, %v2265_v2   ;;  %2422 = vperm.xlu0 %5206, %v2266_v15   ;;  %v1485_v47 = vsel %vm1455_vm5, %v9253_v10, %v6642_v11  ;;  %v1484_v54 = vsel %vm1455_vm5, %v9254_v53, %v6644_v23  ;;  %v2275_v11 = vld [vmem:[%s8983_s5 + $0x110] sm:$0xff]  ;;  %v2276_v23 = vld [vmem:[%s8983_s5 + $0x118] sm:$0xff] }
 0x1fc   : > { %5021 = vmatprep.mubr.msk.f32.mxu0 %vm1577_vm7, %v1531_v62 }
 0x1fd   : > { %5022 = vmatmul.mubr.msk.f32.gmra.mxu0 %vm1577_vm7, %v1532_v56  ;;  %v1340_v41 = vpop.permute.xlu1 %1339  ;;  %v1338_v0 = vpop.permute.xlu0 %1337 }
 0x1fe   : > { %v1534_v28 = vsel %vm1510_vm6, %v1479_v51, %v1340_v41  ;;  %v1533_v57 = vsel %vm1510_vm6, %v1478_v42, %v1338_v0  ;;  %v9256_v51 = vld [vmem:[#allocation21_spill] sm:$0xff] }
 0x1ff   : > { %2427 = vperm.xlu1 %5207, %v2267_v4   ;;  %2432 = vperm.xlu0 %5206, %v2268_v8   ;;  %v9255_v8 = vld [vmem:[#allocation24_spill] sm:$0xff]  ;;  %v1486_v63 = vsel %vm1455_vm5, %v9256_v51, %v6652_v25  ;;  %v2278_v25 = vld [vmem:[%s8983_s5 + $0x128] sm:$0xff] }
 0x200   : > { %5024 = vmatprep.mubr.msk.f32.mxu0 %vm1577_vm7, %v1533_v57  ;;  %v1487_v5 = vsel %vm1455_vm5, %v9255_v8, %v6650_v14  ;;  %v2277_v14 = vld [vmem:[%s8983_s5 + $0x120] sm:$0xff] }
 0x201   : > { %5025 = vmatmul.mubr.msk.f32.gmra.mxu0 %vm1577_vm7, %v1534_v28  ;;  %v1344_v13 = vpop.permute.xlu1 %1343  ;;  %v1342_v55 = vpop.permute.xlu0 %1341  ;;  %v9257_v57 = vld [vmem:[#allocation26_spill] sm:$0xff] }
 0x202   : > { %v1536_v49 = vsel %vm1510_vm6, %v1481_v48, %v1344_v13  ;;  %v1535_v3 = vsel %vm1510_vm6, %v1480_v58, %v1342_v55  ;;  %v9259_v55 = vld [vmem:[#allocation28_spill] sm:$0xff] }
 0x203   : > { %2437 = vperm.xlu1 %5207, %v2269_v6   ;;  %2442 = vperm.xlu0 %5206, %v2270_v17   ;;  %v1489_v6 = vsel %vm1455_vm5, %v9257_v57, %v6658_v16  ;;  %v9258_v17 = vld [vmem:[#allocation23_spill] sm:$0xff]  ;;  %v2279_v16 = vld [vmem:[%s8983_s5 + $0x130] sm:$0xff] }
 0x204   : > { %5027 = vmatprep.mubr.msk.f32.mxu0 %vm1577_vm7, %v1535_v3  ;;  %v1488_v52 = vsel %vm1455_vm5, %v9258_v17, %v6660_v27  ;;  %v2280_v27 = vld [vmem:[%s8983_s5 + $0x138] sm:$0xff] }
 0x205   : > { %5028 = vmatmul.mubr.msk.f32.gmra.mxu0 %vm1577_vm7, %v1536_v49  ;;  %v1348_v45 = vpop.permute.xlu1 %1347  ;;  %v1346_v2 = vpop.permute.xlu0 %1345  ;;  %v1491_v49 = vsel %vm1455_vm5, %v9259_v55, %v6666_v18  ;;  %v9260_v3 = vld [vmem:[#allocation25_spill] sm:$0xff]  ;;  %v2281_v18 = vld [vmem:[%s8983_s5 + $0x140] sm:$0xff] }
 0x206   : > { %v1538_v15 = vsel %vm1510_vm6, %v1483_v1, %v1348_v45  ;;  %v1537_v61 = vsel %vm1510_vm6, %v1482_v43, %v1346_v2  ;;  %v9261_v43 = vld [vmem:[#allocation30_spill] sm:$0xff] }
 0x207   : > { %2447 = vperm.xlu1 %5207, %v2271_v12   ;;  %2452 = vperm.xlu0 %5206, %v2272_v19   ;;  %v1490_v12 = vsel %vm1455_vm5, %v9260_v3, %v6668_v29  ;;  %v2282_v29 = vld [vmem:[%s8983_s5 + $0x148] sm:$0xff]  ;;  %v1493_v45 = vsel %vm1455_vm5, %v9261_v43, %v6674_v20  ;;  %v9262_v2 = vld [vmem:[#allocation38_spill] sm:$0xff]  ;;  %v2283_v20 = vld [vmem:[%s8983_s5 + $0x150] sm:$0xff] }
 0x208   : > { %5030 = vmatprep.mubr.msk.f32.mxu0 %vm1577_vm7, %v1537_v61 }
 0x209   : > { %5031 = vmatmul.mubr.msk.f32.gmra.mxu0 %vm1577_vm7, %v1538_v15  ;;  %v1352_v40 = vpop.permute.xlu1 %1351  ;;  %v1350_v56 = vpop.permute.xlu0 %1349  ;;  %v1492_v15 = vsel %vm1455_vm5, %v9262_v2, %v6676_v31  ;;  %v2284_v31 = vld [vmem:[%s8983_s5 + $0x158] sm:$0xff] }
 0x20a   : > { %v1540_v62 = vsel %vm1510_vm6, %v1485_v47, %v1352_v40  ;;  %v1539_v4 = vsel %vm1510_vm6, %v1484_v54, %v1350_v56  ;;  %v9263_v47 = vld [vmem:[#allocation27_spill] sm:$0xff] }
 0x20b   : > { %2457 = vperm.xlu1 %5207, %v2273_v9   ;;  %2462 = vperm.xlu0 %5206, %v2274_v21   ;;  %v1495_v53 = vsel %vm1455_vm5, %v9263_v47, %v6682_v22  ;;  %v9264_v54 = vld [vmem:[#allocation39_spill] sm:$0xff]  ;;  %v2285_v22 = vld [vmem:[%s8983_s5 + $0x160] sm:$0xff] }
 0x20c   : > { %5033 = vmatprep.mubr.msk.f32.mxu0 %vm1577_vm7, %v1539_v4  ;;  %v1494_v40 = vsel %vm1455_vm5, %v9264_v54, %v6684_v33  ;;  %v2286_v33 = vld [vmem:[%s8983_s5 + $0x168] sm:$0xff] }
 0x20d   : > { %5034 = vmatmul.mubr.msk.f32.gmra.mxu0 %vm1577_vm7, %v1540_v62  ;;  %v1356_v42 = vpop.permute.xlu1 %1355  ;;  %v1354_v41 = vpop.permute.xlu0 %1353 }
 0x20e   : > { %v1542_v0 = vsel %vm1510_vm6, %v1487_v5, %v1356_v42  ;;  %v1541_v28 = vsel %vm1510_vm6, %v1486_v63, %v1354_v41  ;;  %v9266_v5 = vld [vmem:[#allocation40_spill] sm:$0xff] }
 0x20f   : > { %2467 = vperm.xlu1 %5207, %v2275_v11   ;;  %2472 = vperm.xlu0 %5206, %v2276_v23   ;;  %v9265_v23 = vld [vmem:[#allocation32_spill] sm:$0xff]  ;;  %v1496_v51 = vsel %vm1455_vm5, %v9266_v5, %v6692_v46  ;;  %v2288_v46 = vld [vmem:[%s8983_s5 + $0x178] sm:$0xff] }
 0x210   : > { %5036 = vmatprep.mubr.msk.f32.mxu0 %vm1577_vm7, %v1541_v28  ;;  %v1497_v8 = vsel %vm1455_vm5, %v9265_v23, %v6690_v24  ;;  %v2287_v24 = vld [vmem:[%s8983_s5 + $0x170] sm:$0xff]  ;;  %v9267_v28 = vld [vmem:[#allocation41_spill] sm:$0xff] }
 0x211   : > { %5037 = vmatmul.mubr.msk.f32.gmra.mxu0 %vm1577_vm7, %v1542_v0  ;;  %v1360_v48 = vpop.permute.xlu1 %1359  ;;  %v1358_v50 = vpop.permute.xlu0 %1357 }
 0x212   : > { %v1544_v58 = vsel %vm1510_vm6, %v1489_v6, %v1360_v48  ;;  %v1543_v13 = vsel %vm1510_vm6, %v1488_v52, %v1358_v50  ;;  %v9269_v50 = vld [vmem:[#allocation43_spill] sm:$0xff] }
 0x213   : > { %2477 = vperm.xlu1 %5207, %v2277_v14   ;;  %2482 = vperm.xlu0 %5206, %v2278_v25   ;;  %v1499_v14 = vsel %vm1455_vm5, %v9267_v28, %v6698_v26  ;;  %v9268_v25 = vld [vmem:[#allocation34_spill] sm:$0xff] }
 0x214   : > { %5039 = vmatprep.mubr.msk.f32.mxu0 %vm1577_vm7, %v1543_v13  ;;  %v1498_v57 = vsel %vm1455_vm5, %v9268_v25, %v6700_v59  ;;  %v2289_v26 = vld [vmem:[%s8983_s5 + $0x180] sm:$0xff]  ;;  %v2290_v59 = vld [vmem:[%s8983_s5 + $0x188] sm:$0xff]  ;;  %v9270_v13 = vld [vmem:[#allocation36_spill] sm:$0xff] }
 0x215   : > { %5040 = vmatmul.mubr.msk.f32.gmra.mxu0 %vm1577_vm7, %v1544_v58  ;;  %v1364_v19 = vpop.permute.xlu1 %1363  ;;  %v1362_v38 = vpop.permute.xlu0 %1361  ;;  %v1501_v58 = vsel %vm1455_vm5, %v9269_v50, %v6706_v60  ;;  %v2291_v60 = vld [vmem:[%s8983_s5 + $0x190] sm:$0xff] }
 0x216   : > { %v1546_v1 = vsel %vm1510_vm6, %v1491_v49, %v1364_v19  ;;  %v1545_v30 = vsel %vm1510_vm6, %v1490_v12, %v1362_v38  ;;  %v9271_v12 = vld [vmem:[#allocation45_spill] sm:$0xff] }
 0x217   : > { %2487 = vperm.xlu1 %5207, %v2279_v16   ;;  %2492 = vperm.xlu0 %5206, %v2280_v27   ;;  %v1500_v16 = vsel %vm1455_vm5, %v9270_v13, %v6708_v35  ;;  %v2292_v35 = vld [vmem:[%s8983_s5 + $0x198] sm:$0xff]  ;;  %v1503_v19 = vsel %vm1455_vm5, %v9271_v12, %v6714_v37  ;;  %v2293_v37 = vld [vmem:[%s8983_s5 + $0x1a0] sm:$0xff] }
 0x218   : > { %5042 = vmatprep.mubr.msk.f32.mxu0 %vm1577_vm7, %v1545_v30  ;;  %v9272_v38 = vld [vmem:[#allocation37_spill] sm:$0xff] }
 0x219   : > { %5043 = vmatmul.mubr.msk.f32.gmra.mxu0 %vm1577_vm7, %v1546_v1  ;;  %v1368_v61 = vpop.permute.xlu1 %1367  ;;  %v1366_v9 = vpop.permute.xlu0 %1365  ;;  %v1502_v1 = vsel %vm1455_vm5, %v9272_v38, %v6716_v32  ;;  %v2294_v32 = vld [vmem:[%s8983_s5 + $0x1a8] sm:$0xff] }
 0x21a   : > { %v1548_v21 = vsel %vm1510_vm6, %v1493_v45, %v1368_v61  ;;  %v1547_v10 = vsel %vm1510_vm6, %v1492_v15, %v1366_v9  ;;  %v9273_v45 = vld [vmem:[#allocation47_spill] sm:$0xff]  ;;  %v9274_v15 = vld [vmem:[#allocation48_spill] sm:$0xff] }
 0x21b   : > { %2497 = vperm.xlu1 %5207, %v2281_v18   ;;  %2502 = vperm.xlu0 %5206, %v2282_v29   ;;  %v1505_v2 = vsel %vm1455_vm5, %v9273_v45, %v6722_v39  ;;  %v1504_v61 = vsel %vm1455_vm5, %v9274_v15, %v6724_v7  ;;  %v1507_v39 = vsel %vm1455_vm5, %v6477_v34, %v6741_v36  ;;  %v9279_v34 = vld [vmem:[#allocation51_spill] sm:$0xff] }
 0x21c   : > { %5045 = vmatprep.mubr.msk.f32.mxu0 %vm1577_vm7, %v1547_v10 }
 0x21d   : > { %5046 = vmatmul.mubr.msk.f32.gmra.mxu0 %vm1577_vm7, %v1548_v21  ;;  %v1372_v56 = vpop.permute.xlu1 %1371  ;;  %v1370_v62 = vpop.permute.xlu0 %1369 }
 0x21e   : > { %v1550_v4 = vsel %vm1510_vm6, %v1495_v53, %v1372_v56  ;;  %v1549_v11 = vsel %vm1510_vm6, %v1494_v40, %v1370_v62  ;;  %v9276_v56 = vld [vmem:[#allocation52_spill] sm:$0xff]  ;;  %v9277_v62 = vld [vmem:[#allocation50_spill] sm:$0xff] }
 0x21f   : > { %2507 = vperm.xlu1 %5207, %v2283_v20   ;;  %2512 = vperm.xlu0 %5206, %v2284_v31   ;;  %v9275_v31 = vld [vmem:[#allocation49_spill] sm:$0xff] }
 0x220   : > { %5048 = vmatprep.mubr.msk.f32.mxu0 %vm1577_vm7, %v1549_v11  ;;  %v1506_v7 = vsel %vm1455_vm5, %v9275_v31, %v6743_v44  ;;  %v9278_v11 = vld [vmem:[#allocation42_spill] sm:$0xff] }
 0x221   : > { %5049 = vmatmul.mubr.msk.f32.gmra.mxu0 %vm1577_vm7, %v1550_v4  ;;  %v1376_v63 = vpop.permute.xlu1 %1375  ;;  %v1374_v42 = vpop.permute.xlu0 %1373  ;;  %v1509_v4 = vsel %vm1455_vm5, %v9277_v62, %v9276_v56  ;;  %v1508_v36 = vsel %vm1455_vm5, %v9279_v34, %v9278_v11 }
 0x222   : > { %v1552_v41 = vsel %vm1510_vm6, %v1497_v8, %v1376_v63  ;;  %v1551_v0 = vsel %vm1510_vm6, %v1496_v51, %v1374_v42 }
 0x223   : > { %2517 = vperm.xlu1 %5207, %v2285_v22   ;;  %2522 = vperm.xlu0 %5206, %v2286_v33  }
 0x224   : > { %5051 = vmatprep.mubr.msk.f32.mxu0 %vm1577_vm7, %v1551_v0 }
 0x225   : > { %5052 = vmatmul.mubr.msk.f32.gmra.mxu0 %vm1577_vm7, %v1552_v41  ;;  %v1380_v6 = vpop.permute.xlu1 %1379  ;;  %v1378_v17 = vpop.permute.xlu0 %1377 }
 0x226   : > { %v1554_v52 = vsel %vm1510_vm6, %v1499_v14, %v1380_v6  ;;  %v1553_v48 = vsel %vm1510_vm6, %v1498_v57, %v1378_v17 }
 0x227   : > { %2527 = vperm.xlu1 %5207, %v2287_v24   ;;  %2532 = vperm.xlu0 %5206, %v2288_v46  }
 0x228   : > { %5054 = vmatprep.mubr.msk.f32.mxu0 %vm1577_vm7, %v1553_v48  ;;  %v5239_v48 = vmov 0.0  }
 0x229   : > { %5055 = vmatmul.mubr.msk.f32.gmra.mxu0 %vm1577_vm7, %v1554_v52  ;;  %v1384_v27 = vpop.permute.xlu1 %1383  ;;  %v1382_v55 = vpop.permute.xlu0 %1381  ;;  %2619 = vst.msk [vmem:[#allocation2] sm:$0xff] %vm748_vm1, %v5239_v48  ;;  %2620 = vst.msk [vmem:[#allocation2 + $0x8] sm:$0xff] %vm748_vm1, %v5239_v48 }
 0x22a   : > { %v1556_v49 = vsel %vm1510_vm6, %v1501_v58, %v1384_v27  ;;  %v1555_v3 = vsel %vm1510_vm6, %v1500_v16, %v1382_v55  ;;  %2621 = vst.msk [vmem:[#allocation2 + $0x10] sm:$0xff] %vm748_vm1, %v5239_v48  ;;  %2622 = vst.msk [vmem:[#allocation2 + $0x1c8] sm:$0xff] %vm748_vm1, %v5239_v48 }
 0x22b   : > { %2537 = vperm.xlu1 %5207, %v2289_v26   ;;  %2542 = vperm.xlu0 %5206, %v2290_v59   ;;  %2623 = vst.msk [vmem:[#allocation2 + $0x1d0] sm:$0xff] %vm748_vm1, %v5239_v48  ;;  %2624 = vst.msk [vmem:[#allocation2 + $0x1d8] sm:$0xff] %vm748_vm1, %v5239_v48  ;;  %v7208_v26 = vld [vmem:[%s8980_s2] ss:$0 sm:$0xff] }
 0x22c   : > { %5057 = vmatprep.mubr.msk.f32.mxu0 %vm1577_vm7, %v1555_v3 }
 0x22d   : > { %5058 = vmatmul.mubr.msk.f32.gmra.mxu0 %vm1577_vm7, %v1556_v49  ;;  %v1388_v30 = vpop.permute.xlu1 %1387  ;;  %v1386_v18 = vpop.permute.xlu0 %1385 }
 0x22e   : > { %v1558_v29 = vsel %vm1510_vm6, %v1503_v19, %v1388_v30  ;;  %v1557_v43 = vsel %vm1510_vm6, %v1502_v1, %v1386_v18 }
 0x22f   : > { %2547 = vperm.xlu1 %5207, %v2291_v60   ;;  %2552 = vperm.xlu0 %5206, %v2292_v35  }
 0x230   : > { %5060 = vmatprep.mubr.msk.f32.mxu0 %vm1577_vm7, %v1557_v43 }
 0x231   : > { %5061 = vmatmul.mubr.msk.f32.gmra.mxu0 %vm1577_vm7, %v1558_v29  ;;  %v1392_v9 = vpop.permute.xlu1 %1391  ;;  %v1390_v21 = vpop.permute.xlu0 %1389 }
 0x232   : > { %v1560_v10 = vsel %vm1510_vm6, %v1505_v2, %v1392_v9  ;;  %v1559_v20 = vsel %vm1510_vm6, %v1504_v61, %v1390_v21 }
 0x233   : > { %2557 = vperm.xlu1 %5207, %v2293_v37   ;;  %2562 = vperm.xlu0 %5206, %v2294_v32  }
 0x234   : > { %5063 = vmatprep.mubr.msk.f32.mxu0 %vm1577_vm7, %v1559_v20 }
 0x235   : > { %5064 = vmatmul.mubr.msk.f32.gmra.mxu0 %vm1577_vm7, %v1560_v10  ;;  %v1396_v47 = vpop.permute.xlu1 %1395  ;;  %v1394_v53 = vpop.permute.xlu0 %1393 }
 0x236   : > { %v1562_v54 = vsel %vm1510_vm6, %v1507_v39, %v1396_v47  ;;  %v1561_v40 = vsel %vm1510_vm6, %v1506_v7, %v1394_v53 }
 0x237   : > { %5066 = vmatprep.mubr.msk.f32.mxu0 %vm1577_vm7, %v1561_v40 }
 0x239   : > { %5067 = vmatmul.mubr.msk.f32.gmra.mxu0 %vm1577_vm7, %v1562_v54  ;;  %v1400_v44 = vpop.permute.xlu1 %1399  ;;  %v1398_v22 = vpop.permute.xlu0 %1397 }
 0x23a   : > { %v1564_v33 = vsel %vm1510_vm6, %v1509_v4, %v1400_v44  ;;  %v1563_v23 = vsel %vm1510_vm6, %v1508_v36, %v1398_v22 }
 0x23b   : > { %5069 = vmatprep.mubr.msk.f32.mxu0 %vm1577_vm7, %v1563_v23 }
 0x23d   : > { %5070 = vmatmul.mubr.msk.f32.gmra.mxu0 %vm1577_vm7, %v1564_v33 }
 0x246   : > { %v2298_v8 = vpop.permute.xlu0 %2297  ;;  %v2303_v5 = vpop.permute.xlu1 %2302 }
 0x24a   : > { %v2313_v51 = vpop.permute.xlu0 %2312  ;;  %v2308_v63 = vpop.permute.xlu1 %2307 }
 0x24e   : > { %v7175_v42 = vpop.permute.xlu0 %2322  ;;  %v7177_v41 = vpop.permute.xlu1 %2317 }
 0x252   : > { %v7179_v0 = vpop.permute.xlu0 %2332  ;;  %v7181_v24 = vpop.permute.xlu1 %2327 }
 0x256   : > { %v7183_v46 = vpop.permute.xlu0 %2342  ;;  %v7185_v28 = vpop.permute.xlu1 %2337 }
 0x25a   : > { %v7187_v14 = vpop.permute.xlu0 %2352  ;;  %v7189_v25 = vpop.permute.xlu1 %2347 }
 0x25e   : > { %v7191_v57 = vpop.permute.xlu0 %2362  ;;  %v7193_v6 = vpop.permute.xlu1 %2357 }
 0x262   : > { %v7195_v17 = vpop.permute.xlu0 %2372  ;;  %v7197_v52 = vpop.permute.xlu1 %2367 }
 0x266   : > { %v7210_v50 = vpop.permute.xlu0 %2382  ;;  %v7213_v16 = vpop.permute.xlu1 %2377 }
 0x26a   : > { %v7217_v38 = vpop.permute.xlu0 %2392  ;;  %v7221_v37 = vpop.permute.xlu1 %2387 }
 0x26e   : > { %v7227_v31 = vpop.permute.xlu0 %2402  ;;  %v7232_v56 = vpop.permute.xlu1 %2397 }
 0x295   : > { %v4993_v59 = vpop.f32.mrf.mxu0 }
 0x296   : > { %v1816_v58 = vadd.f32 %v4993_v59, %v7208_v26 }
 0x297   : > { %v1810_v13 = vpop.f32.mrf.mxu0 }
 0x298   : > { %vm2080_vm8 = vcmp.ge.f32.partialorder %v1816_v58, 0.0  ;;  %v2134_v27 = vmul.f32 0.2, %v1816_v58  ;;  %v1811_v55 = vadd.f32 %v7208_v26, %v1810_v13 }
 0x299   : > { %v4996_v49 = vpop.f32.mrf.mxu0 }
 0x29a   : > { %v2188_v3 = vsel %vm2080_vm8, %v1816_v58, %v2134_v27  ;;  %vm2079_vm9 = vcmp.ge.f32.partialorder %v1811_v55, 0.0  ;;  %v2133_v60 = vmul.f32 0.2, %v1811_v55  ;;  %v1826_v35 = vadd.f32 %v4996_v49, %v7208_v26  ;;  %v7249_v58 = vpop.permute.xlu1 %2407 }
 0x29b   : > { %v2566_v12 = vmul.f32 %v2303_v5, %v2188_v3  ;;  %v1820_v19 = vpop.f32.mrf.mxu0 }
 0x29c   : > { %v2187_v1 = vsel %vm2079_vm9, %v1811_v55, %v2133_v60  ;;  %vm2082_vm10 = vcmp.ge.f32.partialorder %v1826_v35, 0.0  ;;  %v2136_v30 = vmul.f32 0.2, %v1826_v35  ;;  %v1821_v18 = vadd.f32 %v7208_v26, %v1820_v19 }
 0x29d   : > { %2626 = vst.msk [vmem:[#allocation2 + $0x20] sm:$0xff] %vm748_vm1, %v2566_v12  ;;  %v2565_v29 = vmul.f32 %v2298_v8, %v2187_v1  ;;  %v4999_v43 = vpop.f32.mrf.mxu0 }
 0x29e   : > { %v2190_v32 = vsel %vm2082_vm10, %v1826_v35, %v2136_v30  ;;  %vm2081_vm11 = vcmp.ge.f32.partialorder %v1821_v18, 0.0  ;;  %v2135_v45 = vmul.f32 0.2, %v1821_v18  ;;  %v1836_v2 = vadd.f32 %v4999_v43, %v7208_v26 }
 0x29f   : > { %2625 = vst.msk [vmem:[#allocation2 + $0x18] sm:$0xff] %vm748_vm1, %v2565_v29  ;;  %v2568_v15 = vmul.f32 %v2313_v51, %v2190_v32  ;;  %v1830_v61 = vpop.f32.mrf.mxu0  ;;  %v7244_v51 = vpop.permute.xlu0 %2412 }
 0x2a0   : > { %v2189_v9 = vsel %vm2081_vm11, %v1821_v18, %v2135_v45  ;;  %vm2084_vm12 = vcmp.ge.f32.partialorder %v1836_v2, 0.0  ;;  %v2138_v21 = vmul.f32 0.2, %v1836_v2  ;;  %v1831_v10 = vadd.f32 %v7208_v26, %v1830_v61 }
 0x2a1   : > { %2628 = vst.msk [vmem:[#allocation2 + $0x30] sm:$0xff] %vm748_vm1, %v2568_v15  ;;  %v2567_v20 = vmul.f32 %v2308_v63, %v2189_v9  ;;  %v5002_v39 = vpop.f32.mrf.mxu0 }
 0x2a2   : > { %v2192_v7 = vsel %vm2084_vm12, %v1836_v2, %v2138_v21  ;;  %vm2083_vm13 = vcmp.ge.f32.partialorder %v1831_v10, 0.0  ;;  %v2137_v47 = vmul.f32 0.2, %v1831_v10  ;;  %v1846_v53 = vadd.f32 %v5002_v39, %v7208_v26 }
 0x2a3   : > { %2627 = vst.msk [vmem:[#allocation2 + $0x28] sm:$0xff] %vm748_vm1, %v2567_v20  ;;  %v2570_v54 = vmul.f32 %v7175_v42, %v2192_v7  ;;  %v1840_v40 = vpop.f32.mrf.mxu0  ;;  %v7265_v30 = vpop.permute.xlu0 %2422 }
 0x2a4   : > { %v2191_v62 = vsel %vm2083_vm13, %v1831_v10, %v2137_v47  ;;  %vm2086_vm14 = vcmp.ge.f32.partialorder %v1846_v53, 0.0  ;;  %v2140_v4 = vmul.f32 0.2, %v1846_v53  ;;  %v1841_v11 = vadd.f32 %v7208_v26, %v1840_v40 }
 0x2a5   : > { %2630 = vst.msk [vmem:[#allocation2 + $0x40] sm:$0xff] %vm748_vm1, %v2570_v54  ;;  %v2569_v34 = vmul.f32 %v7177_v41, %v2191_v62  ;;  %v5005_v36 = vpop.f32.mrf.mxu0 }
 0x2a6   : > { %v2194_v44 = vsel %vm2086_vm14, %v1846_v53, %v2140_v4  ;;  %vm2085_vm15 = vcmp.ge.f32.partialorder %v1841_v11, 0.0  ;;  %v2139_v22 = vmul.f32 0.2, %v1841_v11  ;;  %v1856_v33 = vadd.f32 %v5005_v36, %v7208_v26  ;;  %v7238_v23 = vld [vmem:[#allocation2 + $0x18] sm:$0xff] }
 0x2a7   : > { %2629 = vst.msk [vmem:[#allocation2 + $0x38] sm:$0xff] %vm748_vm1, %v2569_v34  ;;  %v2572_v8 = vmul.f32 %v7179_v0, %v2194_v44  ;;  %v1850_v5 = vpop.f32.mrf.mxu0  ;;  %2793 = vrot.lane.b32.xlu1 %v7238_v23, %s5235_s28  ;;  %v7288_v40 = vpop.permute.xlu0 %2432 }
 0x2a8   : > { %v2193_v63 = vsel %vm2085_vm15, %v1841_v11, %v2139_v22  ;;  %vm2088_vm0 = vcmp.ge.f32.partialorder %v1856_v33, 0.0  ;;  %v2142_v42 = vmul.f32 0.2, %v1856_v33  ;;  %v1851_v41 = vadd.f32 %v7208_v26, %v1850_v5  ;;  %v7254_v49 = vld [vmem:[#allocation2 + $0x30] sm:$0xff] }
 0x2a9   : > { %2632 = vst.msk [vmem:[#allocation2 + $0x50] sm:$0xff] %vm748_vm1, %v2572_v8  ;;  %v2571_v48 = vmul.f32 %v7181_v24, %v2193_v63  ;;  %v5008_v59 = vpop.f32.mrf.mxu0 }
 0x2aa   : > { %v2196_v13 = vsel %vm2088_vm0, %v1856_v33, %v2142_v42  ;;  %vm2087_vm4 = vcmp.ge.f32.partialorder %v1851_v41, 0.0  ;;  %v2141_v0 = vmul.f32 0.2, %v1851_v41  ;;  %v1866_v27 = vadd.f32 %v5008_v59, %v7208_v26  ;;  %v7252_v55 = vld [vmem:[#allocation2 + $0x28] sm:$0xff] }
 0x2ab   : > { %2631 = vst.msk [vmem:[#allocation2 + $0x48] sm:$0xff] %vm748_vm1, %v2571_v48  ;;  %v2574_v3 = vmul.f32 %v7183_v46, %v2196_v13  ;;  %v1860_v60 = vpop.f32.mrf.mxu0  ;;  %2797 = vrot.lane.b32.xlu0 %v7252_v55, %s5235_s28  ;;  %2799 = vrot.lane.b32.xlu1 %v7254_v49, %s5235_s28  ;;  %v7304_v48 = vpop.permute.xlu0 %2442 }
 0x2ac   : > { %v2195_v24 = vsel %vm2087_vm4, %v1851_v41, %v2141_v0  ;;  %vm2090_vm5 = vcmp.ge.f32.partialorder %v1866_v27, 0.0  ;;  %v2144_v35 = vmul.f32 0.2, %v1866_v27  ;;  %v1861_v12 = vadd.f32 %v7208_v26, %v1860_v60  ;;  %v7270_v32 = vld [vmem:[#allocation2 + $0x40] sm:$0xff] }
 0x2ad   : > { %2634 = vst.msk [vmem:[#allocation2 + $0x60] sm:$0xff] %vm748_vm1, %v2574_v3  ;;  %v2573_v19 = vmul.f32 %v7185_v28, %v2195_v24  ;;  %v5011_v1 = vpop.f32.mrf.mxu0  ;;  %v7278_v28 = vpop.permute.xlu1 %2417 }
 0x2ae   : > { %v2198_v46 = vsel %vm2090_vm5, %v1866_v27, %v2144_v35  ;;  %vm2089_vm7 = vcmp.ge.f32.partialorder %v1861_v12, 0.0  ;;  %v2143_v18 = vmul.f32 0.2, %v1861_v12  ;;  %v1876_v29 = vadd.f32 %v5011_v1, %v7208_v26  ;;  %v7268_v43 = vld [vmem:[#allocation2 + $0x38] sm:$0xff] }
 0x2af   : > { %2633 = vst.msk [vmem:[#allocation2 + $0x58] sm:$0xff] %vm748_vm1, %v2573_v19  ;;  %v2576_v45 = vmul.f32 %v7187_v14, %v2198_v46  ;;  %v1870_v2 = vpop.f32.mrf.mxu0  ;;  %2801 = vrot.lane.b32.xlu0 %v7268_v43, %s5235_s28  ;;  %2962 = vrot.lane.b32.xlu1 %v7270_v32, %s5240_s30 }
 0x2b0   : > { %v2197_v15 = vsel %vm2089_vm7, %v1861_v12, %v2143_v18  ;;  %vm2092_vm8 = vcmp.ge.f32.partialorder %v1876_v29, 0.0  ;;  %v2146_v61 = vmul.f32 0.2, %v1876_v29  ;;  %v1871_v9 = vadd.f32 %v7208_v26, %v1870_v2  ;;  %v2689_v47 = vld [vmem:[#allocation2 + $0x50] sm:$0xff]  ;;  %v7328_v2 = vpop.permute.xlu0 %2452 }
 0x2b1   : > { %2636 = vst.msk [vmem:[#allocation2 + $0x70] sm:$0xff] %vm748_vm1, %v2576_v45  ;;  %v2575_v21 = vmul.f32 %v7189_v25, %v2197_v15  ;;  %v5014_v14 = vpop.f32.mrf.mxu0  ;;  %v7293_v36 = vpop.permute.xlu1 %2427 }
 0x2b2   : > { %v2200_v10 = vsel %vm2092_vm8, %v1876_v29, %v2146_v61  ;;  %vm2091_vm9 = vcmp.ge.f32.partialorder %v1871_v9, 0.0  ;;  %v2145_v20 = vmul.f32 0.2, %v1871_v9  ;;  %v1886_v39 = vadd.f32 %v5014_v14, %v7208_v26  ;;  %v2688_v7 = vld [vmem:[#allocation2 + $0x48] sm:$0xff] }
 0x2b3   : > { %2635 = vst.msk [vmem:[#allocation2 + $0x68] sm:$0xff] %vm748_vm1, %v2575_v21  ;;  %v2578_v53 = vmul.f32 %v7191_v57, %v2200_v10  ;;  %v1880_v54 = vpop.f32.mrf.mxu0  ;;  %2964 = vrot.lane.b32.xlu0 %v2688_v7, %s5240_s30  ;;  %2966 = vrot.lane.b32.xlu1 %v2689_v47, %s5240_s30 }
 0x2b4   : > { %v2199_v25 = vsel %vm2091_vm9, %v1871_v9, %v2145_v20  ;;  %vm2094_vm10 = vcmp.ge.f32.partialorder %v1886_v39, 0.0  ;;  %v2148_v62 = vmul.f32 0.2, %v1886_v39  ;;  %v1881_v4 = vadd.f32 %v7208_v26, %v1880_v54  ;;  %v7309_v27 = vld [vmem:[#allocation2 + $0x60] sm:$0xff] }
 0x2b5   : > { %2638 = vst.msk [vmem:[#allocation2 + $0x80] sm:$0xff] %vm748_vm1, %v2578_v53  ;;  %v2577_v11 = vmul.f32 %v7193_v6, %v2199_v25  ;;  %v5017_v34 = vpop.f32.mrf.mxu0 }
 0x2b6   : > { %v2202_v57 = vsel %vm2094_vm10, %v1886_v39, %v2148_v62  ;;  %vm2093_vm11 = vcmp.ge.f32.partialorder %v1881_v4, 0.0  ;;  %v2147_v44 = vmul.f32 0.2, %v1881_v4  ;;  %v1896_v22 = vadd.f32 %v5017_v34, %v7208_v26  ;;  %v7307_v0 = vld [vmem:[#allocation2 + $0x58] sm:$0xff] }
 0x2b7   : > { %2637 = vst.msk [vmem:[#allocation2 + $0x78] sm:$0xff] %vm748_vm1, %v2577_v11  ;;  %v2580_v33 = vmul.f32 %v7195_v17, %v2202_v57  ;;  %v1890_v8 = vpop.f32.mrf.mxu0  ;;  %2803 = vrot.lane.b32.xlu0 %v7270_v32, %s5235_s28  ;;  %2805 = vrot.lane.b32.xlu1 %v2688_v7, %s5235_s28  ;;  %v7346_v11 = vpop.permute.xlu0 %2462 }
 0x2b8   : > { %v2201_v5 = vsel %vm2093_vm11, %v1881_v4, %v2147_v44  ;;  %vm2096_vm12 = vcmp.ge.f32.partialorder %v1896_v22, 0.0  ;;  %v2150_v6 = vmul.f32 0.2, %v1896_v22  ;;  %v1891_v63 = vadd.f32 %v7208_v26, %v1890_v8  ;;  %v2693_v7 = vld [vmem:[#allocation2 + $0x70] sm:$0xff] }
 0x2b9   : > { %2640 = vst.msk [vmem:[#allocation2 + $0x90] sm:$0xff] %vm748_vm1, %v2580_v33  ;;  %v2579_v42 = vmul.f32 %v7197_v52, %v2201_v5  ;;  %v5020_v41 = vpop.f32.mrf.mxu0  ;;  %v7317_v52 = vpop.permute.xlu1 %2437 }
 0x2ba   : > { %v2204_v59 = vsel %vm2096_vm12, %v1896_v22, %v2150_v6  ;;  %vm2095_vm13 = vcmp.ge.f32.partialorder %v1891_v63, 0.0  ;;  %v2149_v17 = vmul.f32 0.2, %v1891_v63  ;;  %v1906_v13 = vadd.f32 %v5020_v41, %v7208_v26  ;;  %v7336_v39 = vld [vmem:[#allocation2 + $0x68] sm:$0xff] }
 0x2bb   : > { %2639 = vst.msk [vmem:[#allocation2 + $0x88] sm:$0xff] %vm748_vm1, %v2579_v42  ;;  %v2582_v3 = vmul.f32 %v7210_v50, %v2204_v59  ;;  %v1900_v60 = vpop.f32.mrf.mxu0  ;;  %2968 = vrot.lane.b32.xlu0 %v7307_v0, %s5240_s30  ;;  %2970 = vrot.lane.b32.xlu1 %v7309_v27, %s5240_s30 }
 0x2bc   : > { %v2203_v24 = vsel %vm2095_vm13, %v1891_v63, %v2149_v17  ;;  %vm2098_vm14 = vcmp.ge.f32.partialorder %v1906_v13, 0.0  ;;  %v2152_v35 = vmul.f32 0.2, %v1906_v13  ;;  %v1901_v12 = vadd.f32 %v7208_v26, %v1900_v60  ;;  %v2695_v17 = vld [vmem:[#allocation2 + $0x80] sm:$0xff]  ;;  %v7365_v60 = vpop.permute.xlu0 %2472 }
 0x2bd   : > { %2642 = vst.msk [vmem:[#allocation2 + $0xa0] sm:$0xff] %vm748_vm1, %v2582_v3  ;;  %v2581_v19 = vmul.f32 %v7213_v16, %v2203_v24  ;;  %v5023_v1 = vpop.f32.mrf.mxu0  ;;  %v7333_v14 = vpop.permute.xlu1 %2447 }
 0x2be   : > { %v2206_v50 = vsel %vm2098_vm14, %v1906_v13, %v2152_v35  ;;  %vm2097_vm15 = vcmp.ge.f32.partialorder %v1901_v12, 0.0  ;;  %v2151_v46 = vmul.f32 0.2, %v1901_v12  ;;  %v1916_v18 = vadd.f32 %v5023_v1, %v7208_v26  ;;  %v2694_v59 = vld [vmem:[#allocation2 + $0x78] sm:$0xff] }
 0x2bf   : > { %2641 = vst.msk [vmem:[#allocation2 + $0x98] sm:$0xff] %vm748_vm1, %v2581_v19  ;;  %v2584_v29 = vmul.f32 %v7217_v38, %v2206_v50  ;;  %v1910_v45 = vpop.f32.mrf.mxu0  ;;  %2807 = vrot.lane.b32.xlu0 %v2689_v47, %s5235_s28  ;;  %2809 = vrot.lane.b32.xlu1 %v7307_v0, %s5235_s28 }
 0x2c0   : > { %v2205_v15 = vsel %vm2097_vm15, %v1901_v12, %v2151_v46  ;;  %vm2100_vm0 = vcmp.ge.f32.partialorder %v1916_v18, 0.0  ;;  %v2154_v16 = vmul.f32 0.2, %v1916_v18  ;;  %v1911_v61 = vadd.f32 %v7208_v26, %v1910_v45 }
 0x2c1   : > { %2644 = vst.msk [vmem:[#allocation2 + $0xb0] sm:$0xff] %vm748_vm1, %v2584_v29  ;;  %v2583_v9 = vmul.f32 %v7221_v37, %v2205_v15  ;;  %v5026_v21 = vpop.f32.mrf.mxu0 }
 0x2c2   : > { %v2208_v38 = vsel %vm2100_vm0, %v1916_v18, %v2154_v16  ;;  %vm2099_vm4 = vcmp.ge.f32.partialorder %v1911_v61, 0.0  ;;  %v2153_v10 = vmul.f32 0.2, %v1911_v61  ;;  %v1926_v20 = vadd.f32 %v5026_v21, %v7208_v26 }
 0x2c3   : > { %2643 = vst.msk [vmem:[#allocation2 + $0xa8] sm:$0xff] %vm748_vm1, %v2583_v9  ;;  %v2586_v47 = vmul.f32 %v7227_v31, %v2208_v38  ;;  %v1920_v53 = vpop.f32.mrf.mxu0  ;;  %2972 = vrot.lane.b32.xlu0 %v7336_v39, %s5240_s30  ;;  %2974 = vrot.lane.b32.xlu1 %v2693_v7, %s5240_s30  ;;  %v7380_v9 = vpop.permute.xlu0 %2482 }
 0x2c4   : > { %v2207_v37 = vsel %vm2099_vm4, %v1911_v61, %v2153_v10  ;;  %vm2102_vm5 = vcmp.ge.f32.partialorder %v1926_v20, 0.0  ;;  %v2156_v54 = vmul.f32 0.2, %v1926_v20  ;;  %v1921_v25 = vadd.f32 %v7208_v26, %v1920_v53  ;;  %v2696_v10 = vld [vmem:[#allocation2 + $0x88] sm:$0xff] }
 0x2c5   : > { %2646 = vst.msk [vmem:[#allocation2 + $0xc0] sm:$0xff] %vm748_vm1, %v2586_v47  ;;  %v2585_v62 = vmul.f32 %v7232_v56, %v2207_v37  ;;  %v5029_v4 = vpop.f32.mrf.mxu0  ;;  %v7355_v56 = vpop.permute.xlu1 %2457 }
 0x2c6   : > { %v2210_v34 = vsel %vm2102_vm5, %v1926_v20, %v2156_v54  ;;  %vm2101_vm7 = vcmp.ge.f32.partialorder %v1921_v25, 0.0  ;;  %v2155_v31 = vmul.f32 0.2, %v1921_v25  ;;  %v1936_v57 = vadd.f32 %v5029_v4, %v7208_v26  ;;  %v2697_v20 = vld [vmem:[#allocation2 + $0x90] sm:$0xff] }
 0x2c7   : > { %2645 = vst.msk [vmem:[#allocation2 + $0xb8] sm:$0xff] %vm748_vm1, %v2585_v62  ;;  %v2588_v44 = vmul.f32 %v7244_v51, %v2210_v34  ;;  %v1930_v22 = vpop.f32.mrf.mxu0  ;;  %2811 = vrot.lane.b32.xlu0 %v7309_v27, %s5235_s28  ;;  %2813 = vrot.lane.b32.xlu1 %v7336_v39, %s5235_s28 }
 0x2c8   : > { %v2209_v33 = vsel %vm2101_vm7, %v1921_v25, %v2155_v31  ;;  %vm2104_vm8 = vcmp.ge.f32.partialorder %v1936_v57, 0.0  ;;  %v2158_v8 = vmul.f32 0.2, %v1936_v57  ;;  %v1931_v5 = vadd.f32 %v7208_v26, %v1930_v22 }
 0x2c9   : > { %2648 = vst.msk [vmem:[#allocation2 + $0xd0] sm:$0xff] %vm748_vm1, %v2588_v44  ;;  %v2587_v6 = vmul.f32 %v7249_v58, %v2209_v33  ;;  %v5032_v63 = vpop.f32.mrf.mxu0  ;;  %v7370_v1 = vpop.permute.xlu1 %2467 }
 0x2ca   : > { %v2212_v51 = vsel %vm2104_vm8, %v1936_v57, %v2158_v8  ;;  %vm2103_vm9 = vcmp.ge.f32.partialorder %v1931_v5, 0.0  ;;  %v2157_v42 = vmul.f32 0.2, %v1931_v5  ;;  %v1946_v41 = vadd.f32 %v5032_v63, %v7208_v26  ;;  %v7397_v44 = vpop.permute.xlu0 %2492 }
 0x2cb   : > { %2647 = vst.msk [vmem:[#allocation2 + $0xc8] sm:$0xff] %vm748_vm1, %v2587_v6  ;;  %v2590_v13 = vmul.f32 %v7265_v30, %v2212_v51  ;;  %v1940_v3 = vpop.f32.mrf.mxu0  ;;  %2976 = vrot.lane.b32.xlu0 %v2694_v59, %s5240_s30  ;;  %2978 = vrot.lane.b32.xlu1 %v2695_v17, %s5240_s30 }
 0x2cc   : > { %v2211_v58 = vsel %vm2103_vm9, %v1931_v5, %v2157_v42  ;;  %vm2106_vm10 = vcmp.ge.f32.partialorder %v1946_v41, 0.0  ;;  %v2160_v24 = vmul.f32 0.2, %v1946_v41  ;;  %v1941_v35 = vadd.f32 %v7208_v26, %v1940_v3  ;;  %v2698_v42 = vld [vmem:[#allocation2 + $0x98] sm:$0xff] }
 0x2cd   : > { %2650 = vst.msk [vmem:[#allocation2 + $0xe0] sm:$0xff] %vm748_vm1, %v2590_v13  ;;  %v2589_v12 = vmul.f32 %v7278_v28, %v2211_v58  ;;  %v5035_v19 = vpop.f32.mrf.mxu0 }
 0x2ce   : > { %v2214_v30 = vsel %vm2106_vm10, %v1946_v41, %v2160_v24  ;;  %vm2105_vm11 = vcmp.ge.f32.partialorder %v1941_v35, 0.0  ;;  %v2159_v50 = vmul.f32 0.2, %v1941_v35  ;;  %v1956_v46 = vadd.f32 %v5035_v19, %v7208_v26  ;;  %v2699_v41 = vld [vmem:[#allocation2 + $0xa0] sm:$0xff] }
 0x2cf   : > { %2649 = vst.msk [vmem:[#allocation2 + $0xd8] sm:$0xff] %vm748_vm1, %v2589_v12  ;;  %v2592_v18 = vmul.f32 %v7288_v40, %v2214_v30  ;;  %v1950_v29 = vpop.f32.mrf.mxu0  ;;  %2815 = vrot.lane.b32.xlu0 %v2693_v7, %s5235_s28  ;;  %2817 = vrot.lane.b32.xlu1 %v2694_v59, %s5235_s28 }
 0x2d0   : > { %v2213_v45 = vsel %vm2105_vm11, %v1941_v35, %v2159_v50  ;;  %vm2108_vm12 = vcmp.ge.f32.partialorder %v1956_v46, 0.0  ;;  %v2162_v28 = vmul.f32 0.2, %v1956_v46  ;;  %v1951_v15 = vadd.f32 %v7208_v26, %v1950_v29  ;;  %v2503_v35 = vpop.permute.xlu0 %2502 }
 0x2d1   : > { %2652 = vst.msk [vmem:[#allocation2 + $0xf0] sm:$0xff] %vm748_vm1, %v2592_v18  ;;  %v2591_v16 = vmul.f32 %v7293_v36, %v2213_v45  ;;  %v5038_v61 = vpop.f32.mrf.mxu0  ;;  %v7387_v36 = vpop.permute.xlu1 %2477 }
 0x2d2   : > { %v2216_v21 = vsel %vm2108_vm12, %v1956_v46, %v2162_v28  ;;  %vm2107_vm13 = vcmp.ge.f32.partialorder %v1951_v15, 0.0  ;;  %v2161_v40 = vmul.f32 0.2, %v1951_v15  ;;  %v1966_v38 = vadd.f32 %v5038_v61, %v7208_v26  ;;  %v2700_v61 = vld [vmem:[#allocation2 + $0xa8] sm:$0xff] }
 0x2d3   : > { %2651 = vst.msk [vmem:[#allocation2 + $0xe8] sm:$0xff] %vm748_vm1, %v2591_v16  ;;  %v2594_v7 = vmul.f32 %v7304_v48, %v2216_v21  ;;  %v1960_v47 = vpop.f32.mrf.mxu0  ;;  %2980 = vrot.lane.b32.xlu0 %v2696_v10, %s5240_s30  ;;  %2982 = vrot.lane.b32.xlu1 %v2697_v20, %s5240_s30  ;;  %v2701_v21 = vld [vmem:[#allocation2 + $0xb0] sm:$0xff] }
 0x2d4   : > { %v2215_v53 = vsel %vm2107_vm13, %v1951_v15, %v2161_v40  ;;  %vm2110_vm14 = vcmp.ge.f32.partialorder %v1966_v38, 0.0  ;;  %v2164_v37 = vmul.f32 0.2, %v1966_v38  ;;  %v1961_v54 = vadd.f32 %v7208_v26, %v1960_v47 }
 0x2d5   : > { %2654 = vst.msk [vmem:[#allocation2 + $0x100] sm:$0xff] %vm748_vm1, %v2594_v7  ;;  %v2593_v25 = vmul.f32 %v7317_v52, %v2215_v53  ;;  %v5041_v62 = vpop.f32.mrf.mxu0  ;;  %v7402_v6 = vpop.permute.xlu1 %2487 }
 0x2d6   : > { %v2218_v4 = vsel %vm2110_vm14, %v1966_v38, %v2164_v37  ;;  %vm2109_vm15 = vcmp.ge.f32.partialorder %v1961_v54, 0.0  ;;  %v2163_v48 = vmul.f32 0.2, %v1961_v54  ;;  %v1976_v34 = vadd.f32 %v5041_v62, %v7208_v26 }
 0x2d7   : > { %2653 = vst.msk [vmem:[#allocation2 + $0xf8] sm:$0xff] %vm748_vm1, %v2593_v25  ;;  %v2596_v31 = vmul.f32 %v7328_v2, %v2218_v4  ;;  %v1970_v57 = vpop.f32.mrf.mxu0  ;;  %2819 = vrot.lane.b32.xlu0 %v2695_v17, %s5235_s28  ;;  %2821 = vrot.lane.b32.xlu1 %v2696_v10, %s5235_s28  ;;  %v2513_v10 = vpop.permute.xlu0 %2512 }
 0x2d8   : > { %v2217_v22 = vsel %vm2109_vm15, %v1961_v54, %v2163_v48  ;;  %vm2112_vm0 = vcmp.ge.f32.partialorder %v1976_v34, 0.0  ;;  %v2166_v52 = vmul.f32 0.2, %v1976_v34  ;;  %v1971_v33 = vadd.f32 %v7208_v26, %v1970_v57 }
 0x2d9   : > { %2656 = vst.msk [vmem:[#allocation2 + $0x110] sm:$0xff] %vm748_vm1, %v2596_v31  ;;  %v2595_v8 = vmul.f32 %v7333_v14, %v2217_v22  ;;  %v5044_v5 = vpop.f32.mrf.mxu0  ;;  %v2498_v46 = vpop.permute.xlu1 %2497 }
 0x2da   : > { %v2220_v2 = vsel %vm2112_vm0, %v1976_v34, %v2166_v52  ;;  %vm2111_vm4 = vcmp.ge.f32.partialorder %v1971_v33, 0.0  ;;  %v2165_v63 = vmul.f32 0.2, %v1971_v33  ;;  %v1986_v51 = vadd.f32 %v5044_v5, %v7208_v26  ;;  %v7439_v5 = vld [vmem:[#allocation2 + $0xc0] sm:$0xff] }
 0x2db   : > { %2655 = vst.msk [vmem:[#allocation2 + $0x108] sm:$0xff] %vm748_vm1, %v2595_v8  ;;  %v2598_v59 = vmul.f32 %v7346_v11, %v2220_v2  ;;  %v1980_v17 = vpop.f32.mrf.mxu0  ;;  %2984 = vrot.lane.b32.xlu0 %v2698_v42, %s5240_s30  ;;  %2986 = vrot.lane.b32.xlu1 %v2699_v41, %s5240_s30  ;;  %v2523_v22 = vpop.permute.xlu0 %2522  ;;  %v7437_v8 = vld [vmem:[#allocation2 + $0xb8] sm:$0xff] }
 0x2dc   : > { %v2219_v14 = vsel %vm2111_vm4, %v1971_v33, %v2165_v63  ;;  %vm2114_vm5 = vcmp.ge.f32.partialorder %v1986_v51, 0.0  ;;  %v2168_v13 = vmul.f32 0.2, %v1986_v51  ;;  %v1981_v3 = vadd.f32 %v7208_v26, %v1980_v17 }
 0x2dd   : > { %2658 = vst.msk [vmem:[#allocation2 + $0x120] sm:$0xff] %vm748_vm1, %v2598_v59  ;;  %v2597_v58 = vmul.f32 %v7355_v56, %v2219_v14  ;;  %v5047_v24 = vpop.f32.mrf.mxu0  ;;  %v2508_v37 = vpop.permute.xlu1 %2507 }
 0x2de   : > { %v2222_v12 = vsel %vm2114_vm5, %v1986_v51, %v2168_v13  ;;  %vm2113_vm7 = vcmp.ge.f32.partialorder %v1981_v3, 0.0  ;;  %v2167_v19 = vmul.f32 0.2, %v1981_v3  ;;  %v1996_v11 = vadd.f32 %v5047_v24, %v7208_v26 }
 0x2df   : > { %2657 = vst.msk [vmem:[#allocation2 + $0x118] sm:$0xff] %vm748_vm1, %v2597_v58  ;;  %v2600_v30 = vmul.f32 %v7365_v60, %v2222_v12  ;;  %v1990_v50 = vpop.f32.mrf.mxu0  ;;  %2823 = vrot.lane.b32.xlu0 %v2697_v20, %s5235_s28  ;;  %2825 = vrot.lane.b32.xlu1 %v2698_v42, %s5235_s28 }
 0x2e0   : > { %v2221_v18 = vsel %vm2113_vm7, %v1981_v3, %v2167_v19  ;;  %vm2116_vm8 = vcmp.ge.f32.partialorder %v1996_v11, 0.0  ;;  %v2170_v56 = vmul.f32 0.2, %v1996_v11  ;;  %v1991_v29 = vadd.f32 %v7208_v26, %v1990_v50 }
 0x2e1   : > { %2660 = vst.msk [vmem:[#allocation2 + $0x130] sm:$0xff] %vm748_vm1, %v2600_v30  ;;  %v2599_v45 = vmul.f32 %v7370_v1, %v2221_v18  ;;  %v5050_v28 = vpop.f32.mrf.mxu0 }
 0x2e2   : > { %v2224_v15 = vsel %vm2116_vm8, %v1996_v11, %v2170_v56  ;;  %vm2115_vm9 = vcmp.ge.f32.partialorder %v1991_v29, 0.0  ;;  %v2169_v16 = vmul.f32 0.2, %v1991_v29  ;;  %v2006_v60 = vadd.f32 %v5050_v28, %v7208_v26  ;;  %v7458_v28 = vld [vmem:[#allocation2 + $0xd0] sm:$0xff] }
 0x2e3   : > { %2659 = vst.msk [vmem:[#allocation2 + $0x128] sm:$0xff] %vm748_vm1, %v2599_v45  ;;  %v2602_v40 = vmul.f32 %v7380_v9, %v2224_v15  ;;  %v2000_v38 = vpop.f32.mrf.mxu0  ;;  %2988 = vrot.lane.b32.xlu0 %v2700_v61, %s5240_s30  ;;  %2990 = vrot.lane.b32.xlu1 %v2701_v21, %s5240_s30  ;;  %v7456_v45 = vld [vmem:[#allocation2 + $0xc8] sm:$0xff] }
 0x2e4   : > { %v2223_v20 = vsel %vm2115_vm9, %v1991_v29, %v2169_v16  ;;  %vm2118_vm10 = vcmp.ge.f32.partialorder %v2006_v60, 0.0  ;;  %v2172_v1 = vmul.f32 0.2, %v2006_v60  ;;  %v2001_v7 = vadd.f32 %v7208_v26, %v2000_v38 }
 0x2e5   : > { %2662 = vst.msk [vmem:[#allocation2 + $0x140] sm:$0xff] %vm748_vm1, %v2602_v40  ;;  %v2601_v47 = vmul.f32 %v7387_v36, %v2223_v20  ;;  %v5053_v53 = vpop.f32.mrf.mxu0 }
 0x2e6   : > { %v2226_v54 = vsel %vm2118_vm10, %v2006_v60, %v2172_v1  ;;  %vm2117_vm11 = vcmp.ge.f32.partialorder %v2001_v7, 0.0  ;;  %v2171_v9 = vmul.f32 0.2, %v2001_v7  ;;  %v2016_v25 = vadd.f32 %v5053_v53, %v7208_v26 }
 0x2e7   : > { %2661 = vst.msk [vmem:[#allocation2 + $0x138] sm:$0xff] %vm748_vm1, %v2601_v47  ;;  %v2604_v62 = vmul.f32 %v7397_v44, %v2226_v54  ;;  %v2010_v4 = vpop.f32.mrf.mxu0  ;;  %2827 = vrot.lane.b32.xlu0 %v2699_v41, %s5235_s28  ;;  %2829 = vrot.lane.b32.xlu1 %v2700_v61, %s5235_s28 }
 0x2e8   : > { %v2225_v48 = vsel %vm2117_vm11, %v2001_v7, %v2171_v9  ;;  %vm2120_vm12 = vcmp.ge.f32.partialorder %v2016_v25, 0.0  ;;  %v2174_v34 = vmul.f32 0.2, %v2016_v25  ;;  %v2011_v36 = vadd.f32 %v7208_v26, %v2010_v4 }
 0x2e9   : > { %2664 = vst.msk [vmem:[#allocation2 + $0x150] sm:$0xff] %vm748_vm1, %v2604_v62  ;;  %v2603_v31 = vmul.f32 %v7402_v6, %v2225_v48  ;;  %v5056_v57 = vpop.f32.mrf.mxu0  ;;  %v2518_v6 = vpop.permute.xlu1 %2517 }
 0x2ea   : > { %v2228_v52 = vsel %vm2120_vm12, %v2016_v25, %v2174_v34  ;;  %vm2119_vm13 = vcmp.ge.f32.partialorder %v2011_v36, 0.0  ;;  %v2173_v33 = vmul.f32 0.2, %v2011_v36  ;;  %v2026_v44 = vadd.f32 %v5056_v57, %v7208_v26  ;;  %v7478_v57 = vld [vmem:[#allocation2 + $0xe0] sm:$0xff] }
 0x2eb   : > { %2663 = vst.msk [vmem:[#allocation2 + $0x148] sm:$0xff] %vm748_vm1, %v2603_v31  ;;  %v2606_v2 = vmul.f32 %v2503_v35, %v2228_v52  ;;  %v2020_v63 = vpop.f32.mrf.mxu0  ;;  %2992 = vrot.lane.b32.xlu0 %v7437_v8, %s5240_s30  ;;  %2994 = vrot.lane.b32.xlu1 %v7439_v5, %s5240_s30  ;;  %v2533_v35 = vpop.permute.xlu0 %2532  ;;  %v7476_v31 = vld [vmem:[#allocation2 + $0xd8] sm:$0xff] }
 0x2ec   : > { %v2227_v51 = vsel %vm2119_vm13, %v2011_v36, %v2173_v33  ;;  %vm2122_vm14 = vcmp.ge.f32.partialorder %v2026_v44, 0.0  ;;  %v2176_v42 = vmul.f32 0.2, %v2026_v44  ;;  %v2021_v41 = vadd.f32 %v7208_v26, %v2020_v63 }
 0x2ed   : > { %2666 = vst.msk [vmem:[#allocation2 + $0x160] sm:$0xff] %vm748_vm1, %v2606_v2  ;;  %v2605_v59 = vmul.f32 %v2498_v46, %v2227_v51  ;;  %v5059_v17 = vpop.f32.mrf.mxu0  ;;  %v2528_v46 = vpop.permute.xlu1 %2527 }
 0x2ee   : > { %v2230_v14 = vsel %vm2122_vm14, %v2026_v44, %v2176_v42  ;;  %vm2121_vm15 = vcmp.ge.f32.partialorder %v2021_v41, 0.0  ;;  %v2175_v13 = vmul.f32 0.2, %v2021_v41  ;;  %v2036_v3 = vadd.f32 %v5059_v17, %v7208_v26 }
 0x2ef   : > { %2665 = vst.msk [vmem:[#allocation2 + $0x158] sm:$0xff] %vm748_vm1, %v2605_v59  ;;  %v2608_v58 = vmul.f32 %v2513_v10, %v2230_v14  ;;  %v2030_v24 = vpop.f32.mrf.mxu0  ;;  %2831 = vrot.lane.b32.xlu0 %v2701_v21, %s5235_s28  ;;  %2833 = vrot.lane.b32.xlu1 %v7437_v8, %s5235_s28  ;;  %v2543_v10 = vpop.permute.xlu0 %2542  ;;  %vm3174_vm14 = vcmask 130048  }
 0x2f0   : > { %v2229_v12 = vsel %vm2121_vm15, %v2021_v41, %v2175_v13  ;;  %vm2124_vm0 = vcmp.ge.f32.partialorder %v2036_v3, 0.0  ;;  %v2178_v19 = vmul.f32 0.2, %v2036_v3  ;;  %v2031_v11 = vadd.f32 %v7208_v26, %v2030_v24 }
 0x2f1   : > { %2668 = vst.msk [vmem:[#allocation2 + $0x170] sm:$0xff] %vm748_vm1, %v2608_v58  ;;  %v2607_v30 = vmul.f32 %v2508_v37, %v2229_v12  ;;  %v5062_v50 = vpop.f32.mrf.mxu0  ;;  %v2538_v37 = vpop.permute.xlu1 %2537  ;;  %vm3931_vm15 = vcmask 392192  }
 0x2f2   : > { %v2232_v18 = vsel %vm2124_vm0, %v2036_v3, %v2178_v19  ;;  %vm2123_vm4 = vcmp.ge.f32.partialorder %v2031_v11, 0.0  ;;  %v2177_v56 = vmul.f32 0.2, %v2031_v11  ;;  %v2046_v29 = vadd.f32 %v5062_v50, %v7208_v26  ;;  %v7497_v50 = vld [vmem:[#allocation2 + $0xf0] sm:$0xff] }
 0x2f3   : > { %2667 = vst.msk [vmem:[#allocation2 + $0x168] sm:$0xff] %vm748_vm1, %v2607_v30  ;;  %v2610_v15 = vmul.f32 %v2523_v22, %v2232_v18  ;;  %v2040_v16 = vpop.f32.mrf.mxu0  ;;  %2996 = vrot.lane.b32.xlu0 %v7456_v45, %s5240_s30  ;;  %2998 = vrot.lane.b32.xlu1 %v7458_v28, %s5240_s30  ;;  %v2553_v33 = vpop.permute.xlu0 %2552  ;;  %v7495_v30 = vld [vmem:[#allocation2 + $0xe8] sm:$0xff]  ;;  %vm4002_vm0 = vcmask 588800  }
 0x2f4   : > { %v2231_v60 = vsel %vm2123_vm4, %v2031_v11, %v2177_v56  ;;  %vm2126_vm5 = vcmp.ge.f32.partialorder %v2046_v29, 0.0  ;;  %v2180_v61 = vmul.f32 0.2, %v2046_v29  ;;  %v2041_v21 = vadd.f32 %v7208_v26, %v2040_v16  ;;  %v7522_v16 = vld [vmem:[#allocation2 + $0x108] sm:$0xff] }
 0x2f5   : > { %2670 = vst.msk [vmem:[#allocation2 + $0x180] sm:$0xff] %vm748_vm1, %v2610_v15  ;;  %v2609_v40 = vmul.f32 %v2518_v6, %v2231_v60  ;;  %v5065_v38 = vpop.f32.mrf.mxu0  ;;  %v2548_v42 = vpop.permute.xlu1 %2547  ;;  %v7512_v15 = vld [vmem:[#allocation2 + $0x100] sm:$0xff]  ;;  %9282 = vst [vmem:[#allocation31_spill] sm:$0xff] %v7522_v16  ;;  %v7524_v60 = vld [vmem:[#allocation2 + $0x110] sm:$0xff] }
 0x2f6   : > { %v2234_v20 = vsel %vm2126_vm5, %v2046_v29, %v2180_v61  ;;  %vm2125_vm7 = vcmp.ge.f32.partialorder %v2041_v21, 0.0  ;;  %v2179_v1 = vmul.f32 0.2, %v2041_v21  ;;  %v2056_v7 = vadd.f32 %v5065_v38, %v7208_v26  ;;  %v7510_v29 = vld [vmem:[#allocation2 + $0xf8] sm:$0xff]  ;;  %9281 = vst [vmem:[#allocation44_spill] sm:$0xff] %v7512_v15  ;;  %9283 = vst [vmem:[#allocation46_spill] sm:$0xff] %v7524_v60 }
 0x2f7   : > { %2669 = vst.msk [vmem:[#allocation2 + $0x178] sm:$0xff] %vm748_vm1, %v2609_v40  ;;  %v2612_v47 = vmul.f32 %v2533_v35, %v2234_v20  ;;  %v2050_v53 = vpop.f32.mrf.mxu0  ;;  %2835 = vrot.lane.b32.xlu0 %v7439_v5, %s5235_s28  ;;  %2837 = vrot.lane.b32.xlu1 %v7456_v45, %s5235_s28  ;;  %v2563_v12 = vpop.permute.xlu0 %2562  ;;  %9280 = vst [vmem:[#allocation29_spill] sm:$0xff] %v7510_v29  ;;  %v7538_v40 = vld [vmem:[#allocation2 + $0x120] sm:$0xff] }
 0x2f8   : > { %v2233_v54 = vsel %vm2125_vm7, %v2041_v21, %v2179_v1  ;;  %vm2128_vm8 = vcmp.ge.f32.partialorder %v2056_v7, 0.0  ;;  %v2182_v9 = vmul.f32 0.2, %v2056_v7  ;;  %v2051_v25 = vadd.f32 %v7208_v26, %v2050_v53  ;;  %v7536_v21 = vld [vmem:[#allocation2 + $0x118] sm:$0xff]  ;;  %9286 = vst [vmem:[#allocation54_spill] sm:$0xff] %v7538_v40  ;;  %v3994_v38 = vld [vmem:[%s8981_s3 + $0x40] sm:$0xff] }
 0x2f9   : > { %2672 = vst.msk [vmem:[#allocation2 + $0x190] sm:$0xff] %vm748_vm1, %v2612_v47  ;;  %v2611_v62 = vmul.f32 %v2528_v46, %v2233_v54  ;;  %v5068_v4 = vpop.f32.mrf.mxu0  ;;  %9285 = vst [vmem:[#allocation35_spill] sm:$0xff] %v7536_v21  ;;  %5171 = vmatprep.subr.mxu1 %v3994_v38  ;;  %5072 = vmatprep.subr.mxu0 %v3994_v38  ;;  %v2683_v1 = vld [vmem:[#allocation2 + $0x20] sm:$0xff]  ;;  %v3992_v47 = vld [vmem:[%s8981_s3 + $0x30] sm:$0xff] }
 0x2fa   : > { %v2236_v48 = vsel %vm2128_vm8, %v2056_v7, %v2182_v9  ;;  %vm2127_vm9 = vcmp.ge.f32.partialorder %v2051_v25, 0.0  ;;  %v2181_v34 = vmul.f32 0.2, %v2051_v25  ;;  %v2066_v36 = vadd.f32 %v5068_v4, %v7208_v26  ;;  %5180 = vmatpush3.msra.mxu1 %v3994_v38  ;;  %5073 = vmatpush3.msra.mxu0 %v3994_v38  ;;  %v3993_v7 = vld [vmem:[%s8981_s3 + $0x38] sm:$0xff]  ;;  %v2681_v53 = vld [vmem:[#allocation2 + $0x10] sm:$0xff]  ;;  %v7556_v9 = vld [vmem:[#allocation2 + $0x128] sm:$0xff] }
 0x2fb   : > { %2671 = vst.msk [vmem:[#allocation2 + $0x188] sm:$0xff] %vm748_vm1, %v2611_v62  ;;  %v2614_v22 = vmul.f32 %v2543_v10, %v2236_v48  ;;  %v2060_v52 = vpop.f32.mrf.mxu0  ;;  %3000 = vrot.lane.b32.xlu0 %v7476_v31, %s5240_s30  ;;  %3002 = vrot.lane.b32.xlu1 %v7478_v57, %s5240_s30  ;;  %9287 = vst [vmem:[#allocation55_spill] sm:$0xff] %v7556_v9 }
 0x2fc   : > { %v2235_v44 = vsel %vm2127_vm9, %v2051_v25, %v2181_v34  ;;  %vm2130_vm10 = vcmp.ge.f32.partialorder %v2066_v36, 0.0  ;;  %v2184_v2 = vmul.f32 0.2, %v2066_v36  ;;  %v2061_v63 = vadd.f32 %v7208_v26, %v2060_v52  ;;  %5172 = vmatprep.subr.mxu1 %v3993_v7  ;;  %5074 = vmatprep.subr.mxu0 %v3993_v7  ;;  %v3991_v25 = vld [vmem:[%s8981_s3 + $0x28] sm:$0xff]  ;;  %v3990_v52 = vld [vmem:[%s8981_s3 + $0x20] sm:$0xff] }
 0x2fd   : > { %2674 = vst.msk [vmem:[#allocation2 + $0x1a0] sm:$0xff] %vm748_vm1, %v2614_v22  ;;  %v2613_v6 = vmul.f32 %v2538_v37, %v2235_v44  ;;  %v5071_v51 = vpop.f32.mrf.mxu0  ;;  %5181 = vmatpush3.msra.mxu1 %v3993_v7  ;;  %5075 = vmatpush3.msra.mxu0 %v3993_v7 }
 0x2fe   : > { %v2238_v41 = vsel %vm2130_vm10, %v2066_v36, %v2184_v2  ;;  %vm2129_vm11 = vcmp.ge.f32.partialorder %v2061_v63, 0.0  ;;  %v2183_v59 = vmul.f32 0.2, %v2061_v63  ;;  %v2076_v17 = vadd.f32 %v5071_v51, %v7208_v26  ;;  %5173 = vmatprep.subr.mxu1 %v3992_v47  ;;  %5076 = vmatprep.subr.mxu0 %v3992_v47  ;;  %v7581_v2 = vld [vmem:[#allocation2 + $0x130] sm:$0xff]  ;;  %v3989_v51 = vld [vmem:[%s8981_s3 + $0x18] sm:$0xff] }
 0x2ff   : > { %2673 = vst.msk [vmem:[#allocation2 + $0x198] sm:$0xff] %vm748_vm1, %v2613_v6  ;;  %v2616_v14 = vmul.f32 %v2553_v33, %v2238_v41  ;;  %v2070_v13 = vpop.f32.mrf.mxu0  ;;  %2839 = vrot.lane.b32.xlu0 %v7458_v28, %s5235_s28  ;;  %2841 = vrot.lane.b32.xlu1 %v7476_v31, %s5235_s28  ;;  %9289 = vst [vmem:[#allocation57_spill] sm:$0xff] %v7581_v2 }
 0x300   : > { %v2237_v3 = vsel %vm2129_vm11, %v2061_v63, %v2183_v59  ;;  %vm2132_vm12 = vcmp.ge.f32.partialorder %v2076_v17, 0.0  ;;  %v2186_v58 = vmul.f32 0.2, %v2076_v17  ;;  %v2071_v24 = vadd.f32 %v7208_v26, %v2070_v13  ;;  %v2558_v26 = vpop.permute.xlu1 %2557  ;;  %5182 = vmatpush3.msra.mxu1 %v3992_v47  ;;  %5077 = vmatpush3.msra.mxu0 %v3992_v47 }
 0x301   : > { %2676 = vst.msk [vmem:[#allocation2 + $0x1b0] sm:$0xff] %vm748_vm1, %v2616_v14  ;;  %v2615_v35 = vmul.f32 %v2548_v42, %v2237_v3  ;;  %5174 = vmatprep.subr.mxu1 %v3991_v25  ;;  %5078 = vmatprep.subr.mxu0 %v3991_v25  ;;  %v3988_v14 = vld [vmem:[%s8981_s3 + $0x10] sm:$0xff] }
 0x302   : > { %v2240_v19 = vsel %vm2132_vm12, %v2076_v17, %v2186_v58  ;;  %vm2131_vm13 = vcmp.ge.f32.partialorder %v2071_v24, 0.0  ;;  %v2185_v11 = vmul.f32 0.2, %v2071_v24  ;;  %5183 = vmatpush3.msra.mxu1 %v3991_v25  ;;  %5079 = vmatpush3.msra.mxu0 %v3991_v25 }
 0x303   : > { %2675 = vst.msk [vmem:[#allocation2 + $0x1a8] sm:$0xff] %vm748_vm1, %v2615_v35  ;;  %v2618_v46 = vmul.f32 %v2563_v12, %v2240_v19  ;;  %3004 = vrot.lane.b32.xlu0 %v7495_v30, %s5240_s30  ;;  %3006 = vrot.lane.b32.xlu1 %v7497_v50, %s5240_s30  ;;  %v3987_v12 = vld [vmem:[%s8981_s3 + $0x8] sm:$0xff] }
 0x304   : > { %v2239_v18 = vsel %vm2131_vm13, %v2071_v24, %v2185_v11  ;;  %5175 = vmatprep.subr.mxu1 %v3990_v52  ;;  %5080 = vmatprep.subr.mxu0 %v3990_v52 }
 0x305   : > { %2678 = vst.msk [vmem:[#allocation2 + $0x1c0] sm:$0xff] %vm748_vm1, %v2618_v46  ;;  %v2617_v56 = vmul.f32 %v2558_v26, %v2239_v18  ;;  %5184 = vmatpush3.msra.mxu1 %v3990_v52  ;;  %5081 = vmatpush3.msra.mxu0 %v3990_v52  ;;  %v7623_v46 = vld [vmem:[#allocation2 + $0x138] sm:$0xff]  ;;  %v3986_v18 = vld [vmem:[%s8981_s3] sm:$0xff] }
 0x306   : > { %5176 = vmatprep.subr.mxu1 %v3989_v51  ;;  %5082 = vmatprep.subr.mxu0 %v3989_v51  ;;  %9291 = vst [vmem:[#allocation58_spill] sm:$0xff] %v7623_v46 }
 0x307   : > { %2677 = vst.msk [vmem:[#allocation2 + $0x1b8] sm:$0xff] %vm748_vm1, %v2617_v56  ;;  %2843 = vrot.lane.b32.xlu0 %v7478_v57, %s5235_s28  ;;  %2845 = vrot.lane.b32.xlu1 %v7495_v30, %s5235_s28 }
 0x308   : > { %5185 = vmatpush3.msra.mxu1 %v3989_v51  ;;  %5083 = vmatpush3.msra.mxu0 %v3989_v51 }
 0x309   : > { %5177 = vmatprep.subr.mxu1 %v3988_v14  ;;  %5084 = vmatprep.subr.mxu0 %v3988_v14 }
 0x30a   : > { %5186 = vmatpush3.msra.mxu1 %v3988_v14  ;;  %5085 = vmatpush3.msra.mxu0 %v3988_v14 }
 0x30b   : > { %3008 = vrot.lane.b32.xlu0 %v7510_v29, %s5240_s30  ;;  %3010 = vrot.lane.b32.xlu1 %v7512_v15, %s5240_s30 }
 0x30c   : > { %5178 = vmatprep.subr.mxu1 %v3987_v12  ;;  %5086 = vmatprep.subr.mxu0 %v3987_v12 }
 0x30d   : > { %5187 = vmatpush3.msra.mxu1 %v3987_v12  ;;  %5087 = vmatpush3.msra.mxu0 %v3987_v12  ;;  %v7693_v12 = vld [vmem:[#allocation2 + $0x148] sm:$0xff] }
 0x30e   : > { %5179 = vmatprep.subr.mxu1 %v3986_v18  ;;  %5088 = vmatprep.subr.mxu0 %v3986_v18 }
 0x30f   : > { %2847 = vrot.lane.b32.xlu0 %v7497_v50, %s5235_s28  ;;  %2849 = vrot.lane.b32.xlu1 %v7510_v29, %s5235_s28 }
 0x310   : > { %5188 = vmatpush3.msra.mxu1 %v3986_v18  ;;  %5089 = vmatpush3.msra.mxu0 %v3986_v18 }
 0x313   : > { %3012 = vrot.lane.b32.xlu0 %v7522_v16, %s5240_s30  ;;  %3014 = vrot.lane.b32.xlu1 %v7524_v60, %s5240_s30 }
 0x317   : > { %2851 = vrot.lane.b32.xlu0 %v7512_v15, %s5235_s28  ;;  %2853 = vrot.lane.b32.xlu1 %v7522_v16, %s5235_s28  ;;  %v7931_v15 = vld [vmem:[#allocation2 + $0x198] sm:$0xff] }
 0x318   : > { %9307 = vst [vmem:[#allocation11_spill] sm:$0xff] %v7931_v15 }
 0x319   : > { %v7534_v61 = vpop.permute.xlu1 %2793 }
 0x31a   : > { %9284 = vst [vmem:[#allocation33_spill] sm:$0xff] %v7534_v61  ;;  %v7841_v61 = vld [vmem:[#allocation2 + $0x180] sm:$0xff] }
 0x31b   : > { %3016 = vrot.lane.b32.xlu0 %v7536_v21, %s5240_s30  ;;  %3018 = vrot.lane.b32.xlu1 %v7538_v40, %s5240_s30  ;;  %9302 = vst [vmem:[#allocation10_spill] sm:$0xff] %v7841_v61 }
 0x31d   : > { %v2798_v10 = vpop.permute.xlu0 %2797  ;;  %v2800_v20 = vpop.permute.xlu1 %2799 }
 0x31e   : > { %v3122_v62 = vsel %vm748_vm1, %v2681_v53, %v2798_v10  ;;  %v3123_v48 = vsel %vm748_vm1, %v7238_v23, %v2800_v20 }
 0x31f   : > { %2855 = vrot.lane.b32.xlu0 %v7524_v60, %s5235_s28  ;;  %2795 = vrot.lane.b32.xlu1 %v2683_v1, %s5235_s28 }
 0x321   : > { %v2802_v37 = vpop.permute.xlu0 %2801  ;;  %v2963_v54 = vpop.permute.xlu1 %2962 }
 0x322   : > { %v7567_v4 = vsel %vm3174_vm14, %v3122_v62, %v2963_v54  ;;  %v3124_v34 = vsel %vm748_vm1, %v2683_v1, %v2802_v37 }
 0x323   : > { %2857 = vrot.lane.b32.xlu0 %v7536_v21, %s5235_s28  ;;  %3020 = vrot.lane.b32.xlu1 %v7556_v9, %s5240_s30  ;;  %9288 = vst [vmem:[#allocation56_spill] sm:$0xff] %v7567_v4  ;;  %v9026_v23 = vrot.slane %v7567_v4, 7  ;;  %v9024_v7 = vrot.slane %v7567_v4, 1  ;;  %v7881_v21 = vld [vmem:[#allocation2 + $0x190] sm:$0xff] }
 0x324   : > { %9304 = vst [vmem:[#allocation12_spill] sm:$0xff] %v7881_v21 }
 0x325   : > { %v2965_v36 = vpop.permute.xlu0 %2964  ;;  %v2967_v22 = vpop.permute.xlu1 %2966 }
 0x326   : > { %v7576_v33 = vsel %vm3174_vm14, %v3123_v48, %v2965_v36  ;;  %v7579_v44 = vsel %vm3174_vm14, %v3124_v34, %v2967_v22 }
 0x327   : > { %v3232_v63 = vrot.slane %v7576_v33, 7  ;;  %v3233_v6 = vrot.slane %v7579_v44, 7  ;;  %2960 = vrot.lane.b32.xlu0 %v7268_v43, %s5240_s30  ;;  %3022 = vrot.lane.b32.xlu1 %v7581_v2, %s5240_s30  ;;  %v3340_v1 = vrot.slane %v7576_v33, 1  ;;  %v3341_v25 = vrot.slane %v7579_v44, 1 }
 0x329   : > { %v2804_v42 = vpop.permute.xlu0 %2803  ;;  %v2806_v41 = vpop.permute.xlu1 %2805  ;;  %v7597_v17 = vsel %vm859_vm2, %v9026_v23, %v3232_v63  ;;  %v7604_v13 = vsel %vm859_vm2, %v3232_v63, %v3233_v6  ;;  %v3441_v34 = vsel %vm968_vm3, %v9024_v7, %v3340_v1  ;;  %v3440_v63 = vsel %vm968_vm3, %v3340_v1, %v3341_v25 }
 0x32a   : > { %v3125_v3 = vsel %vm748_vm1, %v7252_v55, %v2804_v42  ;;  %v3126_v58 = vsel %vm748_vm1, %v7254_v49, %v2806_v41  ;;  %v7625_v55 = vld [vmem:[#allocation2 + $0x140] sm:$0xff]  ;;  %v5215_v42 = vld [vmem:[#allocation2 + $0x50] sm:$0xff] }
 0x32b   : > { %2859 = vrot.lane.b32.xlu0 %v7538_v40, %s5235_s28  ;;  %2861 = vrot.lane.b32.xlu1 %v7556_v9, %s5235_s28  ;;  %9292 = vst [vmem:[#allocation59_spill] sm:$0xff] %v7625_v55 }
 0x32d   : > { %v2969_v24 = vpop.permute.xlu0 %2968  ;;  %v2971_v35 = vpop.permute.xlu1 %2970 }
 0x32e   : > { %v7618_v19 = vsel %vm3174_vm14, %v3125_v3, %v2969_v24  ;;  %v7621_v11 = vsel %vm3174_vm14, %v3126_v58, %v2971_v35  ;;  %v7691_v35 = vld [vmem:[#allocation2 + $0x150] sm:$0xff] }
 0x32f   : > { %v3234_v49 = vrot.slane %v7618_v19, 7  ;;  %v3235_v26 = vrot.slane %v7621_v11, 7  ;;  %3024 = vrot.lane.b32.xlu0 %v7623_v46, %s5240_s30  ;;  %3026 = vrot.lane.b32.xlu1 %v7625_v55, %s5240_s30 }
 0x331   : > { %v2808_v56 = vpop.permute.xlu0 %2807  ;;  %v2810_v38 = vpop.permute.xlu1 %2809  ;;  %v7638_v10 = vsel %vm859_vm2, %v3233_v6, %v3234_v49  ;;  %v7642_v20 = vsel %vm859_vm2, %v3234_v49, %v3235_v26  ;;  %v5214_v6 = vld [vmem:[#allocation2 + $0x48] sm:$0xff] }
 0x332   : > { %v3127_v47 = vsel %vm748_vm1, %v7268_v43, %v2808_v56  ;;  %v3128_v53 = vsel %vm748_vm1, %v7270_v32, %v2810_v38 }
 0x333   : > { %3505 = vrot.lane.b32.xlu1 %v7576_v33, %s5238_s16  ;;  %3503 = vrot.lane.b32.xlu0 %v7567_v4, %s5238_s16 }
 0x335   : > { %v2973_v37 = vpop.permute.xlu0 %2972  ;;  %v2975_v54 = vpop.permute.xlu1 %2974 }
 0x336   : > { %v7656_v62 = vsel %vm3174_vm14, %v3127_v47, %v2973_v37  ;;  %v7659_v48 = vsel %vm3174_vm14, %v3128_v53, %v2975_v54  ;;  %v3342_v47 = vrot.slane %v7618_v19, 1 }
 0x337   : > { %v3236_v43 = vrot.slane %v7656_v62, 7  ;;  %v3237_v32 = vrot.slane %v7659_v48, 7  ;;  %2863 = vrot.lane.b32.xlu1 %v7581_v2, %s5235_s28  ;;  %3719 = vrot.lane.b32.xlu0 %v3441_v34, %s5241_s29 }
 0x339   : > { %v2812_v36 = vpop.permute.xlu0 %2811  ;;  %v2814_v22 = vpop.permute.xlu1 %2813  ;;  %v7672_v52 = vsel %vm859_vm2, %v3235_v26, %v3236_v43  ;;  %v7676_v33 = vsel %vm859_vm2, %v3236_v43, %v3237_v32  ;;  %v3343_v43 = vrot.slane %v7621_v11, 1 }
 0x33a   : > { %v3129_v51 = vsel %vm748_vm1, %v5214_v6, %v2812_v36  ;;  %v3130_v41 = vsel %vm748_vm1, %v5215_v42, %v2814_v22 }
 0x33b   : > { %2865 = vrot.lane.b32.xlu1 %v7623_v46, %s5235_s28  ;;  %3721 = vrot.lane.b32.xlu0 %v3440_v63, %s5241_s29 }
 0x33d   : > { %v2977_v14 = vpop.permute.xlu0 %2976  ;;  %v2979_v3 = vpop.permute.xlu1 %2978 }
 0x33e   : > { %v7686_v58 = vsel %vm3174_vm14, %v3129_v51, %v2977_v14  ;;  %v7689_v24 = vsel %vm3174_vm14, %v3130_v41, %v2979_v3  ;;  %v7754_v3 = vld [vmem:[#allocation2 + $0x160] sm:$0xff] }
 0x33f   : > { %v3238_v49 = vrot.slane %v7686_v58, 7  ;;  %v3239_v26 = vrot.slane %v7689_v24, 7  ;;  %3030 = vrot.lane.b32.xlu1 %v7691_v35, %s5240_s30  ;;  %3028 = vrot.lane.b32.xlu0 %v7693_v12, %s5240_s30  ;;  %9297 = vst [vmem:[#allocation64_spill] sm:$0xff] %v7754_v3 }
 0x341   : > { %v2816_v18 = vpop.permute.xlu0 %2815  ;;  %v2818_v56 = vpop.permute.xlu1 %2817  ;;  %v7703_v38 = vsel %vm859_vm2, %v3237_v32, %v3238_v49  ;;  %v7707_v1 = vsel %vm859_vm2, %v3238_v49, %v3239_v26  ;;  %v7756_v49 = vld [vmem:[#allocation2 + $0x158] sm:$0xff] }
 0x342   : > { %9293 = vst [vmem:[#allocation60_spill] sm:$0xff] %v7707_v1  ;;  %v3131_v53 = vsel %vm748_vm1, %v7307_v0, %v2816_v18  ;;  %v3132_v37 = vsel %vm748_vm1, %v7309_v27, %v2818_v56  ;;  %9298 = vst [vmem:[#allocation6_spill] sm:$0xff] %v7756_v49 }
 0x343   : > { %3509 = vrot.lane.b32.xlu1 %v7618_v19, %s5238_s16  ;;  %3507 = vrot.lane.b32.xlu0 %v7579_v44, %s5238_s16  ;;  %v3439_v19 = vsel %vm968_vm3, %v3341_v25, %v3342_v47  ;;  %v3438_v25 = vsel %vm968_vm3, %v3342_v47, %v3343_v43  ;;  %v3344_v47 = vrot.slane %v7656_v62, 1 }
 0x345   : > { %v2981_v54 = vpop.permute.xlu0 %2980  ;;  %v2983_v34 = vpop.permute.xlu1 %2982 }
 0x346   : > { %v7720_v32 = vsel %vm3174_vm14, %v3131_v53, %v2981_v54  ;;  %v7723_v36 = vsel %vm3174_vm14, %v3132_v37, %v2983_v34  ;;  %v3345_v54 = vrot.slane %v7659_v48, 1  ;;  %v3437_v34 = vsel %vm968_vm3, %v3343_v43, %v3344_v47 }
 0x347   : > { %v3240_v44 = vrot.slane %v7720_v32, 7  ;;  %v3241_v0 = vrot.slane %v7723_v36, 7  ;;  %2867 = vrot.lane.b32.xlu1 %v7625_v55, %s5235_s28  ;;  %3723 = vrot.lane.b32.xlu0 %v3439_v19, %s5241_s29  ;;  %v7843_v55 = vld [vmem:[#allocation2 + $0x178] sm:$0xff]  ;;  %v3349_v9 = vrot.slane %v7723_v36, 1 }
 0x348   : > { %9303 = vst [vmem:[#allocation7_spill] sm:$0xff] %v7843_v55 }
 0x349   : > { %v2820_v27 = vpop.permute.xlu0 %2819  ;;  %v7732_v22 = vpop.permute.xlu1 %2821  ;;  %v7736_v63 = vsel %vm859_vm2, %v3239_v26, %v3240_v44  ;;  %v7740_v6 = vsel %vm859_vm2, %v3240_v44, %v3241_v0 }
 0x34a   : > { %9294 = vst [vmem:[#allocation61_spill] sm:$0xff] %v7736_v63  ;;  %9295 = vst [vmem:[#allocation62_spill] sm:$0xff] %v7740_v6  ;;  %v3133_v51 = vsel %vm748_vm1, %v7336_v39, %v2820_v27  ;;  %v7803_v27 = vld [vmem:[#allocation2 + $0x168] sm:$0xff]  ;;  %v5218_v63 = vld [vmem:[#allocation2 + $0x80] sm:$0xff] }
 0x34b   : > { %2869 = vrot.lane.b32.xlu1 %v7693_v12, %s5235_s28  ;;  %3725 = vrot.lane.b32.xlu0 %v3438_v25, %s5241_s29  ;;  %9301 = vst [vmem:[#allocation5_spill] sm:$0xff] %v7803_v27 }
 0x34d   : > { %v2985_v42 = vpop.permute.xlu0 %2984  ;;  %v7749_v41 = vpop.permute.xlu1 %2986 }
 0x34e   : > { %v7752_v14 = vsel %vm3174_vm14, %v3133_v51, %v2985_v42  ;;  %v3346_v42 = vrot.slane %v7686_v58, 1 }
 0x34f   : > { %9296 = vst [vmem:[#allocation63_spill] sm:$0xff] %v7752_v14  ;;  %v9025_v26 = vrot.slane %v7752_v14, 7  ;;  %3034 = vrot.lane.b32.xlu1 %v7754_v3, %s5240_s30  ;;  %3032 = vrot.lane.b32.xlu0 %v7756_v49, %s5240_s30  ;;  %v3350_v6 = vrot.slane %v7752_v14, 1 }
 0x350   : > { %v3435_v7 = vsel %vm968_vm3, %v3345_v54, %v3346_v42 }
 0x351   : > { %v7763_v18 = vpop.permute.xlu0 %2823  ;;  %v7765_v39 = vpop.permute.xlu1 %2825  ;;  %v7771_v56 = vsel %vm859_vm2, %v3241_v0, %v9025_v26  ;;  %v7801_v0 = vld [vmem:[#allocation2 + $0x170] sm:$0xff] }
 0x352   : > { %9299 = vst [vmem:[#allocation4_spill] sm:$0xff] %v7771_v56  ;;  %9300 = vst [vmem:[#allocation8_spill] sm:$0xff] %v7801_v0 }
 0x353   : > { %3513 = vrot.lane.b32.xlu1 %v7656_v62, %s5238_s16  ;;  %3511 = vrot.lane.b32.xlu0 %v7621_v11, %s5238_s16  ;;  %v3436_v11 = vsel %vm968_vm3, %v3344_v47, %v3345_v54 }
 0x355   : > { %v7778_v53 = vpop.permute.xlu0 %2988  ;;  %v7780_v37 = vpop.permute.xlu1 %2990 }
 0x357   : > { %2871 = vrot.lane.b32.xlu1 %v7691_v35, %s5235_s28  ;;  %3727 = vrot.lane.b32.xlu0 %v3437_v34, %s5241_s29 }
 0x359   : > { %v7788_v19 = vpop.permute.xlu0 %2827  ;;  %v7790_v62 = vpop.permute.xlu1 %2829 }
 0x35b   : > { %2873 = vrot.lane.b32.xlu1 %v7756_v49, %s5235_s28  ;;  %3729 = vrot.lane.b32.xlu0 %v3436_v11, %s5241_s29  ;;  %v3347_v11 = vrot.slane %v7689_v24, 1 }
 0x35d   : > { %v7797_v44 = vpop.permute.xlu0 %2992  ;;  %v7799_v43 = vpop.permute.xlu1 %2994 }
 0x35f   : > { %3038 = vrot.lane.b32.xlu1 %v7801_v0, %s5240_s30  ;;  %3036 = vrot.lane.b32.xlu0 %v7803_v27, %s5240_s30 }
 0x361   : > { %v7809_v25 = vpop.permute.xlu0 %2831  ;;  %v7811_v51 = vpop.permute.xlu1 %2833 }
 0x363   : > { %3517 = vrot.lane.b32.xlu1 %v7686_v58, %s5238_s16  ;;  %3515 = vrot.lane.b32.xlu0 %v7659_v48, %s5238_s16  ;;  %v3434_v48 = vsel %vm968_vm3, %v3346_v42, %v3347_v11 }
 0x365   : > { %v7818_v47 = vpop.permute.xlu0 %2996  ;;  %v7820_v34 = vpop.permute.xlu1 %2998 }
 0x367   : > { %2875 = vrot.lane.b32.xlu1 %v7754_v3, %s5235_s28  ;;  %3731 = vrot.lane.b32.xlu0 %v3435_v7, %s5241_s29 }
 0x369   : > { %v7828_v26 = vpop.permute.xlu0 %2835  ;;  %v7830_v58 = vpop.permute.xlu1 %2837 }
 0x36b   : > { %2877 = vrot.lane.b32.xlu1 %v7803_v27, %s5235_s28  ;;  %3733 = vrot.lane.b32.xlu0 %v3434_v48, %s5241_s29  ;;  %v3348_v48 = vrot.slane %v7720_v32, 1 }
 0x36d   : > { %v7837_v23 = vpop.permute.xlu0 %3000  ;;  %v7839_v54 = vpop.permute.xlu1 %3002  ;;  %v3433_v27 = vsel %vm968_vm3, %v3347_v11, %v3348_v48 }
 0x36f   : > { %3042 = vrot.lane.b32.xlu1 %v7841_v61, %s5240_s30  ;;  %3040 = vrot.lane.b32.xlu0 %v7843_v55, %s5240_s30 }
 0x371   : > { %v7849_v7 = vpop.permute.xlu0 %2839  ;;  %v7851_v42 = vpop.permute.xlu1 %2841 }
 0x373   : > { %3521 = vrot.lane.b32.xlu1 %v7720_v32, %s5238_s16  ;;  %3519 = vrot.lane.b32.xlu0 %v7689_v24, %s5238_s16  ;;  %v3432_v24 = vsel %vm968_vm3, %v3348_v48, %v3349_v9 }
 0x375   : > { %v7858_v46 = vpop.permute.xlu0 %3004  ;;  %v7860_v2 = vpop.permute.xlu1 %3006 }
 0x377   : > { %2879 = vrot.lane.b32.xlu1 %v7801_v0, %s5235_s28  ;;  %3735 = vrot.lane.b32.xlu0 %v3433_v27, %s5241_s29  ;;  %v7883_v0 = vld [vmem:[#allocation2 + $0x188] sm:$0xff] }
 0x378   : > { %9305 = vst [vmem:[#allocation9_spill] sm:$0xff] %v7883_v0 }
 0x379   : > { %v7868_v56 = vpop.permute.xlu0 %2843  ;;  %v7870_v32 = vpop.permute.xlu1 %2845 }
 0x37b   : > { %2881 = vrot.lane.b32.xlu1 %v7843_v55, %s5235_s28  ;;  %3737 = vrot.lane.b32.xlu0 %v3432_v24, %s5241_s29  ;;  %v5216_v55 = vld [vmem:[#allocation2 + $0x70] sm:$0xff] }
 0x37c   : > { %v3134_v24 = vsel %vm748_vm1, %v5216_v55, %v7732_v22  ;;  %v3431_v55 = vsel %vm968_vm3, %v3349_v9, %v3350_v6 }
 0x37d   : > { %v7877_v40 = vpop.permute.xlu0 %3008  ;;  %v7879_v11 = vpop.permute.xlu1 %3010  ;;  %v7898_v60 = vsel %vm3174_vm14, %v3134_v24, %v7749_v41 }
 0x37e   : > { %9306 = vst [vmem:[#allocation14_spill] sm:$0xff] %v7898_v60  ;;  %v3351_v49 = vrot.slane %v7898_v60, 1 }
 0x37f   : > { %3046 = vrot.lane.b32.xlu1 %v7881_v21, %s5240_s30  ;;  %3044 = vrot.lane.b32.xlu0 %v7883_v0, %s5240_s30 }
 0x381   : > { %v7889_v27 = vpop.permute.xlu0 %2847  ;;  %v7891_v48 = vpop.permute.xlu1 %2849 }
 0x383   : > { %3525 = vrot.lane.b32.xlu1 %v7752_v14, %s5238_s16  ;;  %3523 = vrot.lane.b32.xlu0 %v7723_v36, %s5238_s16  ;;  %v3430_v36 = vsel %vm968_vm3, %v3350_v6, %v3351_v49  ;;  %v5217_v14 = vld [vmem:[#allocation2 + $0x78] sm:$0xff] }
 0x385   : > { %v7904_v16 = vpop.permute.xlu0 %3012  ;;  %v7906_v3 = vpop.permute.xlu1 %3014 }
 0x387   : > { %2883 = vrot.lane.b32.xlu1 %v7841_v61, %s5235_s28  ;;  %3739 = vrot.lane.b32.xlu0 %v3431_v55, %s5241_s29  ;;  %v3135_v55 = vsel %vm748_vm1, %v5217_v14, %v7763_v18  ;;  %v7929_v61 = vld [vmem:[#allocation2 + $0x1a0] sm:$0xff]  ;;  %v3136_v14 = vsel %vm748_vm1, %v5218_v63, %v7765_v39 }
 0x388   : > { %v7935_v6 = vsel %vm3174_vm14, %v3135_v55, %v7778_v53  ;;  %v7948_v1 = vsel %vm3174_vm14, %v3136_v14, %v7780_v37 }
 0x389   : > { %v7914_v22 = vpop.permute.xlu0 %2851  ;;  %v7916_v41 = vpop.permute.xlu1 %2853  ;;  %9308 = vst [vmem:[#allocation16_spill] sm:$0xff] %v7935_v6  ;;  %v3352_v18 = vrot.slane %v7935_v6, 1  ;;  %9309 = vst [vmem:[#allocation13_spill] sm:$0xff] %v7948_v1  ;;  %v3353_v29 = vrot.slane %v7948_v1, 1 }
 0x38b   : > { %2885 = vrot.lane.b32.xlu1 %v7883_v0, %s5235_s28  ;;  %3741 = vrot.lane.b32.xlu0 %v3430_v36, %s5241_s29  ;;  %v3429_v63 = vsel %vm968_vm3, %v3351_v49, %v3352_v18  ;;  %v3428_v14 = vsel %vm968_vm3, %v3352_v18, %v3353_v29 }
 0x38d   : > { %v7923_v24 = vpop.permute.xlu0 %3016  ;;  %v7925_v9 = vpop.permute.xlu1 %3018 }
 0x38f   : > { %3050 = vrot.lane.b32.xlu1 %v7929_v61, %s5240_s30  ;;  %3048 = vrot.lane.b32.xlu0 %v7931_v15, %s5240_s30 }
 0x391   : > { %v7941_v36 = vpop.permute.xlu0 %2855  ;;  %v2796_v0 = vpop.permute.xlu1 %2795 }
 0x393   : > { %3529 = vrot.lane.b32.xlu1 %v7935_v6, %s5238_s16  ;;  %3527 = vrot.lane.b32.xlu0 %v7898_v60, %s5238_s16  ;;  %v2680_v6 = vld [vmem:[#allocation2 + $0x8] sm:$0xff] }
 0x395   : > { %v7954_v53 = vpop.permute.xlu0 %2857  ;;  %v7956_v55 = vpop.permute.xlu1 %3020 }
 0x396   : > { %9310 = vst [vmem:[#allocation18_spill] sm:$0xff] %v7954_v53  ;;  %9311 = vst [vmem:[#allocation15_spill] sm:$0xff] %v7956_v55  ;;  %v5219_v53 = vld [vmem:[#allocation2 + $0x88] sm:$0xff] }
 0x397   : > { %2887 = vrot.lane.b32.xlu1 %v7881_v21, %s5235_s28  ;;  %3743 = vrot.lane.b32.xlu0 %v3429_v63, %s5241_s29  ;;  %v3137_v63 = vsel %vm748_vm1, %v5219_v53, %v7788_v19  ;;  %v2733_v21 = vld [vmem:[#allocation2 + $0x1b0] sm:$0xff]  ;;  %v7977_v55 = vld [vmem:[#allocation2 + $0x1a8] sm:$0xff] }
 0x398   : > { %9314 = vst [vmem:[#allocation22_spill] sm:$0xff] %v7977_v55  ;;  %v7981_v18 = vsel %vm3174_vm14, %v3137_v63, %v7797_v44  ;;  %v5220_v53 = vld [vmem:[#allocation2 + $0x90] sm:$0xff] }
 0x399   : > { %v2961_v39 = vpop.permute.xlu0 %2960  ;;  %v7964_v37 = vpop.permute.xlu1 %3022  ;;  %9315 = vst [vmem:[#allocation19_spill] sm:$0xff] %v7981_v18  ;;  %v3354_v44 = vrot.slane %v7981_v18, 1 }
 0x39b   : > { %2889 = vrot.lane.b32.xlu1 %v7931_v15, %s5235_s28  ;;  %3745 = vrot.lane.b32.xlu0 %v3428_v14, %s5241_s29  ;;  %v3121_v14 = vsel %vm748_vm1, %v2680_v6, %v2796_v0 }
 0x39c   : > { %v7988_v15 = vsel %vm3174_vm14, %v3121_v14, %v2961_v39 }
 0x39d   : > { %v7971_v60 = vpop.permute.xlu0 %2859  ;;  %v7973_v49 = vpop.permute.xlu1 %2861  ;;  %9316 = vst [vmem:[#allocation24_spill] sm:$0xff] %v7988_v15  ;;  %v9051_v0 = vrot.slane %v7988_v15, 7 }
 0x39e   : > { %9312 = vst [vmem:[#allocation20_spill] sm:$0xff] %v7971_v60  ;;  %9313 = vst [vmem:[#allocation17_spill] sm:$0xff] %v7973_v49  ;;  %v3138_v60 = vsel %vm748_vm1, %v5220_v53, %v7790_v62  ;;  %v3427_v62 = vsel %vm968_vm3, %v3353_v29, %v3354_v44 }
 0x39f   : > { %3054 = vrot.lane.b32.xlu1 %v2733_v21, %s5240_s30  ;;  %3052 = vrot.lane.b32.xlu0 %v7977_v55, %s5240_s30  ;;  %v7999_v63 = vsel %vm3174_vm14, %v3138_v60, %v7799_v43  ;;  %v9317_v60 = vrot.slane %v7567_v4, 7 }
 0x3a0   : > { %v3355_v14 = vrot.slane %v7999_v63, 1 }
 0x3a1   : > { %v7990_v49 = vpop.permute.xlu0 %3024  ;;  %v7992_v19 = vpop.permute.xlu1 %3026  ;;  %v3334_v43 = vsel %vm859_vm2, %v9051_v0, %v9317_v60  ;;  %v5221_v0 = vld [vmem:[#allocation2 + $0x98] sm:$0xff] }
 0x3a2   : > { %v3426_v29 = vsel %vm968_vm3, %v3354_v44, %v3355_v14  ;;  %v3139_v4 = vsel %vm748_vm1, %v5221_v0, %v7809_v25  ;;  %v5222_v25 = vld [vmem:[#allocation2 + $0xa0] sm:$0xff] }
 0x3a3   : > { %3533 = vrot.lane.b32.xlu1 %v7981_v18, %s5238_s16  ;;  %3531 = vrot.lane.b32.xlu0 %v7948_v1, %s5238_s16  ;;  %v3140_v0 = vsel %vm748_vm1, %v5222_v25, %v7811_v51 }
 0x3a5   : > { %v3504_v6 = vpop.permute.xlu0 %3503  ;;  %v3506_v39 = vpop.permute.xlu1 %3505 }
 0x3a6   : > { %v3879_v53 = vsel %vm1510_vm6, %v3334_v43, %v3504_v6  ;;  %v3880_v60 = vsel %vm1510_vm6, %v7597_v17, %v3506_v39 }
 0x3a7   : > { %3747 = vrot.lane.b32.xlu0 %v3427_v62, %s5241_s29  ;;  %2891 = vrot.lane.b32.xlu1 %v7929_v61, %s5235_s28 }
 0x3a9   : > { %v3720_v18 = vpop.permute.xlu0 %3719  ;;  %v8019_v1 = vpop.permute.xlu1 %2863 }
 0x3aa   : > { %v3934_v62 = vsel %vm3931_vm15, %v3879_v53, %v3720_v18  ;;  %v2734_v18 = vld [vmem:[#allocation2 + $0x1b8] sm:$0xff]  ;;  %v8035_v53 = vld [vmem:[#allocation2 + $0x1c0] sm:$0xff] }
 0x3ab   : > { %2893 = vrot.lane.b32.xlu1 %v7977_v55, %s5235_s28  ;;  %3749 = vrot.lane.b32.xlu0 %v3426_v29, %s5241_s29  ;;  %v8039_v29 = vsel %vm3174_vm14, %v3139_v4, %v7818_v47  ;;  %v8054_v4 = vsel %vm3174_vm14, %v3140_v0, %v7820_v34  ;;  %v5223_v55 = vld [vmem:[#allocation2 + $0xa8] sm:$0xff] }
 0x3ac   : > { %5093 = vmatprep.mubr.msk.f32.mxu1 %vm4002_vm0, %v3934_v62  ;;  %v3356_v62 = vrot.slane %v8039_v29, 1 }
 0x3ad   : > { %v3722_v6 = vpop.permute.xlu0 %3721  ;;  %v8030_v43 = vpop.permute.xlu1 %2865 }
 0x3ae   : > { %v3935_v44 = vsel %vm3931_vm15, %v3880_v60, %v3722_v6  ;;  %v3357_v6 = vrot.slane %v8054_v4, 1 }
 0x3af   : > { %3056 = vrot.lane.b32.xlu0 %v2734_v18, %s5240_s30  ;;  %3058 = vrot.lane.b32.xlu1 %v8035_v53, %s5240_s30 }
 0x3b0   : > { %5094 = vmatmul.mubr.msk.f32.vlgmr.msra.gmra.mxu1 %vm4002_vm0, %v3935_v44  ;;  %v3425_v44 = vsel %vm968_vm3, %v3355_v14, %v3356_v62  ;;  %v3424_v15 = vsel %vm968_vm3, %v3356_v62, %v3357_v6  ;;  %v2736_v14 = vld [vmem:[#allocation2 + $0x1c8] sm:$0xff] }
 0x3b1   : > { %v8045_v17 = vpop.permute.xlu0 %3028  ;;  %v8047_v39 = vpop.permute.xlu1 %3030 }
 0x3b3   : > { %3535 = vrot.lane.b32.xlu0 %v7999_v63, %s5238_s16  ;;  %3537 = vrot.lane.b32.xlu1 %v8039_v29, %s5238_s16 }
 0x3b5   : > { %v3508_v47 = vpop.permute.xlu0 %3507  ;;  %v3510_v60 = vpop.permute.xlu1 %3509 }
 0x3b6   : > { %v3881_v51 = vsel %vm1510_vm6, %v7604_v13, %v3508_v47 }
 0x3b7   : > { %3751 = vrot.lane.b32.xlu0 %v3425_v44, %s5241_s29  ;;  %2895 = vrot.lane.b32.xlu1 %v2733_v21, %s5235_s28  ;;  %v2737_v44 = vld [vmem:[#allocation2 + $0x1d0] sm:$0xff]  ;;  %v3882_v21 = vsel %vm1510_vm6, %v7638_v10, %v3510_v60 }
 0x3b9   : > { %v3724_v34 = vpop.permute.xlu0 %3723  ;;  %v8067_v25 = vpop.permute.xlu1 %2867 }
 0x3ba   : > { %v3936_v0 = vsel %vm3931_vm15, %v3881_v51, %v3724_v34  ;;  %v3141_v51 = vsel %vm748_vm1, %v5223_v55, %v7828_v26  ;;  %v5224_v34 = vld [vmem:[#allocation2 + $0xb0] sm:$0xff] }
 0x3bb   : > { %3753 = vrot.lane.b32.xlu0 %v3424_v15, %s5241_s29  ;;  %2897 = vrot.lane.b32.xlu1 %v2734_v18, %s5235_s28  ;;  %v3142_v15 = vsel %vm748_vm1, %v5224_v34, %v7830_v58  ;;  %v8086_v62 = vsel %vm3174_vm14, %v3141_v51, %v7837_v23  ;;  %v3143_v23 = vsel %vm748_vm1, %v7437_v8, %v7849_v7 }
 0x3bc   : > { %5096 = vmatprep.mubr.msk.f32.mxu1 %vm4002_vm0, %v3936_v0  ;;  %v8090_v10 = vsel %vm3174_vm14, %v3142_v15, %v7839_v54  ;;  %v3358_v58 = vrot.slane %v8086_v62, 1 }
 0x3bd   : > { %v3726_v13 = vpop.permute.xlu0 %3725  ;;  %v8077_v47 = vpop.permute.xlu1 %2869  ;;  %v3359_v60 = vrot.slane %v8090_v10, 1 }
 0x3be   : > { %v3937_v18 = vsel %vm3931_vm15, %v3882_v21, %v3726_v13  ;;  %v3423_v21 = vsel %vm968_vm3, %v3357_v6, %v3358_v58 }
 0x3bf   : > { %3060 = vrot.lane.b32.xlu0 %v2736_v14, %s5240_s30  ;;  %3062 = vrot.lane.b32.xlu1 %v2737_v44, %s5240_s30  ;;  %v3144_v14 = vsel %vm748_vm1, %v7439_v5, %v7851_v42  ;;  %v8113_v44 = vsel %vm3174_vm14, %v3143_v23, %v7858_v46  ;;  %v3422_v13 = vsel %vm968_vm3, %v3358_v58, %v3359_v60 }
 0x3c0   : > { %5097 = vmatmul.mubr.msk.f32.gmra.mxu1 %vm4002_vm0, %v3937_v18  ;;  %v8121_v51 = vsel %vm3174_vm14, %v3144_v14, %v7860_v2  ;;  %v3360_v8 = vrot.slane %v8113_v44, 1  ;;  %v3145_v18 = vsel %vm748_vm1, %v7456_v45, %v7868_v56  ;;  %v3146_v58 = vsel %vm748_vm1, %v7458_v28, %v7870_v32 }
 0x3c1   : > { %v8095_v26 = vpop.permute.xlu0 %3032  ;;  %v8097_v55 = vpop.permute.xlu1 %3034  ;;  %v3361_v42 = vrot.slane %v8121_v51, 1 }
 0x3c2   : > { %v3421_v15 = vsel %vm968_vm3, %v3359_v60, %v3360_v8  ;;  %v8158_v60 = vsel %vm3174_vm14, %v3146_v58, %v7879_v11 }
 0x3c3   : > { %3539 = vrot.lane.b32.xlu0 %v8054_v4, %s5238_s16  ;;  %3541 = vrot.lane.b32.xlu1 %v8086_v62, %s5238_s16  ;;  %v3363_v32 = vrot.slane %v8158_v60, 1 }
 0x3c5   : > { %v3512_v54 = vpop.permute.xlu0 %3511  ;;  %v3514_v0 = vpop.permute.xlu1 %3513 }
 0x3c6   : > { %v3883_v5 = vsel %vm1510_vm6, %v7642_v20, %v3512_v54  ;;  %v3884_v2 = vsel %vm1510_vm6, %v7672_v52, %v3514_v0  ;;  %v3420_v54 = vsel %vm968_vm3, %v3360_v8, %v3361_v42  ;;  %v8154_v52 = vsel %vm3174_vm14, %v3145_v18, %v7877_v40 }
 0x3c7   : > { %3755 = vrot.lane.b32.xlu0 %v3423_v21, %s5241_s29  ;;  %3757 = vrot.lane.b32.xlu1 %v3422_v13, %s5241_s29  ;;  %v3362_v56 = vrot.slane %v8154_v52, 1  ;;  %v3147_v0 = vsel %vm748_vm1, %v7476_v31, %v7889_v27 }
 0x3c8   : > { %v8182_v13 = vsel %vm3174_vm14, %v3147_v0, %v7904_v16 }
 0x3c9   : > { %v3728_v46 = vpop.permute.xlu0 %3727  ;;  %v8128_v7 = vpop.permute.xlu1 %2871  ;;  %v3419_v14 = vsel %vm968_vm3, %v3361_v42, %v3362_v56  ;;  %v3418_v21 = vsel %vm968_vm3, %v3362_v56, %v3363_v32  ;;  %v3364_v31 = vrot.slane %v8182_v13, 1 }
 0x3ca   : > { %v3938_v6 = vsel %vm3931_vm15, %v3883_v5, %v3728_v46 }
 0x3cb   : > { %3543 = vrot.lane.b32.xlu0 %v8090_v10, %s5238_s16  ;;  %3545 = vrot.lane.b32.xlu1 %v8113_v44, %s5238_s16 }
 0x3cc   : > { %5099 = vmatprep.mubr.msk.f32.mxu1 %vm4002_vm0, %v3938_v6 }
 0x3cd   : > { %v3730_v34 = vpop.permute.xlu0 %3729  ;;  %v8139_v20 = vpop.permute.xlu1 %2873 }
 0x3ce   : > { %v3939_v23 = vsel %vm3931_vm15, %v3884_v2, %v3730_v34  ;;  %v3417_v34 = vsel %vm968_vm3, %v3363_v32, %v3364_v31  ;;  %v5225_v32 = vld [vmem:[#allocation2 + $0x30] sm:$0xff] }
 0x3cf   : > { %3759 = vrot.lane.b32.xlu0 %v3421_v15, %s5241_s29  ;;  %3761 = vrot.lane.b32.xlu1 %v3420_v54, %s5241_s29 }
 0x3d0   : > { %5100 = vmatmul.mubr.msk.f32.gmra.mxu1 %vm4002_vm0, %v3939_v23 }
 0x3d1   : > { %v8163_v45 = vpop.permute.xlu0 %3036  ;;  %v8165_v28 = vpop.permute.xlu1 %3038 }
 0x3d3   : > { %3547 = vrot.lane.b32.xlu0 %v8121_v51, %s5238_s16  ;;  %3549 = vrot.lane.b32.xlu1 %v8154_v52, %s5238_s16 }
 0x3d5   : > { %v3516_v40 = vpop.permute.xlu0 %3515  ;;  %v3518_v11 = vpop.permute.xlu1 %3517 }
 0x3d6   : > { %v3885_v8 = vsel %vm1510_vm6, %v7676_v33, %v3516_v40  ;;  %v3886_v16 = vsel %vm1510_vm6, %v7703_v38, %v3518_v11  ;;  %v3148_v33 = vsel %vm748_vm1, %v7478_v57, %v7891_v48  ;;  %v2738_v38 = vld [vmem:[#allocation2 + $0x1d8] sm:$0xff] }
 0x3d7   : > { %3763 = vrot.lane.b32.xlu0 %v3419_v14, %s5241_s29  ;;  %3765 = vrot.lane.b32.xlu1 %v3418_v21, %s5241_s29  ;;  %v8205_v15 = vsel %vm3174_vm14, %v3148_v33, %v7906_v3  ;;  %v3149_v3 = vsel %vm748_vm1, %v7495_v30, %v7914_v22  ;;  %v9318_v21 = vld [vmem:[#allocation29_spill] sm:$0xff] }
 0x3d8   : > { %v3365_v58 = vrot.slane %v8205_v15, 1 }
 0x3d9   : > { %v3732_v5 = vpop.permute.xlu0 %3731  ;;  %v2876_v46 = vpop.permute.xlu1 %2875 }
 0x3da   : > { %v3940_v27 = vsel %vm3931_vm15, %v3885_v8, %v3732_v5  ;;  %v3161_v57 = vsel %vm748_vm1, %v7693_v12, %v2876_v46  ;;  %v8227_v12 = vsel %vm3174_vm14, %v3149_v3, %v7923_v24  ;;  %v3150_v24 = vsel %vm748_vm1, %v7497_v50, %v7916_v41  ;;  %v9319_v5 = vld [vmem:[#allocation60_spill] sm:$0xff]  ;;  %v9324_v3 = vld [vmem:[#allocation6_spill] sm:$0xff] }
 0x3db   : > { %3551 = vrot.lane.b32.xlu0 %v8158_v60, %s5238_s16  ;;  %2899 = vrot.lane.b32.xlu1 %v8035_v53, %s5235_s28  ;;  %v3366_v11 = vrot.slane %v8227_v12, 1  ;;  %v3416_v0 = vsel %vm968_vm3, %v3364_v31, %v3365_v58  ;;  %v8247_v14 = vsel %vm3174_vm14, %v3150_v24, %v7925_v9  ;;  %v3151_v8 = vsel %vm748_vm1, %v9318_v21, %v7941_v36  ;;  %v9326_v21 = vld [vmem:[#allocation20_spill] sm:$0xff] }
 0x3dc   : > { %5102 = vmatprep.mubr.msk.f32.mxu1 %vm4002_vm0, %v3940_v27  ;;  %v3367_v31 = vrot.slane %v8247_v14, 1  ;;  %v9320_v27 = vld [vmem:[#allocation15_spill] sm:$0xff] }
 0x3dd   : > { %v3734_v42 = vpop.permute.xlu0 %3733  ;;  %v2878_v6 = vpop.permute.xlu1 %2877  ;;  %v8260_v9 = vsel %vm3174_vm14, %v3151_v8, %v9320_v27  ;;  %v9327_v8 = vld [vmem:[#allocation31_spill] sm:$0xff] }
 0x3de   : > { %v3941_v2 = vsel %vm3931_vm15, %v3886_v16, %v3734_v42  ;;  %v3162_v48 = vsel %vm748_vm1, %v7691_v35, %v2878_v6  ;;  %v3415_v42 = vsel %vm968_vm3, %v3365_v58, %v3366_v11  ;;  %v3368_v36 = vrot.slane %v8260_v9, 1  ;;  %v9321_v6 = vld [vmem:[#allocation61_spill] sm:$0xff] }
 0x3df   : > { %3553 = vrot.lane.b32.xlu0 %v8182_v13, %s5238_s16  ;;  %3767 = vrot.lane.b32.xlu1 %v3417_v34, %s5241_s29 }
 0x3e0   : > { %5103 = vmatmul.mubr.msk.f32.gmra.mxu1 %vm4002_vm0, %v3941_v2 }
 0x3e1   : > { %v3041_v53 = vpop.permute.xlu0 %3040  ;;  %v3043_v18 = vpop.permute.xlu1 %3042 }
 0x3e2   : > { %v8220_v23 = vsel %vm3174_vm14, %v3161_v57, %v3041_v53  ;;  %v8223_v54 = vsel %vm3174_vm14, %v3162_v48, %v3043_v18  ;;  %v9323_v57 = vld [vmem:[#allocation44_spill] sm:$0xff]  ;;  %v3414_v18 = vsel %vm968_vm3, %v3366_v11, %v3367_v31  ;;  %v3413_v11 = vsel %vm968_vm3, %v3367_v31, %v3368_v36 }
 0x3e3   : > { %v3270_v35 = vrot.slane %v8220_v23, 7  ;;  %v3271_v56 = vrot.slane %v8223_v54, 7  ;;  %2958 = vrot.lane.b32.xlu0 %v5225_v32, %s5240_s30  ;;  %3064 = vrot.lane.b32.xlu1 %v2738_v38, %s5240_s30  ;;  %v9322_v38 = vld [vmem:[#allocation18_spill] sm:$0xff]  ;;  %s4858_s30 = sshll.u32 %s9358_s22, 6 }
 0x3e4   : > { %v3152_v48 = vsel %vm748_vm1, %v9323_v57, %v9322_v38  ;;  %s8842_s9 = scalar_lea.vmem %s8984_s6, %s4858_s30 }
 0x3e5   : > { %v3520_v30 = vpop.permute.xlu0 %3519  ;;  %v3522_v22 = vpop.permute.xlu1 %3521  ;;  %v8237_v40 = vsel %vm859_vm2, %v3270_v35, %v3271_v56  ;;  %v8280_v58 = vsel %vm3174_vm14, %v3152_v48, %v7964_v37 }
 0x3e6   : > { %v3887_v50 = vsel %vm1510_vm6, %v9319_v5, %v3520_v30  ;;  %v3888_v33 = vsel %vm1510_vm6, %v9321_v6, %v3522_v22  ;;  %v9325_v30 = vld [vmem:[#allocation64_spill] sm:$0xff]  ;;  %v3369_v37 = vrot.slane %v8280_v58, 1  ;;  %v3153_v5 = vsel %vm748_vm1, %v9327_v8, %v9326_v21 }
 0x3e7   : > { %3769 = vrot.lane.b32.xlu0 %v3416_v0, %s5241_s29  ;;  %3555 = vrot.lane.b32.xlu1 %v8205_v15, %s5238_s16 }
 0x3e8   : > { %v3412_v57 = vsel %vm968_vm3, %v3368_v36, %v3369_v37 }
 0x3e9   : > { %v3736_v41 = vpop.permute.xlu0 %3735  ;;  %v2880_v46 = vpop.permute.xlu1 %2879 }
 0x3ea   : > { %v3942_v16 = vsel %vm3931_vm15, %v3887_v50, %v3736_v41  ;;  %v3163_v32 = vsel %vm748_vm1, %v9324_v3, %v2880_v46  ;;  %v8304_v46 = vsel %vm3174_vm14, %v3153_v5, %v7990_v49  ;;  %v9328_v49 = vld [vmem:[#allocation17_spill] sm:$0xff] }
 0x3eb   : > { %3557 = vrot.lane.b32.xlu0 %v8227_v12, %s5238_s16  ;;  %3771 = vrot.lane.b32.xlu1 %v3415_v42, %s5241_s29  ;;  %v3370_v38 = vrot.slane %v8304_v46, 1 }
 0x3ec   : > { %5105 = vmatprep.mubr.msk.f32.mxu1 %vm4002_vm0, %v3942_v16 }
 0x3ed   : > { %v3738_v2 = vpop.permute.xlu0 %3737  ;;  %v2882_v34 = vpop.permute.xlu1 %2881 }
 0x3ee   : > { %v3943_v53 = vsel %vm3931_vm15, %v3888_v33, %v3738_v2  ;;  %v3164_v22 = vsel %vm748_vm1, %v9325_v30, %v2882_v34  ;;  %v9329_v2 = vld [vmem:[#allocation46_spill] sm:$0xff]  ;;  %v9331_v30 = vld [vmem:[#allocation35_spill] sm:$0xff] }
 0x3ef   : > { %3773 = vrot.lane.b32.xlu0 %v3414_v18, %s5241_s29  ;;  %3559 = vrot.lane.b32.xlu1 %v8247_v14, %s5238_s16  ;;  %v3154_v34 = vsel %vm748_vm1, %v9329_v2, %v9328_v49  ;;  %v3155_v36 = vsel %vm748_vm1, %v9331_v30, %v8019_v1  ;;  %v9335_v2 = vld [vmem:[#allocation8_spill] sm:$0xff] }
 0x3f0   : > { %5106 = vmatmul.mubr.msk.f32.gmra.mxu1 %vm4002_vm0, %v3943_v53  ;;  %v8327_v48 = vsel %vm3174_vm14, %v3154_v34, %v7992_v19  ;;  %v3411_v19 = vsel %vm968_vm3, %v3369_v37, %v3370_v38 }
 0x3f1   : > { %v3045_v24 = vpop.permute.xlu0 %3044  ;;  %v3047_v0 = vpop.permute.xlu1 %3046 }
 0x3f2   : > { %v8297_v50 = vsel %vm3174_vm14, %v3163_v32, %v3045_v24  ;;  %v8300_v41 = vsel %vm3174_vm14, %v3164_v22, %v3047_v0  ;;  %v3371_v32 = vrot.slane %v8327_v48, 1  ;;  %v8343_v24 = vsel %vm3174_vm14, %v3155_v36, %v8045_v17  ;;  %v9332_v0 = vld [vmem:[#allocation54_spill] sm:$0xff] }
 0x3f3   : > { %v3272_v27 = vrot.slane %v8297_v50, 7  ;;  %v3273_v31 = vrot.slane %v8300_v41, 7  ;;  %3561 = vrot.lane.b32.xlu0 %v8260_v9, %s5238_s16  ;;  %3775 = vrot.lane.b32.xlu1 %v3413_v11, %s5241_s29  ;;  %v3156_v1 = vsel %vm748_vm1, %v9332_v0, %v8030_v43  ;;  %v9333_v11 = vld [vmem:[#allocation4_spill] sm:$0xff]  ;;  %v3372_v5 = vrot.slane %v8343_v24, 1 }
 0x3f4   : > { %v8357_v17 = vsel %vm3174_vm14, %v3156_v1, %v8047_v39 }
 0x3f5   : > { %v3524_v16 = vpop.permute.xlu0 %3523  ;;  %v3526_v42 = vpop.permute.xlu1 %3525  ;;  %v8313_v6 = vsel %vm859_vm2, %v3271_v56, %v3272_v27  ;;  %v8317_v33 = vsel %vm859_vm2, %v3272_v27, %v3273_v31  ;;  %v9330_v56 = vld [vmem:[#allocation62_spill] sm:$0xff]  ;;  %v3373_v43 = vrot.slane %v8357_v17, 1  ;;  %v3409_v30 = vsel %vm968_vm3, %v3371_v32, %v3372_v5 }
 0x3f6   : > { %v3889_v53 = vsel %vm1510_vm6, %v9330_v56, %v3524_v16  ;;  %v3890_v21 = vsel %vm1510_vm6, %v9333_v11, %v3526_v42  ;;  %v3410_v16 = vsel %vm968_vm3, %v3370_v38, %v3371_v32  ;;  %v9334_v42 = vld [vmem:[#allocation5_spill] sm:$0xff]  ;;  %v9336_v56 = vld [vmem:[#allocation55_spill] sm:$0xff] }
 0x3f7   : > { %3777 = vrot.lane.b32.xlu0 %v3412_v57, %s5241_s29  ;;  %3563 = vrot.lane.b32.xlu1 %v8280_v58, %s5238_s16  ;;  %v3157_v38 = vsel %vm748_vm1, %v9336_v56, %v8067_v25  ;;  %v9337_v25 = vld [vmem:[#allocation14_spill] sm:$0xff]  ;;  %v9338_v11 = vld [vmem:[#allocation57_spill] sm:$0xff] }
 0x3f9   : > { %v3740_v18 = vpop.permute.xlu0 %3739  ;;  %v2884_v3 = vpop.permute.xlu1 %2883 }
 0x3fa   : > { %v3944_v22 = vsel %vm3931_vm15, %v3889_v53, %v3740_v18  ;;  %v3165_v49 = vsel %vm748_vm1, %v9334_v42, %v2884_v3  ;;  %v8384_v3 = vsel %vm3174_vm14, %v3157_v38, %v8095_v26  ;;  %v9340_v42 = vld [vmem:[#allocation63_spill] sm:$0xff] }
 0x3fb   : > { %3565 = vrot.lane.b32.xlu0 %v8304_v46, %s5238_s16  ;;  %3779 = vrot.lane.b32.xlu1 %v3411_v19, %s5241_s29  ;;  %v3243_v19 = vrot.slane %v9337_v25, 7 }
 0x3fc   : > { %5108 = vmatprep.mubr.msk.f32.mxu1 %vm4002_vm0, %v3944_v22 }
 0x3fd   : > { %v3742_v8 = vpop.permute.xlu0 %3741  ;;  %v2886_v37 = vpop.permute.xlu1 %2885 }
 0x3fe   : > { %v3945_v27 = vsel %vm3931_vm15, %v3890_v21, %v3742_v8  ;;  %v3166_v39 = vsel %vm748_vm1, %v9335_v2, %v2886_v37  ;;  %v3158_v21 = vsel %vm748_vm1, %v9338_v11, %v8077_v47  ;;  %v3374_v8 = vrot.slane %v8384_v3, 1 }
 0x3ff   : > { %3781 = vrot.lane.b32.xlu0 %v3410_v16, %s5241_s29  ;;  %3567 = vrot.lane.b32.xlu1 %v8327_v48, %s5238_s16  ;;  %v3408_v37 = vsel %vm968_vm3, %v3372_v5, %v3373_v43 }
 0x400   : > { %5109 = vmatmul.mubr.msk.f32.gmra.mxu1 %vm4002_vm0, %v3945_v27  ;;  %v8408_v27 = vsel %vm3174_vm14, %v3158_v21, %v8097_v55  ;;  %v9342_v55 = vld [vmem:[#allocation58_spill] sm:$0xff]  ;;  %v3407_v38 = vsel %vm968_vm3, %v3373_v43, %v3374_v8  ;;  %v9343_v43 = vld [vmem:[#allocation59_spill] sm:$0xff] }
 0x401   : > { %v3049_v34 = vpop.permute.xlu0 %3048  ;;  %v3051_v57 = vpop.permute.xlu1 %3050  ;;  %v3160_v11 = vsel %vm748_vm1, %v9343_v43, %v8139_v20  ;;  %v9347_v43 = vld [vmem:[#allocation19_spill] sm:$0xff] }
 0x402   : > { %v8375_v53 = vsel %vm3174_vm14, %v3165_v49, %v3049_v34  ;;  %v8378_v18 = vsel %vm3174_vm14, %v3166_v39, %v3051_v57  ;;  %v9341_v49 = vrot.slane %v9340_v42, 7  ;;  %v3375_v34 = vrot.slane %v8408_v27, 1 }
 0x403   : > { %v3274_v36 = vrot.slane %v8375_v53, 7  ;;  %v3275_v22 = vrot.slane %v8378_v18, 7  ;;  %3569 = vrot.lane.b32.xlu0 %v8343_v24, %s5238_s16  ;;  %3783 = vrot.lane.b32.xlu1 %v3409_v30, %s5241_s29  ;;  %v3159_v57 = vsel %vm748_vm1, %v9342_v55, %v8128_v7 }
 0x404   : > { %v3322_v47 = vsel %vm859_vm2, %v9341_v49, %v3243_v19  ;;  %v8428_v30 = vsel %vm3174_vm14, %v3159_v57, %v8163_v45  ;;  %v9346_v57 = vld [vmem:[#allocation13_spill] sm:$0xff] }
 0x405   : > { %v3528_v0 = vpop.permute.xlu0 %3527  ;;  %v3530_v1 = vpop.permute.xlu1 %3529  ;;  %v8394_v32 = vsel %vm859_vm2, %v3273_v31, %v3274_v36  ;;  %v8398_v26 = vsel %vm859_vm2, %v3274_v36, %v3275_v22  ;;  %v9339_v31 = vld [vmem:[#allocation16_spill] sm:$0xff]  ;;  %v3376_v45 = vrot.slane %v8428_v30, 1 }
 0x406   : > { %v3244_v16 = vrot.slane %v9339_v31, 7  ;;  %v3891_v2 = vsel %vm1510_vm6, %v3322_v47, %v3528_v0  ;;  %v9345_v31 = vld [vmem:[#allocation10_spill] sm:$0xff] }
 0x407   : > { %3785 = vrot.lane.b32.xlu0 %v3408_v37, %s5241_s29  ;;  %3571 = vrot.lane.b32.xlu1 %v8357_v17, %s5238_s16  ;;  %v3406_v37 = vsel %vm968_vm3, %v3374_v8, %v3375_v34 }
 0x408   : > { %v3321_v36 = vsel %vm859_vm2, %v3243_v19, %v3244_v16  ;;  %v8446_v19 = vsel %vm3174_vm14, %v3160_v11, %v8165_v28  ;;  %v3246_v11 = vrot.slane %v9347_v43, 7 }
 0x409   : > { %v3744_v39 = vpop.permute.xlu0 %3743  ;;  %v2888_v5 = vpop.permute.xlu1 %2887  ;;  %v3892_v7 = vsel %vm1510_vm6, %v3321_v36, %v3530_v1  ;;  %v9344_v1 = vld [vmem:[#allocation7_spill] sm:$0xff]  ;;  %v3377_v8 = vrot.slane %v8446_v19, 1 }
 0x40a   : > { %v3946_v56 = vsel %vm3931_vm15, %v3891_v2, %v3744_v39  ;;  %v3167_v20 = vsel %vm748_vm1, %v9344_v1, %v2888_v5  ;;  %v3405_v39 = vsel %vm968_vm3, %v3375_v34, %v3376_v45 }
 0x40b   : > { %3573 = vrot.lane.b32.xlu0 %v8384_v3, %s5238_s16  ;;  %3787 = vrot.lane.b32.xlu1 %v3407_v38, %s5241_s29 }
 0x40c   : > { %5111 = vmatprep.mubr.msk.f32.mxu1 %vm4002_vm0, %v3946_v56  ;;  %v3245_v56 = vrot.slane %v9346_v57, 7  ;;  %v9348_v57 = vld [vmem:[#allocation9_spill] sm:$0xff] }
 0x40d   : > { %v3746_v25 = vpop.permute.xlu0 %3745  ;;  %v2890_v0 = vpop.permute.xlu1 %2889 }
 0x40e   : > { %v3947_v21 = vsel %vm3931_vm15, %v3892_v7, %v3746_v25  ;;  %v3168_v42 = vsel %vm748_vm1, %v9345_v31, %v2890_v0  ;;  %v3378_v25 = vrot.slane %v8220_v23, 1  ;;  %v3404_v0 = vsel %vm968_vm3, %v3376_v45, %v3377_v8 }
 0x40f   : > { %3575 = vrot.lane.b32.xlu1 %v8408_v27, %s5238_s16  ;;  %3789 = vrot.lane.b32.xlu0 %v3406_v37, %s5241_s29 }
 0x410   : > { %5112 = vmatmul.mubr.msk.f32.gmra.mxu1 %vm4002_vm0, %v3947_v21  ;;  %v3403_v45 = vsel %vm968_vm3, %v3377_v8, %v3378_v25 }
 0x411   : > { %v3053_v49 = vpop.permute.xlu0 %3052  ;;  %v3055_v47 = vpop.permute.xlu1 %3054 }
 0x412   : > { %v8458_v28 = vsel %vm3174_vm14, %v3167_v20, %v3053_v49  ;;  %v8461_v2 = vsel %vm3174_vm14, %v3168_v42, %v3055_v47  ;;  %v3379_v20 = vrot.slane %v8223_v54, 1  ;;  %v3319_v42 = vsel %vm859_vm2, %v3245_v56, %v3246_v11 }
 0x413   : > { %v3276_v55 = vrot.slane %v8458_v28, 7  ;;  %v3277_v5 = vrot.slane %v8461_v2, 7  ;;  %3577 = vrot.lane.b32.xlu0 %v8428_v30, %s5238_s16  ;;  %3791 = vrot.lane.b32.xlu1 %v3405_v39, %s5241_s29  ;;  %v3380_v39 = vrot.slane %v8297_v50, 1 }
 0x414   : > { %v3402_v8 = vsel %vm968_vm3, %v3378_v25, %v3379_v20 }
 0x415   : > { %v3532_v38 = vpop.permute.xlu0 %3531  ;;  %v3534_v36 = vpop.permute.xlu1 %3533  ;;  %v8473_v7 = vsel %vm859_vm2, %v3275_v22, %v3276_v55  ;;  %v8477_v34 = vsel %vm859_vm2, %v3276_v55, %v3277_v5  ;;  %v3320_v22 = vsel %vm859_vm2, %v3244_v16, %v3245_v56 }
 0x416   : > { %v3893_v21 = vsel %vm1510_vm6, %v3320_v22, %v3532_v38  ;;  %v3894_v16 = vsel %vm1510_vm6, %v3319_v42, %v3534_v36  ;;  %v9349_v38 = vld [vmem:[#allocation12_spill] sm:$0xff]  ;;  %v3381_v22 = vrot.slane %v8300_v41, 1 }
 0x417   : > { %3579 = vrot.lane.b32.xlu1 %v8446_v19, %s5238_s16  ;;  %3793 = vrot.lane.b32.xlu0 %v3404_v0, %s5241_s29 }
 0x419   : > { %v3748_v37 = vpop.permute.xlu0 %3747  ;;  %v2892_v1 = vpop.permute.xlu1 %2891 }
 0x41a   : > { %v3948_v31 = vsel %vm3931_vm15, %v3893_v21, %v3748_v37  ;;  %v3169_v56 = vsel %vm748_vm1, %v9348_v57, %v2892_v1  ;;  %v3383_v57 = vrot.slane %v8378_v18, 1 }
 0x41b   : > { %3581 = vrot.lane.b32.xlu0 %v8220_v23, %s5238_s16  ;;  %3795 = vrot.lane.b32.xlu1 %v3403_v45, %s5241_s29 }
 0x41c   : > { %5114 = vmatprep.mubr.msk.f32.mxu1 %vm4002_vm0, %v3948_v31  ;;  %v3247_v31 = vrot.slane %v7999_v63, 7  ;;  %v3248_v63 = vrot.slane %v8039_v29, 7 }
 0x41d   : > { %v3750_v49 = vpop.permute.xlu0 %3749  ;;  %v2894_v47 = vpop.permute.xlu1 %2893 }
 0x41e   : > { %v3949_v55 = vsel %vm3931_vm15, %v3894_v16, %v3750_v49  ;;  %v3170_v36 = vsel %vm748_vm1, %v9349_v38, %v2894_v47  ;;  %v3382_v49 = vrot.slane %v8375_v53, 1  ;;  %v3400_v47 = vsel %vm968_vm3, %v3380_v39, %v3381_v22 }
 0x41f   : > { %3583 = vrot.lane.b32.xlu1 %v8223_v54, %s5238_s16  ;;  %3797 = vrot.lane.b32.xlu0 %v3402_v8, %s5241_s29  ;;  %v3401_v54 = vsel %vm968_vm3, %v3379_v20, %v3380_v39  ;;  %v3317_v29 = vsel %vm859_vm2, %v3247_v31, %v3248_v63 }
 0x420   : > { %5115 = vmatmul.mubr.msk.f32.gmra.mxu1 %vm4002_vm0, %v3949_v55  ;;  %v3399_v39 = vsel %vm968_vm3, %v3381_v22, %v3382_v49 }
 0x421   : > { %v3057_v0 = vpop.permute.xlu0 %3056  ;;  %v3059_v43 = vpop.permute.xlu1 %3058 }
 0x422   : > { %v8514_v21 = vsel %vm3174_vm14, %v3169_v56, %v3057_v0  ;;  %v8517_v25 = vsel %vm3174_vm14, %v3170_v36, %v3059_v43  ;;  %v3384_v36 = vrot.slane %v8458_v28, 1  ;;  %v3398_v43 = vsel %vm968_vm3, %v3382_v49, %v3383_v57 }
 0x423   : > { %v3278_v37 = vrot.slane %v8514_v21, 7  ;;  %v3279_v1 = vrot.slane %v8517_v25, 7  ;;  %3585 = vrot.lane.b32.xlu0 %v8297_v50, %s5238_s16  ;;  %3799 = vrot.lane.b32.xlu1 %v3401_v54, %s5241_s29  ;;  %v3318_v50 = vsel %vm859_vm2, %v3246_v11, %v3247_v31 }
 0x425   : > { %v3536_v45 = vpop.permute.xlu0 %3535  ;;  %v3538_v42 = vpop.permute.xlu1 %3537  ;;  %v8529_v16 = vsel %vm859_vm2, %v3277_v5, %v3278_v37  ;;  %v8533_v20 = vsel %vm859_vm2, %v3278_v37, %v3279_v1 }
 0x426   : > { %v3895_v5 = vsel %vm1510_vm6, %v3318_v50, %v3536_v45  ;;  %v3385_v45 = vrot.slane %v8461_v2, 1 }
 0x427   : > { %3587 = vrot.lane.b32.xlu1 %v8300_v41, %s5238_s16  ;;  %3801 = vrot.lane.b32.xlu0 %v3400_v47, %s5241_s29  ;;  %v3896_v41 = vsel %vm1510_vm6, %v3317_v29, %v3538_v42 }
 0x429   : > { %v3752_v55 = vpop.permute.xlu0 %3751  ;;  %v2896_v8 = vpop.permute.xlu1 %2895 }
 0x42a   : > { %v3950_v56 = vsel %vm3931_vm15, %v3895_v5, %v3752_v55  ;;  %v3250_v5 = vrot.slane %v8086_v62, 7 }
 0x42b   : > { %3589 = vrot.lane.b32.xlu0 %v8375_v53, %s5238_s16  ;;  %3803 = vrot.lane.b32.xlu1 %v3399_v39, %s5241_s29  ;;  %v9350_v53 = vld [vmem:[#allocation11_spill] sm:$0xff]  ;;  %v3396_v39 = vsel %vm968_vm3, %v3384_v36, %v3385_v45 }
 0x42c   : > { %5117 = vmatprep.mubr.msk.f32.mxu1 %vm4002_vm0, %v3950_v56  ;;  %v3171_v22 = vsel %vm748_vm1, %v9350_v53, %v2896_v8 }
 0x42d   : > { %v3754_v11 = vpop.permute.xlu0 %3753  ;;  %v2898_v38 = vpop.permute.xlu1 %2897 }
 0x42e   : > { %v3951_v0 = vsel %vm3931_vm15, %v3896_v41, %v3754_v11  ;;  %v3172_v54 = vsel %vm748_vm1, %v7929_v61, %v2898_v38  ;;  %v3249_v61 = vrot.slane %v8054_v4, 7  ;;  %v3387_v38 = vrot.slane %v8517_v25, 1 }
 0x42f   : > { %3591 = vrot.lane.b32.xlu1 %v8378_v18, %s5238_s16  ;;  %3805 = vrot.lane.b32.xlu0 %v3398_v43, %s5241_s29  ;;  %v3397_v18 = vsel %vm968_vm3, %v3383_v57, %v3384_v36  ;;  %v3252_v43 = vrot.slane %v8113_v44, 7 }
 0x430   : > { %5118 = vmatmul.mubr.msk.f32.gmra.mxu1 %vm4002_vm0, %v3951_v0  ;;  %v3316_v4 = vsel %vm859_vm2, %v3248_v63, %v3249_v61  ;;  %v3315_v62 = vsel %vm859_vm2, %v3249_v61, %v3250_v5  ;;  %v3251_v63 = vrot.slane %v8090_v10, 7 }
 0x431   : > { %v3061_v37 = vpop.permute.xlu0 %3060  ;;  %v3063_v31 = vpop.permute.xlu1 %3062 }
 0x432   : > { %v3226_v42 = vsel %vm3174_vm14, %v3171_v22, %v3061_v37  ;;  %v8571_v49 = vsel %vm3174_vm14, %v3172_v54, %v3063_v31  ;;  %v3314_v10 = vsel %vm859_vm2, %v3250_v5, %v3251_v63  ;;  %v3313_v44 = vsel %vm859_vm2, %v3251_v63, %v3252_v43 }
 0x433   : > { %v3280_v47 = vrot.slane %v3226_v42, 7  ;;  %v3281_v50 = vrot.slane %v8571_v49, 7  ;;  %3593 = vrot.lane.b32.xlu0 %v8458_v28, %s5238_s16  ;;  %3807 = vrot.lane.b32.xlu1 %v3397_v18, %s5241_s29  ;;  %v3386_v28 = vrot.slane %v8514_v21, 1  ;;  %v3388_v54 = vrot.slane %v3226_v42, 1 }
 0x434   : > { %v3253_v5 = vrot.slane %v8121_v51, 7 }
 0x435   : > { %v3540_v55 = vpop.permute.xlu0 %3539  ;;  %v3542_v8 = vpop.permute.xlu1 %3541  ;;  %v8583_v56 = vsel %vm859_vm2, %v3279_v1, %v3280_v47  ;;  %v8589_v57 = vsel %vm859_vm2, %v3280_v47, %v3281_v50  ;;  %v3395_v0 = vsel %vm968_vm3, %v3385_v45, %v3386_v28  ;;  %v3394_v37 = vsel %vm968_vm3, %v3386_v28, %v3387_v38 }
 0x436   : > { %v3897_v1 = vsel %vm1510_vm6, %v3316_v4, %v3540_v55  ;;  %v3898_v29 = vsel %vm1510_vm6, %v3315_v62, %v3542_v8  ;;  %v3389_v47 = vrot.slane %v8571_v49, 1  ;;  %v3393_v55 = vsel %vm968_vm3, %v3387_v38, %v3388_v54 }
 0x437   : > { %3595 = vrot.lane.b32.xlu1 %v8461_v2, %s5238_s16  ;;  %3809 = vrot.lane.b32.xlu0 %v3396_v39, %s5241_s29  ;;  %v3254_v8 = vrot.slane %v8154_v52, 7  ;;  %v3255_v38 = vrot.slane %v8158_v60, 7 }
 0x438   : > { %v3392_v4 = vsel %vm968_vm3, %v3388_v54, %v3389_v47 }
 0x439   : > { %v3756_v41 = vpop.permute.xlu0 %3755  ;;  %v3758_v11 = vpop.permute.xlu1 %3757  ;;  %v3311_v62 = vsel %vm859_vm2, %v3253_v5, %v3254_v8 }
 0x43a   : > { %v3952_v36 = vsel %vm3931_vm15, %v3897_v1, %v3756_v41  ;;  %v3953_v2 = vsel %vm3931_vm15, %v3898_v29, %v3758_v11 }
 0x43b   : > { %3597 = vrot.lane.b32.xlu0 %v8514_v21, %s5238_s16  ;;  %3811 = vrot.lane.b32.xlu1 %v3395_v0, %s5241_s29  ;;  %v3310_v0 = vsel %vm859_vm2, %v3254_v8, %v3255_v38 }
 0x43c   : > { %5120 = vmatprep.mubr.msk.f32.mxu1 %vm4002_vm0, %v3952_v36 }
 0x43d   : > { %5121 = vmatmul.mubr.msk.f32.gmra.mxu1 %vm4002_vm0, %v3953_v2  ;;  %v3544_v53 = vpop.permute.xlu0 %3543  ;;  %v3546_v22 = vpop.permute.xlu1 %3545 }
 0x43e   : > { %v3899_v21 = vsel %vm1510_vm6, %v3314_v10, %v3544_v53  ;;  %v3900_v31 = vsel %vm1510_vm6, %v3313_v44, %v3546_v22  ;;  %v2679_v22 = vld [vmem:[#allocation2] sm:$0xff]  ;;  %v9351_v10 = vld [vmem:[#allocation33_spill] sm:$0xff] }
 0x43f   : > { %3599 = vrot.lane.b32.xlu1 %v8517_v25, %s5238_s16  ;;  %3813 = vrot.lane.b32.xlu0 %v3394_v37, %s5241_s29  ;;  %v3256_v37 = vrot.slane %v8182_v13, 7  ;;  %v3120_v60 = vsel %vm748_vm1, %v2679_v22, %v9351_v10  ;;  %v9352_v44 = vld [vmem:[#allocation22_spill] sm:$0xff]  ;;  %v3257_v13 = vrot.slane %v8205_v15, 7 }
 0x441   : > { %v3760_v45 = vpop.permute.xlu0 %3759  ;;  %v3762_v18 = vpop.permute.xlu1 %3761  ;;  %v3309_v8 = vsel %vm859_vm2, %v3255_v38, %v3256_v37 }
 0x442   : > { %v3954_v61 = vsel %vm3931_vm15, %v3899_v21, %v3760_v45  ;;  %v3955_v25 = vsel %vm3931_vm15, %v3900_v31, %v3762_v18 }
 0x443   : > { %3601 = vrot.lane.b32.xlu0 %v3226_v42, %s5238_s16  ;;  %3815 = vrot.lane.b32.xlu1 %v3393_v55, %s5241_s29  ;;  %v3312_v42 = vsel %vm859_vm2, %v3252_v43, %v3253_v5 }
 0x444   : > { %5123 = vmatprep.mubr.msk.f32.mxu1 %vm4002_vm0, %v3954_v61 }
 0x445   : > { %5124 = vmatmul.mubr.msk.f32.gmra.mxu1 %vm4002_vm0, %v3955_v25  ;;  %v3548_v28 = vpop.permute.xlu0 %3547  ;;  %v3550_v39 = vpop.permute.xlu1 %3549 }
 0x446   : > { %v3901_v51 = vsel %vm1510_vm6, %v3312_v42, %v3548_v28  ;;  %v3902_v52 = vsel %vm1510_vm6, %v3311_v62, %v3550_v39 }
 0x447   : > { %3817 = vrot.lane.b32.xlu0 %v3392_v4, %s5241_s29 }
 0x449   : > { %v3764_v1 = vpop.permute.xlu0 %3763  ;;  %v3766_v29 = vpop.permute.xlu1 %3765 }
 0x44a   : > { %v3956_v41 = vsel %vm3931_vm15, %v3901_v51, %v3764_v1  ;;  %v3957_v11 = vsel %vm3931_vm15, %v3902_v52, %v3766_v29  ;;  %v9353_v1 = vld [vmem:[#allocation24_spill] sm:$0xff] }
 0x44b   : > { %3603 = vrot.lane.b32.xlu0 %v8571_v49, %s5238_s16  ;;  %5126 = vmatprep.mubr.msk.f32.mxu1 %vm4002_vm0, %v3956_v41  ;;  %v3258_v49 = vrot.slane %v8227_v12, 7 }
 0x44c   : > { %5127 = vmatmul.mubr.msk.f32.gmra.mxu1 %vm4002_vm0, %v3957_v11 }
 0x44d   : > { %v3552_v36 = vpop.permute.xlu0 %3551  ;;  %v2900_v2 = vpop.permute.xlu1 %2899 }
 0x44e   : > { %v3903_v63 = vsel %vm1510_vm6, %v3310_v0, %v3552_v36  ;;  %v3173_v21 = vsel %vm748_vm1, %v9352_v44, %v2900_v2  ;;  %v3259_v2 = vrot.slane %v8247_v14, 7  ;;  %v3307_v0 = vsel %vm859_vm2, %v3257_v13, %v3258_v49 }
 0x44f   : > { %v3260_v14 = vrot.slane %v8260_v9, 7 }
 0x451   : > { %v3554_v43 = vpop.permute.xlu0 %3553  ;;  %v3768_v53 = vpop.permute.xlu1 %3767 }
 0x452   : > { %v3958_v54 = vsel %vm3931_vm15, %v3903_v63, %v3768_v53  ;;  %v3904_v28 = vsel %vm1510_vm6, %v3309_v8, %v3554_v43 }
 0x453   : > { %5129 = vmatprep.mubr.msk.f32.mxu1 %vm4002_vm0, %v3958_v54  ;;  %v9354_v54 = vld [vmem:[#allocation56_spill] sm:$0xff] }
 0x455   : > { %v2959_v31 = vpop.permute.xlu0 %2958  ;;  %v3065_v45 = vpop.permute.xlu1 %3064 }
 0x456   : > { %v8664_v18 = vsel %vm3174_vm14, %v3120_v60, %v2959_v31  ;;  %v3228_v61 = vsel %vm3174_vm14, %v3173_v21, %v3065_v45  ;;  %v3306_v60 = vsel %vm859_vm2, %v3258_v49, %v3259_v2  ;;  %v3263_v49 = vrot.slane %v8327_v48, 7 }
 0x457   : > { %v3229_v25 = vrot.slane %v8664_v18, 7  ;;  %v3282_v55 = vrot.slane %v3228_v61, 7  ;;  %v3390_v5 = vrot.slane %v3228_v61, 1  ;;  %3499 = vrot.lane.b32.xlu1 %v8664_v18, %s5238_s16  ;;  %3605 = vrot.lane.b32.xlu0 %v3228_v61, %s5238_s16  ;;  %v3337_v51 = vrot.slane %v8664_v18, 1 }
 0x458   : > { %v3261_v61 = vrot.slane %v8280_v58, 7 }
 0x459   : > { %v3770_v39 = vpop.permute.xlu0 %3769  ;;  %v3556_v4 = vpop.permute.xlu1 %3555  ;;  %v3391_v42 = vsel %vm968_vm3, %v3389_v47, %v3390_v5  ;;  %v8681_v62 = vsel %vm859_vm2, %v3281_v50, %v3282_v55  ;;  %v8689_v52 = vsel %vm859_vm2, %v3282_v55, %v3229_v25  ;;  %v3338_v50 = vrot.slane %v9353_v1, 1 }
 0x45a   : > { %v3959_v15 = vsel %vm3931_vm15, %v3904_v28, %v3770_v39  ;;  %v3308_v47 = vsel %vm859_vm2, %v3256_v37, %v3257_v13  ;;  %v3444_v12 = vsel %vm968_vm3, %v3390_v5, %v3337_v51  ;;  %v9355_v37 = vrot.slane %v9354_v54, 1 }
 0x45b   : > { %3501 = vrot.lane.b32.xlu1 %v9353_v1, %s5238_s16  ;;  %5130 = vmatmul.mubr.msk.f32.gmra.mxu1 %vm4002_vm0, %v3959_v15  ;;  %v3905_v29 = vsel %vm1510_vm6, %v3308_v47, %v3556_v4  ;;  %v3443_v36 = vsel %vm968_vm3, %v3337_v51, %v3338_v50  ;;  %v3305_v55 = vsel %vm859_vm2, %v3259_v2, %v3260_v14  ;;  %v3262_v28 = vrot.slane %v8304_v46, 7  ;;  %v8739_v15 = vld [vmem:[%s8982_s4] ss:$0 sm:$0xff] }
 0x45c   : > { %3819 = vrot.lane.b32.xlu0 %v3391_v42, %s5241_s29  ;;  %v3442_v10 = vsel %vm968_vm3, %v3338_v50, %v9355_v37  ;;  %v3304_v39 = vsel %vm859_vm2, %v3260_v14, %v3261_v61  ;;  %v3266_v14 = vrot.slane %v8384_v3, 7 }
 0x45d   : > { %v3558_v41 = vpop.permute.xlu0 %3557  ;;  %v3772_v11 = vpop.permute.xlu1 %3771  ;;  %v3303_v46 = vsel %vm859_vm2, %v3261_v61, %v3262_v28  ;;  %v3302_v48 = vsel %vm859_vm2, %v3262_v28, %v3263_v49 }
 0x45e   : > { %v3960_v38 = vsel %vm3931_vm15, %v3905_v29, %v3772_v11  ;;  %v3906_v63 = vsel %vm1510_vm6, %v3307_v0, %v3558_v41 }
 0x45f   : > { %3715 = vrot.lane.b32.xlu1 %v3443_v36, %s5241_s29  ;;  %5132 = vmatprep.mubr.msk.f32.mxu1 %vm4002_vm0, %v3960_v38 }
 0x460   : > { %3821 = vrot.lane.b32.xlu0 %v3444_v12, %s5241_s29  ;;  %v3264_v12 = vrot.slane %v8343_v24, 7 }
 0x461   : > { %v3774_v43 = vpop.permute.xlu0 %3773  ;;  %v3560_v53 = vpop.permute.xlu1 %3559 }
 0x462   : > { %v3961_v22 = vsel %vm3931_vm15, %v3906_v63, %v3774_v43  ;;  %v3907_v44 = vsel %vm1510_vm6, %v3306_v60, %v3560_v53  ;;  %v3265_v53 = vrot.slane %v8357_v17, 7 }
 0x463   : > { %3717 = vrot.lane.b32.xlu1 %v3442_v10, %s5241_s29  ;;  %5133 = vmatmul.mubr.msk.f32.gmra.mxu1 %vm4002_vm0, %v3961_v22  ;;  %v3301_v22 = vsel %vm859_vm2, %v3263_v49, %v3264_v12 }
 0x464   : > { %v3300_v60 = vsel %vm859_vm2, %v3264_v12, %v3265_v53  ;;  %v3299_v61 = vsel %vm859_vm2, %v3265_v53, %v3266_v14 }
 0x465   : > { %v3562_v21 = vpop.permute.xlu0 %3561  ;;  %v3776_v31 = vpop.permute.xlu1 %3775 }
 0x466   : > { %v3962_v45 = vsel %vm3931_vm15, %v3907_v44, %v3776_v31  ;;  %v3908_v5 = vsel %vm1510_vm6, %v3305_v55, %v3562_v21 }
 0x467   : > { %5135 = vmatprep.mubr.msk.f32.mxu1 %vm4002_vm0, %v3962_v45  ;;  %v3267_v45 = vrot.slane %v8408_v27, 7  ;;  %v3268_v27 = vrot.slane %v8428_v30, 7 }
 0x469   : > { %v3778_v13 = vpop.permute.xlu0 %3777  ;;  %v3564_v9 = vpop.permute.xlu1 %3563 }
 0x46a   : > { %v3963_v8 = vsel %vm3931_vm15, %v3908_v5, %v3778_v13  ;;  %v3909_v4 = vsel %vm1510_vm6, %v3304_v39, %v3564_v9 }
 0x46b   : > { %5136 = vmatmul.mubr.msk.f32.gmra.mxu1 %vm4002_vm0, %v3963_v8 }
 0x46d   : > { %v3566_v42 = vpop.permute.xlu0 %3565  ;;  %v3780_v58 = vpop.permute.xlu1 %3779 }
 0x46e   : > { %v3964_v51 = vsel %vm3931_vm15, %v3909_v4, %v3780_v58  ;;  %v3910_v47 = vsel %vm1510_vm6, %v3303_v46, %v3566_v42  ;;  %v3298_v4 = vsel %vm859_vm2, %v3266_v14, %v3267_v45  ;;  %v3269_v46 = vrot.slane %v8446_v19, 7 }
 0x46f   : > { %5138 = vmatprep.mubr.msk.f32.mxu1 %vm4002_vm0, %v3964_v51 }
 0x470   : > { %v5095_v50 = vpop.f32.mrf.mxu1 }
 0x471   : > { %v4247_v29 = vadd.f32 %v5095_v50, %v8739_v15  ;;  %v3782_v41 = vpop.permute.xlu0 %3781  ;;  %v3568_v11 = vpop.permute.xlu1 %3567  ;;  %v3297_v50 = vsel %vm859_vm2, %v3267_v45, %v3268_v27 }
 0x472   : > { %v3965_v38 = vsel %vm3931_vm15, %v3910_v47, %v3782_v41  ;;  %v4241_v36 = vpop.f32.mrf.mxu1  ;;  %v3911_v2 = vsel %vm1510_vm6, %v3302_v48, %v3568_v11  ;;  %v3296_v11 = vsel %vm859_vm2, %v3268_v27, %v3269_v46  ;;  %v3295_v48 = vsel %vm859_vm2, %v3269_v46, %v3270_v35 }
 0x473   : > { %4503 = vst.msk [vmem:[#allocation3 + $0x18] sm:$0xff] %vm748_vm1, %v4247_v29  ;;  %5139 = vmatmul.mubr.msk.f32.gmra.mxu1 %vm4002_vm0, %v3965_v38 }
 0x475   : > { %v3570_v0 = vpop.permute.xlu0 %3569  ;;  %v3784_v63 = vpop.permute.xlu1 %3783 }
 0x476   : > { %v3966_v43 = vsel %vm3931_vm15, %v3911_v2, %v3784_v63  ;;  %v3912_v54 = vsel %vm1510_vm6, %v3301_v22, %v3570_v0 }
 0x477   : > { %5141 = vmatprep.mubr.msk.f32.mxu1 %vm4002_vm0, %v3966_v43 }
 0x479   : > { %v3786_v37 = vpop.permute.xlu0 %3785  ;;  %v3572_v24 = vpop.permute.xlu1 %3571 }
 0x47a   : > { %v3967_v10 = vsel %vm3931_vm15, %v3912_v54, %v3786_v37  ;;  %v3913_v44 = vsel %vm1510_vm6, %v3300_v60, %v3572_v24 }
 0x47b   : > { %5142 = vmatmul.mubr.msk.f32.gmra.mxu1 %vm4002_vm0, %v3967_v10 }
 0x47d   : > { %v3574_v21 = vpop.permute.xlu0 %3573  ;;  %v3788_v17 = vpop.permute.xlu1 %3787 }
 0x47e   : > { %v3968_v31 = vsel %vm3931_vm15, %v3913_v44, %v3788_v17  ;;  %v3914_v5 = vsel %vm1510_vm6, %v3299_v61, %v3574_v21 }
 0x47f   : > { %5144 = vmatprep.mubr.msk.f32.mxu1 %vm4002_vm0, %v3968_v31 }
 0x480   : > { %v5098_v55 = vpop.f32.mrf.mxu1 }
 0x481   : > { %v4257_v3 = vadd.f32 %v5098_v55, %v8739_v15  ;;  %v3790_v13 = vpop.permute.xlu0 %3789  ;;  %v3576_v9 = vpop.permute.xlu1 %3575 }
 0x482   : > { %v4251_v8 = vpop.f32.mrf.mxu1  ;;  %v3969_v28 = vsel %vm3931_vm15, %v3914_v5, %v3790_v13  ;;  %v3915_v42 = vsel %vm1510_vm6, %v3298_v4, %v3576_v9 }
 0x483   : > { %4505 = vst.msk [vmem:[#allocation3 + $0x28] sm:$0xff] %vm748_vm1, %v4257_v3  ;;  %v4252_v39 = vadd.f32 %v8739_v15, %v4251_v8  ;;  %5145 = vmatmul.mubr.msk.f32.gmra.mxu1 %vm4002_vm0, %v3969_v28 }
 0x485   : > { %4504 = vst.msk [vmem:[#allocation3 + $0x20] sm:$0xff] %vm748_vm1, %v4252_v39  ;;  %v3578_v58 = vpop.permute.xlu0 %3577  ;;  %v3792_v51 = vpop.permute.xlu1 %3791 }
 0x486   : > { %v3970_v49 = vsel %vm3931_vm15, %v3915_v42, %v3792_v51  ;;  %v3916_v30 = vsel %vm1510_vm6, %v3297_v50, %v3578_v58 }
 0x487   : > { %5147 = vmatprep.mubr.msk.f32.mxu1 %vm4002_vm0, %v3970_v49 }
 0x489   : > { %v3794_v47 = vpop.permute.xlu0 %3793  ;;  %v3580_v29 = vpop.permute.xlu1 %3579 }
 0x48a   : > { %v3971_v41 = vsel %vm3931_vm15, %v3916_v30, %v3794_v47  ;;  %v3917_v38 = vsel %vm1510_vm6, %v3296_v11, %v3580_v29 }
 0x48b   : > { %5148 = vmatmul.mubr.msk.f32.gmra.mxu1 %vm4002_vm0, %v3971_v41 }
 0x48c   : > { %v4555_v39 = vld [vmem:[#allocation3 + $0x19] ss:$2 sm:$0xff]  ;;  %v4557_v27 = vld [vmem:[#allocation3 + $0x1a] ss:$2 sm:$0xff] }
 0x48d   : > { %v3582_v36 = vpop.permute.xlu0 %3581  ;;  %v3796_v12 = vpop.permute.xlu1 %3795  ;;  %v4558_v58 = vadd.f32 %v4557_v27, %v4555_v39 }
 0x48e   : > { %v3972_v19 = vsel %vm3931_vm15, %v3917_v38, %v3796_v12  ;;  %v3918_v0 = vsel %vm1510_vm6, %v3295_v48, %v3582_v36 }
 0x48f   : > { %5150 = vmatprep.mubr.msk.f32.mxu1 %vm4002_vm0, %v3972_v19 }
 0x490   : > { %v5101_v2 = vpop.f32.mrf.mxu1 }
 0x491   : > { %v4267_v63 = vadd.f32 %v5101_v2, %v8739_v15  ;;  %v3798_v43 = vpop.permute.xlu0 %3797  ;;  %v3584_v53 = vpop.permute.xlu1 %3583 }
 0x492   : > { %v4261_v22 = vpop.f32.mrf.mxu1  ;;  %v3973_v54 = vsel %vm3931_vm15, %v3918_v0, %v3798_v43  ;;  %v3919_v23 = vsel %vm1510_vm6, %v8237_v40, %v3584_v53 }
 0x493   : > { %4507 = vst.msk [vmem:[#allocation3 + $0x38] sm:$0xff] %vm748_vm1, %v4267_v63  ;;  %v4262_v37 = vadd.f32 %v8739_v15, %v4261_v22  ;;  %5151 = vmatmul.mubr.msk.f32.gmra.mxu1 %vm4002_vm0, %v3973_v54 }
 0x495   : > { %4506 = vst.msk [vmem:[#allocation3 + $0x30] sm:$0xff] %vm748_vm1, %v4262_v37  ;;  %v3586_v35 = vpop.permute.xlu0 %3585  ;;  %v3800_v24 = vpop.permute.xlu1 %3799 }
 0x496   : > { %v3974_v10 = vsel %vm3931_vm15, %v3919_v23, %v3800_v24  ;;  %v3920_v14 = vsel %vm1510_vm6, %v8313_v6, %v3586_v35 }
 0x497   : > { %5153 = vmatprep.mubr.msk.f32.mxu1 %vm4002_vm0, %v3974_v10 }
 0x499   : > { %v3802_v60 = vpop.permute.xlu0 %3801  ;;  %v3588_v44 = vpop.permute.xlu1 %3587 }
 0x49a   : > { %v3975_v21 = vsel %vm3931_vm15, %v3920_v14, %v3802_v60  ;;  %v3921_v17 = vsel %vm1510_vm6, %v8317_v33, %v3588_v44 }
 0x49b   : > { %5154 = vmatmul.mubr.msk.f32.gmra.mxu1 %vm4002_vm0, %v3975_v21 }
 0x49c   : > { %v4560_v42 = vld [vmem:[#allocation3 + $0x31] ss:$2 sm:$0xff] }
 0x49d   : > { %v3590_v31 = vpop.permute.xlu0 %3589  ;;  %v3804_v40 = vpop.permute.xlu1 %3803  ;;  %v4561_v30 = vadd.f32 %v4560_v42, %v4558_v58 }
 0x49e   : > { %v3976_v45 = vsel %vm3931_vm15, %v3921_v17, %v3804_v40  ;;  %v3922_v55 = vsel %vm1510_vm6, %v8394_v32, %v3590_v31 }
 0x49f   : > { %5156 = vmatprep.mubr.msk.f32.mxu1 %vm4002_vm0, %v3976_v45 }
 0x4a0   : > { %v5104_v61 = vpop.f32.mrf.mxu1 }
 0x4a1   : > { %v4277_v6 = vadd.f32 %v5104_v61, %v8739_v15  ;;  %v3806_v5 = vpop.permute.xlu0 %3805  ;;  %v3592_v3 = vpop.permute.xlu1 %3591 }
 0x4a2   : > { %v4271_v13 = vpop.f32.mrf.mxu1  ;;  %v3977_v9 = vsel %vm3931_vm15, %v3922_v55, %v3806_v5  ;;  %v3923_v8 = vsel %vm1510_vm6, %v8398_v26, %v3592_v3 }
 0x4a3   : > { %4509 = vst.msk [vmem:[#allocation3 + $0x48] sm:$0xff] %vm748_vm1, %v4277_v6  ;;  %v4272_v33 = vadd.f32 %v8739_v15, %v4271_v13  ;;  %5157 = vmatmul.mubr.msk.f32.gmra.mxu1 %vm4002_vm0, %v3977_v9 }
 0x4a5   : > { %4508 = vst.msk [vmem:[#allocation3 + $0x40] sm:$0xff] %vm748_vm1, %v4272_v33  ;;  %v3594_v28 = vpop.permute.xlu0 %3593  ;;  %v3808_v32 = vpop.permute.xlu1 %3807 }
 0x4a6   : > { %v3978_v4 = vsel %vm3931_vm15, %v3923_v8, %v3808_v32  ;;  %v3924_v51 = vsel %vm1510_vm6, %v8473_v7, %v3594_v28 }
 0x4a7   : > { %5159 = vmatprep.mubr.msk.f32.mxu1 %vm4002_vm0, %v3978_v4 }
 0x4a9   : > { %v3810_v49 = vpop.permute.xlu0 %3809  ;;  %v3596_v46 = vpop.permute.xlu1 %3595 }
 0x4aa   : > { %v3979_v50 = vsel %vm3931_vm15, %v3924_v51, %v3810_v49  ;;  %v3925_v29 = vsel %vm1510_vm6, %v8477_v34, %v3596_v46 }
 0x4ab   : > { %5160 = vmatmul.mubr.msk.f32.gmra.mxu1 %vm4002_vm0, %v3979_v50 }
 0x4ac   : > { %v4563_v26 = vld [vmem:[#allocation3 + $0x32] ss:$2 sm:$0xff] }
 0x4ad   : > { %v4564_v47 = vadd.f32 %v4563_v26, %v4561_v30  ;;  %v3598_v41 = vpop.permute.xlu0 %3597  ;;  %v3812_v11 = vpop.permute.xlu1 %3811 }
 0x4ae   : > { %v3980_v38 = vsel %vm3931_vm15, %v3925_v29, %v3812_v11  ;;  %v3926_v34 = vsel %vm1510_vm6, %v8529_v16, %v3598_v41 }
 0x4af   : > { %v4642_v36 = vmul.f32 0.25, %v4564_v47  ;;  %5162 = vmatprep.mubr.msk.f32.mxu1 %vm4002_vm0, %v3980_v38 }
 0x4b0   : > { %v5107_v7 = vpop.f32.mrf.mxu1 }
 0x4b1   : > { %vm4650_vm3 = vcmp.ge.f32.partialorder %v4642_v36, 0.0  ;;  %v4658_v12 = vmul.f32 0.2, %v4642_v36  ;;  %v4287_v19 = vadd.f32 %v5107_v7, %v8739_v15  ;;  %v3814_v48 = vpop.permute.xlu0 %3813  ;;  %v3600_v2 = vpop.permute.xlu1 %3599 }
 0x4b2   : > { %v4281_v0 = vpop.f32.mrf.mxu1  ;;  %v3981_v63 = vsel %vm3931_vm15, %v3926_v34, %v3814_v48  ;;  %v3927_v16 = vsel %vm1510_vm6, %v8533_v20, %v3600_v2 }
 0x4b3   : > { %v4666_v43 = vsel %vm4650_vm3, %v4642_v36, %v4658_v12  ;;  %4511 = vst.msk [vmem:[#allocation3 + $0x58] sm:$0xff] %vm748_vm1, %v4287_v19  ;;  %v4282_v53 = vadd.f32 %v8739_v15, %v4281_v0  ;;  %5163 = vmatmul.mubr.msk.f32.gmra.mxu1 %vm4002_vm0, %v3981_v63 }
 0x4b4   : > { %4674 = vst.msk [vmem:[%s8842_s9] sm:$0xff] %vm748_vm1, %v4666_v43 }
 0x4b5   : > { %4510 = vst.msk [vmem:[#allocation3 + $0x50] sm:$0xff] %vm748_vm1, %v4282_v53  ;;  %v3602_v22 = vpop.permute.xlu0 %3601  ;;  %v3816_v54 = vpop.permute.xlu1 %3815 }
 0x4b6   : > { %v3982_v37 = vsel %vm3931_vm15, %v3927_v16, %v3816_v54  ;;  %v3928_v23 = vsel %vm1510_vm6, %v8583_v56, %v3602_v22 }
 0x4b7   : > { %5165 = vmatprep.mubr.msk.f32.mxu1 %vm4002_vm0, %v3982_v37 }
 0x4b9   : > { %v3818_v35 = vpop.permute.xlu0 %3817 }
 0x4ba   : > { %v3983_v24 = vsel %vm3931_vm15, %v3928_v23, %v3818_v35 }
 0x4bb   : > { %5166 = vmatmul.mubr.msk.f32.gmra.mxu1 %vm4002_vm0, %v3983_v24 }
 0x4bc   : > { %v4566_v39 = vld [vmem:[#allocation3 + $0x49] ss:$2 sm:$0xff]  ;;  %v4568_v27 = vld [vmem:[#allocation3 + $0x4a] ss:$2 sm:$0xff] }
 0x4bd   : > { %v3604_v44 = vpop.permute.xlu0 %3603  ;;  %v4569_v42 = vadd.f32 %v4568_v27, %v4566_v39 }
 0x4be   : > { %v3929_v56 = vsel %vm1510_vm6, %v8589_v57, %v3604_v44 }
 0x4c0   : > { %v5110_v10 = vpop.f32.mrf.mxu1 }
 0x4c1   : > { %v4297_v14 = vadd.f32 %v5110_v10, %v8739_v15 }
 0x4c2   : > { %v4291_v60 = vpop.f32.mrf.mxu1 }
 0x4c3   : > { %4513 = vst.msk [vmem:[#allocation3 + $0x68] sm:$0xff] %vm748_vm1, %v4297_v14  ;;  %v4292_v20 = vadd.f32 %v8739_v15, %v4291_v60 }
 0x4c5   : > { %4512 = vst.msk [vmem:[#allocation3 + $0x60] sm:$0xff] %vm748_vm1, %v4292_v20 }
 0x4c9   : > { %v3606_v21 = vpop.permute.xlu0 %3605  ;;  %v3500_v17 = vpop.permute.xlu1 %3499 }
 0x4ca   : > { %v3877_v55 = vsel %vm1510_vm6, %v8689_v52, %v3500_v17  ;;  %v3930_v3 = vsel %vm1510_vm6, %v8681_v62, %v3606_v21  ;;  %v9356_v52 = vrot.slane %v9353_v1, 7 }
 0x4cc   : > { %v3335_v28 = vsel %vm859_vm2, %v3229_v25, %v9356_v52  ;;  %v4571_v1 = vld [vmem:[#allocation3 + $0x61] ss:$2 sm:$0xff] }
 0x4cd   : > { %v3502_v31 = vpop.permute.xlu1 %3501  ;;  %v4572_v18 = vadd.f32 %v4571_v1, %v4569_v42 }
 0x4ce   : > { %v3820_v40 = vpop.permute.xlu0 %3819  ;;  %v3878_v62 = vsel %vm1510_vm6, %v3335_v28, %v3502_v31 }
 0x4cf   : > { %v3984_v45 = vsel %vm3931_vm15, %v3929_v56, %v3820_v40 }
 0x4d0   : > { %v5113_v61 = vpop.f32.mrf.mxu1  ;;  %5168 = vmatprep.mubr.msk.f32.mxu1 %vm4002_vm0, %v3984_v45 }
 0x4d1   : > { %v4307_v6 = vadd.f32 %v5113_v61, %v8739_v15  ;;  %v3716_v5 = vpop.permute.xlu1 %3715 }
 0x4d2   : > { %v4301_v13 = vpop.f32.mrf.mxu1  ;;  %v3822_v9 = vpop.permute.xlu0 %3821  ;;  %v3932_v33 = vsel %vm3931_vm15, %v3877_v55, %v3716_v5 }
 0x4d3   : > { %4515 = vst.msk [vmem:[#allocation3 + $0x78] sm:$0xff] %vm748_vm1, %v4307_v6  ;;  %v4302_v57 = vadd.f32 %v8739_v15, %v4301_v13  ;;  %v3985_v8 = vsel %vm3931_vm15, %v3930_v3, %v3822_v9  ;;  %5090 = vmatprep.mubr.msk.f32.mxu0 %vm4002_vm0, %v3932_v33 }
 0x4d4   : > { %5169 = vmatmul.mubr.msk.f32.gmra.mxu1 %vm4002_vm0, %v3985_v8 }
 0x4d5   : > { %4514 = vst.msk [vmem:[#allocation3 + $0x70] sm:$0xff] %vm748_vm1, %v4302_v57  ;;  %v3718_v32 = vpop.permute.xlu1 %3717 }
 0x4d6   : > { %v3933_v4 = vsel %vm3931_vm15, %v3878_v62, %v3718_v32 }
 0x4d7   : > { %5091 = vmatmul.mubr.msk.f32.vlgmr.msra.gmra.mxu0 %vm4002_vm0, %v3933_v4 }
 0x4dc   : > { %v4574_v58 = vld [vmem:[#allocation3 + $0x62] ss:$2 sm:$0xff] }
 0x4dd   : > { %v4575_v59 = vadd.f32 %v4574_v58, %v4572_v18 }
 0x4df   : > { %v4643_v25 = vmul.f32 0.25, %v4575_v59 }
 0x4e0   : > { %v5116_v51 = vpop.f32.mrf.mxu1 }
 0x4e1   : > { %vm4651_vm2 = vcmp.ge.f32.partialorder %v4643_v25, 0.0  ;;  %v4659_v49 = vmul.f32 0.2, %v4643_v25  ;;  %v4317_v46 = vadd.f32 %v5116_v51, %v8739_v15 }
 0x4e2   : > { %v4311_v50 = vpop.f32.mrf.mxu1 }
 0x4e3   : > { %v4667_v30 = vsel %vm4651_vm2, %v4643_v25, %v4659_v49  ;;  %4517 = vst.msk [vmem:[#allocation3 + $0x88] sm:$0xff] %vm748_vm1, %v4317_v46  ;;  %v4312_v26 = vadd.f32 %v8739_v15, %v4311_v50 }
 0x4e4   : > { %4675 = vst.msk [vmem:[%s8842_s9 + $0x8] sm:$0xff] %vm748_vm1, %v4667_v30 }
 0x4e5   : > { %4516 = vst.msk [vmem:[#allocation3 + $0x80] sm:$0xff] %vm748_vm1, %v4312_v26 }
 0x4ec   : > { %v4577_v34 = vld [vmem:[#allocation3 + $0x79] ss:$2 sm:$0xff]  ;;  %v4579_v19 = vld [vmem:[#allocation3 + $0x7a] ss:$2 sm:$0xff] }
 0x4ed   : > { %v4580_v0 = vadd.f32 %v4579_v19, %v4577_v34 }
 0x4f0   : > { %v5119_v47 = vpop.f32.mrf.mxu1 }
 0x4f1   : > { %v4327_v29 = vadd.f32 %v5119_v47, %v8739_v15 }
 0x4f2   : > { %v4321_v41 = vpop.f32.mrf.mxu1 }
 0x4f3   : > { %4519 = vst.msk [vmem:[#allocation3 + $0x98] sm:$0xff] %vm748_vm1, %v4327_v29  ;;  %v4322_v11 = vadd.f32 %v8739_v15, %v4321_v41 }
 0x4f5   : > { %4518 = vst.msk [vmem:[#allocation3 + $0x90] sm:$0xff] %vm748_vm1, %v4322_v11 }
 0x4fc   : > { %v4582_v48 = vld [vmem:[#allocation3 + $0x91] ss:$2 sm:$0xff] }
 0x4fd   : > { %v5122_v38 = vpop.f32.mrf.mxu1  ;;  %v4583_v53 = vadd.f32 %v4582_v48, %v4580_v0 }
 0x4fe   : > { %v4337_v36 = vadd.f32 %v5122_v38, %v8739_v15 }
 0x4ff   : > { %v4331_v7 = vpop.f32.mrf.mxu1 }
 0x500   : > { %4521 = vst.msk [vmem:[#allocation3 + $0xa8] sm:$0xff] %vm748_vm1, %v4337_v36  ;;  %v4332_v12 = vadd.f32 %v8739_v15, %v4331_v7 }
 0x502   : > { %4520 = vst.msk [vmem:[#allocation3 + $0xa0] sm:$0xff] %vm748_vm1, %v4332_v12 }
 0x505   : > { %v5125_v2 = vpop.f32.mrf.mxu1 }
 0x506   : > { %v4347_v63 = vadd.f32 %v5125_v2, %v8739_v15 }
 0x507   : > { %v4341_v43 = vpop.f32.mrf.mxu1 }
 0x508   : > { %4523 = vst.msk [vmem:[#allocation3 + $0xb8] sm:$0xff] %vm748_vm1, %v4347_v63  ;;  %v4342_v16 = vadd.f32 %v8739_v15, %v4341_v43 }
 0x509   : > { %v4585_v22 = vld [vmem:[#allocation3 + $0x92] ss:$2 sm:$0xff] }
 0x50a   : > { %v4586_v54 = vadd.f32 %v4585_v22, %v4583_v53  ;;  %4522 = vst.msk [vmem:[#allocation3 + $0xb0] sm:$0xff] %vm748_vm1, %v4342_v16 }
 0x50c   : > { %v4644_v37 = vmul.f32 0.25, %v4586_v54  ;;  %v5128_v23 = vpop.f32.mrf.mxu1 }
 0x50d   : > { %v4357_v35 = vadd.f32 %v5128_v23, %v8739_v15 }
 0x50e   : > { %vm4652_vm6 = vcmp.ge.f32.partialorder %v4644_v37, 0.0  ;;  %v4660_v24 = vmul.f32 0.2, %v4644_v37  ;;  %v4351_v10 = vpop.f32.mrf.mxu1 }
 0x50f   : > { %4525 = vst.msk [vmem:[#allocation3 + $0xc8] sm:$0xff] %vm748_vm1, %v4357_v35  ;;  %v4352_v14 = vadd.f32 %v8739_v15, %v4351_v10 }
 0x510   : > { %v4668_v60 = vsel %vm4652_vm6, %v4644_v37, %v4660_v24 }
 0x511   : > { %4676 = vst.msk [vmem:[%s8842_s9 + $0x10] sm:$0xff] %vm748_vm1, %v4668_v60  ;;  %4524 = vst.msk [vmem:[#allocation3 + $0xc0] sm:$0xff] %vm748_vm1, %v4352_v14  ;;  %v4588_v31 = vld [vmem:[#allocation3 + $0xa9] ss:$2 sm:$0xff]  ;;  %v4590_v56 = vld [vmem:[#allocation3 + $0xaa] ss:$2 sm:$0xff] }
 0x512   : > { %v4591_v61 = vadd.f32 %v4590_v56, %v4588_v31 }
 0x518   : > { %v4593_v40 = vld [vmem:[#allocation3 + $0xc1] ss:$2 sm:$0xff] }
 0x519   : > { %v4594_v5 = vadd.f32 %v4593_v40, %v4591_v61 }
 0x51b   : > { %v5131_v20 = vpop.f32.mrf.mxu1 }
 0x51c   : > { %v4367_v44 = vadd.f32 %v5131_v20, %v8739_v15 }
 0x51d   : > { %v4361_v21 = vpop.f32.mrf.mxu1 }
 0x51e   : > { %4527 = vst.msk [vmem:[#allocation3 + $0xd8] sm:$0xff] %vm748_vm1, %v4367_v44  ;;  %v4362_v17 = vadd.f32 %v8739_v15, %v4361_v21 }
 0x520   : > { %4526 = vst.msk [vmem:[#allocation3 + $0xd0] sm:$0xff] %vm748_vm1, %v4362_v17 }
 0x523   : > { %v5134_v45 = vpop.f32.mrf.mxu1 }
 0x524   : > { %v4377_v55 = vadd.f32 %v5134_v45, %v8739_v15 }
 0x525   : > { %v4371_v6 = vpop.f32.mrf.mxu1 }
 0x526   : > { %4529 = vst.msk [vmem:[#allocation3 + $0xe8] sm:$0xff] %vm748_vm1, %v4377_v55  ;;  %v4372_v3 = vadd.f32 %v8739_v15, %v4371_v6 }
 0x527   : > { %v4596_v13 = vld [vmem:[#allocation3 + $0xc2] ss:$2 sm:$0xff] }
 0x528   : > { %v4597_v9 = vadd.f32 %v4596_v13, %v4594_v5  ;;  %4528 = vst.msk [vmem:[#allocation3 + $0xe0] sm:$0xff] %vm748_vm1, %v4372_v3 }
 0x52a   : > { %v4645_v33 = vmul.f32 0.25, %v4597_v9 }
 0x52b   : > { %v5137_v57 = vpop.f32.mrf.mxu1 }
 0x52c   : > { %vm4653_vm4 = vcmp.ge.f32.partialorder %v4645_v33, 0.0  ;;  %v4661_v8 = vmul.f32 0.2, %v4645_v33  ;;  %v4387_v52 = vadd.f32 %v5137_v57, %v8739_v15 }
 0x52d   : > { %v4381_v28 = vpop.f32.mrf.mxu1 }
 0x52e   : > { %v4669_v62 = vsel %vm4653_vm4, %v4645_v33, %v4661_v8  ;;  %4531 = vst.msk [vmem:[#allocation3 + $0xf8] sm:$0xff] %vm748_vm1, %v4387_v52  ;;  %v4382_v32 = vadd.f32 %v8739_v15, %v4381_v28 }
 0x52f   : > { %4677 = vst.msk [vmem:[%s8842_s9 + $0x18] sm:$0xff] %vm748_vm1, %v4669_v62  ;;  %v4599_v42 = vld [vmem:[#allocation3 + $0xd9] ss:$2 sm:$0xff]  ;;  %v4601_v18 = vld [vmem:[#allocation3 + $0xda] ss:$2 sm:$0xff] }
 0x530   : > { %4530 = vst.msk [vmem:[#allocation3 + $0xf0] sm:$0xff] %vm748_vm1, %v4382_v32  ;;  %v4602_v25 = vadd.f32 %v4601_v18, %v4599_v42 }
 0x533   : > { %v5140_v39 = vpop.f32.mrf.mxu1 }
 0x534   : > { %v4397_v27 = vadd.f32 %v5140_v39, %v8739_v15 }
 0x535   : > { %v4391_v4 = vpop.f32.mrf.mxu1 }
 0x536   : > { %4533 = vst.msk [vmem:[#allocation3 + $0x108] sm:$0xff] %vm748_vm1, %v4397_v27  ;;  %v4392_v1 = vadd.f32 %v8739_v15, %v4391_v4 }
 0x537   : > { %v4604_v58 = vld [vmem:[#allocation3 + $0xf1] ss:$2 sm:$0xff] }
 0x538   : > { %4532 = vst.msk [vmem:[#allocation3 + $0x100] sm:$0xff] %vm748_vm1, %v4392_v1  ;;  %v4605_v46 = vadd.f32 %v4604_v58, %v4602_v25 }
 0x53b   : > { %v5143_v59 = vpop.f32.mrf.mxu1 }
 0x53c   : > { %v4407_v51 = vadd.f32 %v5143_v59, %v8739_v15 }
 0x53d   : > { %v4401_v49 = vpop.f32.mrf.mxu1 }
 0x53e   : > { %4535 = vst.msk [vmem:[#allocation3 + $0x118] sm:$0xff] %vm748_vm1, %v4407_v51  ;;  %v4402_v50 = vadd.f32 %v8739_v15, %v4401_v49 }
 0x53f   : > { %v4607_v30 = vld [vmem:[#allocation3 + $0xf2] ss:$2 sm:$0xff] }
 0x540   : > { %v4608_v26 = vadd.f32 %v4607_v30, %v4605_v46  ;;  %4534 = vst.msk [vmem:[#allocation3 + $0x110] sm:$0xff] %vm748_vm1, %v4402_v50 }
 0x542   : > { %v4646_v47 = vmul.f32 0.25, %v4608_v26 }
 0x543   : > { %v5146_v29 = vpop.f32.mrf.mxu1 }
 0x544   : > { %vm4654_vm5 = vcmp.ge.f32.partialorder %v4646_v47, 0.0  ;;  %v4662_v41 = vmul.f32 0.2, %v4646_v47  ;;  %v4417_v11 = vadd.f32 %v5146_v29, %v8739_v15 }
 0x545   : > { %v4411_v38 = vpop.f32.mrf.mxu1 }
 0x546   : > { %v4670_v36 = vsel %vm4654_vm5, %v4646_v47, %v4662_v41  ;;  %4537 = vst.msk [vmem:[#allocation3 + $0x128] sm:$0xff] %vm748_vm1, %v4417_v11  ;;  %v4412_v7 = vadd.f32 %v8739_v15, %v4411_v38 }
 0x547   : > { %4678 = vst.msk [vmem:[%s8842_s9 + $0x20] sm:$0xff] %vm748_vm1, %v4670_v36  ;;  %v4610_v2 = vld [vmem:[#allocation3 + $0x109] ss:$2 sm:$0xff]  ;;  %v4612_v0 = vld [vmem:[#allocation3 + $0x10a] ss:$2 sm:$0xff] }
 0x548   : > { %4536 = vst.msk [vmem:[#allocation3 + $0x120] sm:$0xff] %vm748_vm1, %v4412_v7  ;;  %v4613_v53 = vadd.f32 %v4612_v0, %v4610_v2 }
 0x54b   : > { %v5149_v12 = vpop.f32.mrf.mxu1 }
 0x54c   : > { %v4427_v34 = vadd.f32 %v5149_v12, %v8739_v15 }
 0x54d   : > { %v4421_v19 = vpop.f32.mrf.mxu1 }
 0x54e   : > { %4539 = vst.msk [vmem:[#allocation3 + $0x138] sm:$0xff] %vm748_vm1, %v4427_v34  ;;  %v4422_v48 = vadd.f32 %v8739_v15, %v4421_v19 }
 0x54f   : > { %v4615_v63 = vld [vmem:[#allocation3 + $0x121] ss:$2 sm:$0xff] }
 0x550   : > { %4538 = vst.msk [vmem:[#allocation3 + $0x130] sm:$0xff] %vm748_vm1, %v4422_v48  ;;  %v4616_v54 = vadd.f32 %v4615_v63, %v4613_v53 }
 0x553   : > { %v5152_v43 = vpop.f32.mrf.mxu1 }
 0x554   : > { %v4437_v16 = vadd.f32 %v5152_v43, %v8739_v15 }
 0x555   : > { %v4431_v22 = vpop.f32.mrf.mxu1 }
 0x556   : > { %4541 = vst.msk [vmem:[#allocation3 + $0x148] sm:$0xff] %vm748_vm1, %v4437_v16  ;;  %v4432_v37 = vadd.f32 %v8739_v15, %v4431_v22 }
 0x557   : > { %v4618_v23 = vld [vmem:[#allocation3 + $0x122] ss:$2 sm:$0xff] }
 0x558   : > { %v4619_v35 = vadd.f32 %v4618_v23, %v4616_v54  ;;  %4540 = vst.msk [vmem:[#allocation3 + $0x140] sm:$0xff] %vm748_vm1, %v4432_v37 }
 0x55a   : > { %v4647_v24 = vmul.f32 0.25, %v4619_v35 }
 0x55b   : > { %v5155_v10 = vpop.f32.mrf.mxu1 }
 0x55c   : > { %vm4655_vm7 = vcmp.ge.f32.partialorder %v4647_v24, 0.0  ;;  %v4663_v14 = vmul.f32 0.2, %v4647_v24  ;;  %v4447_v60 = vadd.f32 %v5155_v10, %v8739_v15 }
 0x55d   : > { %v4441_v20 = vpop.f32.mrf.mxu1 }
 0x55e   : > { %v4671_v44 = vsel %vm4655_vm7, %v4647_v24, %v4663_v14  ;;  %4543 = vst.msk [vmem:[#allocation3 + $0x158] sm:$0xff] %vm748_vm1, %v4447_v60  ;;  %v4442_v21 = vadd.f32 %v8739_v15, %v4441_v20 }
 0x55f   : > { %4679 = vst.msk [vmem:[%s8842_s9 + $0x28] sm:$0xff] %vm748_vm1, %v4671_v44  ;;  %v4621_v45 = vld [vmem:[#allocation3 + $0x139] ss:$2 sm:$0xff]  ;;  %v4623_v61 = vld [vmem:[#allocation3 + $0x13a] ss:$2 sm:$0xff] }
 0x560   : > { %4542 = vst.msk [vmem:[#allocation3 + $0x150] sm:$0xff] %vm748_vm1, %v4442_v21  ;;  %v4624_v5 = vadd.f32 %v4623_v61, %v4621_v45 }
 0x563   : > { %v5158_v17 = vpop.f32.mrf.mxu1 }
 0x564   : > { %v4457_v31 = vadd.f32 %v5158_v17, %v8739_v15 }
 0x565   : > { %v4451_v56 = vpop.f32.mrf.mxu1 }
 0x566   : > { %4545 = vst.msk [vmem:[#allocation3 + $0x168] sm:$0xff] %vm748_vm1, %v4457_v31  ;;  %v4452_v40 = vadd.f32 %v8739_v15, %v4451_v56 }
 0x567   : > { %v4626_v55 = vld [vmem:[#allocation3 + $0x151] ss:$2 sm:$0xff] }
 0x568   : > { %4544 = vst.msk [vmem:[#allocation3 + $0x160] sm:$0xff] %vm748_vm1, %v4452_v40  ;;  %v4627_v9 = vadd.f32 %v4626_v55, %v4624_v5 }
 0x56b   : > { %v5161_v6 = vpop.f32.mrf.mxu1 }
 0x56c   : > { %v4467_v3 = vadd.f32 %v5161_v6, %v8739_v15 }
 0x56d   : > { %v4461_v13 = vpop.f32.mrf.mxu1 }
 0x56e   : > { %4547 = vst.msk [vmem:[#allocation3 + $0x178] sm:$0xff] %vm748_vm1, %v4467_v3  ;;  %v4462_v33 = vadd.f32 %v8739_v15, %v4461_v13 }
 0x56f   : > { %v4629_v57 = vld [vmem:[#allocation3 + $0x152] ss:$2 sm:$0xff] }
 0x570   : > { %v4630_v8 = vadd.f32 %v4629_v57, %v4627_v9  ;;  %4546 = vst.msk [vmem:[#allocation3 + $0x170] sm:$0xff] %vm748_vm1, %v4462_v33 }
 0x572   : > { %v4648_v52 = vmul.f32 0.25, %v4630_v8 }
 0x573   : > { %v5164_v28 = vpop.f32.mrf.mxu1 }
 0x574   : > { %vm4656_vm8 = vcmp.ge.f32.partialorder %v4648_v52, 0.0  ;;  %v4664_v62 = vmul.f32 0.2, %v4648_v52  ;;  %v4477_v32 = vadd.f32 %v5164_v28, %v8739_v15 }
 0x575   : > { %v4471_v39 = vpop.f32.mrf.mxu1 }
 0x576   : > { %v4672_v27 = vsel %vm4656_vm8, %v4648_v52, %v4664_v62  ;;  %4549 = vst.msk [vmem:[#allocation3 + $0x188] sm:$0xff] %vm748_vm1, %v4477_v32  ;;  %v4472_v4 = vadd.f32 %v8739_v15, %v4471_v39 }
 0x577   : > { %4680 = vst.msk [vmem:[%s8842_s9 + $0x30] sm:$0xff] %vm748_vm1, %v4672_v27  ;;  %v4632_v58 = vld [vmem:[#allocation3 + $0x169] ss:$2 sm:$0xff]  ;;  %v4634_v59 = vld [vmem:[#allocation3 + $0x16a] ss:$2 sm:$0xff] }
 0x578   : > { %4548 = vst.msk [vmem:[#allocation3 + $0x180] sm:$0xff] %vm748_vm1, %v4472_v4  ;;  %v4635_v51 = vadd.f32 %v4634_v59, %v4632_v58 }
 0x57b   : > { %v5167_v1 = vpop.f32.mrf.mxu1 }
 0x57d   : > { %v4481_v42 = vpop.f32.mrf.mxu1 }
 0x57e   : > { %v4482_v18 = vadd.f32 %v8739_v15, %v4481_v42 }
 0x57f   : > { %v4637_v25 = vld [vmem:[#allocation3 + $0x181] ss:$2 sm:$0xff] }
 0x580   : > { %4550 = vst.msk [vmem:[#allocation3 + $0x190] sm:$0xff] %vm748_vm1, %v4482_v18  ;;  %v4638_v49 = vadd.f32 %v4637_v25, %v4635_v51 }
 0x587   : > { %v4640_v46 = vld [vmem:[#allocation3 + $0x182] ss:$2 sm:$0xff] }
 0x588   : > { %v4641_v50 = vadd.f32 %v4640_v46, %v4638_v49 }
 0x58a   : > { %v4649_v30 = vmul.f32 0.25, %v4641_v50 }
 0x58c   : > { %vm4657_vm9 = vcmp.ge.f32.partialorder %v4649_v30, 0.0  ;;  %v4665_v26 = vmul.f32 0.2, %v4649_v30 }
 0x58e   : > { %v4673_v47 = vsel %vm4657_vm9, %v4649_v30, %v4665_v26 }
 0x58f   : > { %4681 = vst.msk [vmem:[%s8842_s9 + $0x38] sm:$0xff] %vm748_vm1, %v4673_v47 }
 0x594   : > { %v5170_v29 = vpop.f32.mrf.mxu1 }
 0x596   : > { %v4491_v41 = vpop.f32.mrf.mxu1 }
 0x597   : > { %v5092_v11 = vpop.f32.mrf.mxu0 }
 0x599   : > { %v4231_v38 = vpop.f32.mrf.mxu0 }
 0x59a PF: > { %s16_s21 = sadd.s32 1, %s5232_s21  }
 0x59b   : > { %p13_p4 = scmp.ge.s32.totalorder %s16_s21, 4  }
 0x59d   :  { %15 = sbr.rel (!%p13_p4) target bundleno = 1 (0x1), region = 106 }

</bundles_post_ra>
